<compile_context>
chip_gen: v7x
topology: tpu7x:2x2x1
jax: 0.10.0
libtpu: 0.0.40
codegen_flags: <defaults>
</compile_context>

<pallas_src>
import jax
import jax.numpy as jnp
from jax import lax
from jax.experimental import pallas as pl
from jax.experimental.pallas import tpu as pltpu


def _round_up(n, m):
    return ((n + m - 1) // m) * m


def _footprint_bytes(S, S_chunk, Bt, H):
    """Lane/sublane-padded f32 VMEM footprint of one grid step:
    scratch + double-buffered IO tiles + resident weights."""
    Btp = _round_up(Bt, 128)
    Hp = _round_up(H, 8)
    H4p = _round_up(4 * H, 8)
    x_tile = S * _round_up(4, 8) * Btp * 4            # (S, 4, Bt) block
    x3_tile = _round_up(S, 8) * Btp * 4               # (S, Bt) block
    out_tile = _round_up(2, 8) * Btp * 4              # (2, Bt) block
    w_bytes = (Hp * 128 * 4                           # w_lin (H, 4)
               + Hp * 128 * 4                         # b_lin (H, 1)
               + 2 * H4p * _round_up(H, 128) * 4      # w_ih, w_hh (4H, H)
               + H4p * 128 * 4)                       # b_lstm (4H, 1)
    outs_scr = S * Hp * Btp * 4                       # per-step hidden states
    gates_scr = S_chunk * H4p * Btp * 4               # chunked input-gate projections
    return outs_scr + gates_scr + 2 * (x_tile + x3_tile + out_tile + w_bytes)


def _mu_sigma_kernel(x_ref, x3_ref, w_lin_ref, b_lin_ref, w_ih_ref, w_hh_ref,
                     b_lstm_ref, out_ref, outs_ref, gates_ref):
    S, _, Bt = x_ref.shape
    H = w_lin_ref.shape[0]
    S_chunk = gates_ref.shape[0]
    n_chunks = S // S_chunk

    w_lin = w_lin_ref[...]      # (H, 4)
    b_lin = b_lin_ref[...]      # (H, 1)
    w_ih = w_ih_ref[...]        # (4H, H)
    w_hh = w_hh_ref[...]        # (4H, H)
    b_lstm = b_lstm_ref[...]    # (4H, 1)

    def chunk_body(ci, carry):
        base = ci * S_chunk
        # --- hoisted precompute: input-gate projections for this chunk ---------------
        # Independent of (h, c), so these matmuls + the tanh pipeline freely instead of
        # sitting on the serial LSTM critical path.
        # TODO(synk): bf16 operands (f32 accumulate) here would cut MXU passes 3-6x on
        # v6e/v7x but risks the 1e-4 tolerance vs. the f32 reference; kept f32.
        for j in range(S_chunk):
            x_t = x_ref[base + j]                                             # (4, Bt)
            z_t = jnp.tanh(
                jnp.dot(w_lin, x_t, preferred_element_type=jnp.float32) + b_lin)  # (H, Bt)
            gates_ref[j] = (
                jnp.dot(w_ih, z_t, preferred_element_type=jnp.float32) + b_lstm)  # (4H, Bt)

        # --- serial recurrence, fully unrolled, batch in the lane dim ---------------
        h, c = carry                                                          # (H, Bt)
        for j in range(S_chunk):
            g = gates_ref[j] + jnp.dot(w_hh, h, preferred_element_type=jnp.float32)
            # Gate order (i, f, g, o) along sublanes; sigmoid(x) = 0.5*tanh(0.5x)+0.5 so
            # every activated element costs exactly one EUP push.
            i_f = jnp.tanh(0.5 * g[0:2 * H]) * 0.5 + 0.5                      # i and f
            g_g = jnp.tanh(g[2 * H:3 * H])
            o_g = jnp.tanh(0.5 * g[3 * H:4 * H]) * 0.5 + 0.5
            c = i_f[H:2 * H] * c + i_f[0:H] * g_g
            h = o_g * jnp.tanh(c)
            outs_ref[base + j] = h        # per-step hidden state (for attention scores)
        return (h, c)

    h0 = jnp.zeros((H, Bt), jnp.float32)
    c0 = jnp.zeros((H, Bt), jnp.float32)
    if n_chunks == 1:
        h_last, _ = chunk_body(0, (h0, c0))
    else:
        h_last, _ = lax.fori_loop(0, n_chunks, chunk_body, (h0, c0))

    # ---- attention over the sequence + weighted moments (batch in lanes) ------------
    # TODO(synk): outs could be stored in bf16 to halve the largest scratch on v7x; kept
    # f32 to preserve the tight tolerance vs. the PyTorch/JAX reference.
    outs = outs_ref[...]                                                      # (S, H, Bt)
    scores = jnp.sum(outs * h_last[None, :, :], axis=1)                       # (S, Bt)
    m = jnp.max(scores, axis=0, keepdims=True)
    e = jnp.exp(scores - m)
    attn = e / jnp.sum(e, axis=0, keepdims=True)                              # softmax over seq

    x3 = x3_ref[...]                                                          # (S, Bt)
    mu = jnp.sum(attn * x3, axis=0, keepdims=True)                            # (1, Bt)
    sigma = jnp.sqrt(jnp.sum(attn * (x3 - mu) ** 2, axis=0, keepdims=True))   # (1, Bt)
    out_ref[...] = jnp.concatenate([mu, sigma], axis=0)                       # (2, Bt)


def mu_sigma_forward(x, params):
    """Forward pass matching MuSigma.forward. x: (B, S, 4) or (B1, B2, S, 4)."""
    w_lin, b_lin, w_ih, w_hh, b_lstm = params
    x_size = x.shape
    size_4 = (len(x_size) == 4)
    if size_4:
        x = x.reshape(x_size[0] * x_size[1], x_size[2], x_size[3])
    B, S, F = x.shape
    assert F == 4
    H = w_lin.shape[0]
    x = x.astype(jnp.float32)

    # Batch tiling: batch lives in the lane dim inside the kernel, so tiled blocks use a
    # 128-multiple Bt (>=2 tiles whenever B > 128 so both v7x TCs get work); small B uses
    # a single sublane-rounded tile.
    # TODO(synk): on 128 MiB parts (v5e/v6e) Bt=512 for very large B would shave grid
    # overhead; kept <=256 so the same tiling is v7x (64 MiB) safe.
    if B <= 128:
        Bt = _round_up(B, 8)
    else:
        Bt = 256 if B >= 1024 else 128

    # Sequence chunking of the gates scratch (bounds VMEM for long S).
    if S <= 32:
        S_chunk = S
    else:
        S_chunk = next(d for d in range(32, 0, -1) if S % d == 0)

    # Keep the padded working set conservative (v7x: 64 MiB VMEM per TC).
    while Bt > 128 and _footprint_bytes(S, S_chunk, Bt, H) > 40 * 1024 * 1024:
        Bt //= 2
    # TODO(synk): for extremely long S the (S, H, Bt) hidden-state scratch itself would
    # need HBM spill / two-pass attention; not handled here.

    B_pad = _round_up(B, Bt)
    if B_pad != B:
        x = jnp.pad(x, ((0, B_pad - B), (0, 0), (0, 0)))

    xt = jnp.transpose(x, (1, 2, 0))             # (S, 4, B_pad)  batch in the lane dim
    x3 = jnp.transpose(x[:, :, 3], (1, 0))       # (S, B_pad)     dense feature-3 slab

    grid = (B_pad // Bt,)
    fp = _footprint_bytes(S, S_chunk, Bt, H)
    vmem_limit = int(min(max(2 * fp, 16 * 1024 * 1024), 60 * 1024 * 1024))

    out = pl.pallas_call(
        _mu_sigma_kernel,
        out_shape=jax.ShapeDtypeStruct((2, B_pad), jnp.float32),
        grid=grid,
        in_specs=[
            pl.BlockSpec((S, 4, Bt), lambda b: (0, 0, b)),   # x (seq, feat, batch)
            pl.BlockSpec((S, Bt), lambda b: (0, b)),         # x[:, :, 3]
            pl.BlockSpec((H, 4), lambda b: (0, 0)),          # linear weight
            pl.BlockSpec((H, 1), lambda b: (0, 0)),          # linear bias
            pl.BlockSpec((4 * H, H), lambda b: (0, 0)),      # lstm weight_ih
            pl.BlockSpec((4 * H, H), lambda b: (0, 0)),      # lstm weight_hh
            pl.BlockSpec((4 * H, 1), lambda b: (0, 0)),      # lstm bias (b_ih + b_hh)
        ],
        out_specs=pl.BlockSpec((2, Bt), lambda b: (0, b)),   # [mu; sigma] lane-dense slab
        scratch_shapes=[
            pltpu.VMEM((S, H, Bt), jnp.float32),             # per-step hidden states
            pltpu.VMEM((S_chunk, 4 * H, Bt), jnp.float32),   # chunked gate projections
        ],
        compiler_params=pltpu.CompilerParams(
            dimension_semantics=("parallel",),
            vmem_limit_bytes=vmem_limit),
    )(xt, x3, w_lin, b_lin.reshape(H, 1), w_ih, w_hh, b_lstm.reshape(4 * H, 1))

    mu = out[0, :B]
    sigma = out[1, :B]
    if size_4:
        return mu.reshape(x_size[0], x_size[1]), sigma.reshape(x_size[0], x_size[1])
    return mu, sigma


def init_params(key, hidden_size):
    """Deterministic parameter init mirroring nn.Linear(4, H) + nn.LSTM(H, H, 1) shapes."""
    k1, k2, k3, k4, k5, k6 = jax.random.split(key, 6)
    H = hidden_size
    blin = 1.0 / (4.0 ** 0.5)
    w_lin = jax.random.uniform(k1, (H, 4), jnp.float32, -blin, blin)         # Linear weight
    b_lin = jax.random.uniform(k2, (H,), jnp.float32, -blin, blin)
    bl = 1.0 / (H ** 0.5)
    w_ih = jax.random.uniform(k3, (4 * H, H), jnp.float32, -bl, bl)          # weight_ih_l0
    w_hh = jax.random.uniform(k4, (4 * H, H), jnp.float32, -bl, bl)          # weight_hh_l0
    b_ih = jax.random.uniform(k5, (4 * H,), jnp.float32, -bl, bl)
    b_hh = jax.random.uniform(k6, (4 * H,), jnp.float32, -bl, bl)
    return (w_lin, b_lin, w_ih, w_hh, b_ih + b_hh)


def mu_sigma_reference(x, params):
    """Pure-JAX reference of the PyTorch forward for validation."""
    w_lin, b_lin, w_ih, w_hh, b_lstm = params
    x_size = x.shape
    size_4 = (len(x_size) == 4)
    if size_4:
        x = x.reshape(x_size[0] * x_size[1], x_size[2], x_size[3])
    x = x.astype(jnp.float32)
    B, S, _ = x.shape
    H = w_lin.shape[0]
    z = jnp.tanh(x @ w_lin.T + b_lin)                                        # (B, S, H)
    zt = jnp.transpose(z, (1, 0, 2))                                         # (S, B, H)

    def step(carry, z_t):
        h, c = carry
        gates = z_t @ w_ih.T + h @ w_hh.T + b_lstm
        i_g = jax.nn.sigmoid(gates[:, 0:H])
        f_g = jax.nn.sigmoid(gates[:, H:2 * H])
        g_g = jnp.tanh(gates[:, 2 * H:3 * H])
        o_g = jax.nn.sigmoid(gates[:, 3 * H:4 * H])
        c = f_g * c + i_g * g_g
        h = o_g * jnp.tanh(c)
        return (h, c), h

    (_, _), outs = lax.scan(step, (jnp.zeros((B, H)), jnp.zeros((B, H))), zt)
    out_bs = jnp.transpose(outs, (1, 0, 2))                                  # (B, S, H)
    attn = jnp.einsum('bsh,bh->bs', out_bs, outs[-1])
    attn = jax.nn.softmax(attn, axis=1)
    x3 = x[:, :, 3]
    mu = jnp.sum(attn * x3, axis=1)
    sigma = jnp.sqrt(jnp.sum(attn * (x3 - mu[:, None]) ** 2, axis=1))
    if size_4:
        return mu.reshape(x_size[0], x_size[1]), sigma.reshape(x_size[0], x_size[1])
    return mu, sigma


if __name__ == "__main__":
    hidden_size = 32
    key = jax.random.PRNGKey(0)
    kx, kx2, kx3, kp = jax.random.split(key, 4)
    params = init_params(kp, hidden_size)

    # 4-D input branch: (B1, B2, S, 4) -> flattened to (B1*B2, S, 4) internally.
    x4 = jax.random.normal(kx, (2, 4, 8, 4), dtype=jnp.float32)
    mu4, sigma4 = jax.block_until_ready(mu_sigma_forward(x4, params))
    mu4_r, sigma4_r = mu_sigma_reference(x4, params)
    assert mu4.shape == (2, 4) and sigma4.shape == (2, 4)
    assert jnp.allclose(mu4, mu4_r, atol=1e-4, rtol=1e-4)
    assert jnp.allclose(sigma4, sigma4_r, atol=1e-4, rtol=1e-4)

    # 3-D input branch with a batch that needs sublane padding: (B, S, 4).
    x3d = jax.random.normal(kx2, (3, 5, 4), dtype=jnp.float32)
    mu3, sigma3 = jax.block_until_ready(mu_sigma_forward(x3d, params))
    mu3_r, sigma3_r = mu_sigma_reference(x3d, params)
    assert mu3.shape == (3,) and sigma3.shape == (3,)
    assert jnp.allclose(mu3, mu3_r, atol=1e-4, rtol=1e-4)
    assert jnp.allclose(sigma3, sigma3_r, atol=1e-4, rtol=1e-4)

    # Larger case exercising the multi-tile batch grid and the chunked gates scratch.
    xl = jax.random.normal(kx3, (200, 48, 4), dtype=jnp.float32)
    mul, sigmal = jax.block_until_ready(mu_sigma_forward(xl, params))
    mul_r, sigmal_r = mu_sigma_reference(xl, params)
    assert mul.shape == (200,) and sigmal.shape == (200,)
    assert jnp.allclose(mul, mul_r, atol=2e-3, rtol=2e-3)
    assert jnp.allclose(sigmal, sigmal_r, atol=2e-3, rtol=2e-3)

    print("KERNEL_OK")
</pallas_src>

<mosaic_0001>
module attributes {stable_mosaic.version = 11 : i64} {
  func.func @_mu_sigma_kernel(%arg0: i32, %arg1: memref<8x4x8xf32, #tpu.memory_space<vmem>>, %arg2: memref<8x8xf32, #tpu.memory_space<vmem>>, %arg3: memref<32x4xf32, #tpu.memory_space<vmem>>, %arg4: memref<32x1xf32, #tpu.memory_space<vmem>>, %arg5: memref<128x32xf32, #tpu.memory_space<vmem>>, %arg6: memref<128x32xf32, #tpu.memory_space<vmem>>, %arg7: memref<128x1xf32, #tpu.memory_space<vmem>>, %arg8: memref<2x8xf32, #tpu.memory_space<vmem>>, %arg9: memref<8x32x8xf32, #tpu.memory_space<vmem>>, %arg10: memref<8x128x8xf32, #tpu.memory_space<vmem>>) attributes {dimension_semantics = [#tpu.dimension_semantics<parallel>], iteration_bounds = array<i64: 1>, scalar_prefetch = 0 : i64, scratch_operands = 2 : i64, tpu.core_type = #tpu.core_type<tc>, window_params = [{transform_indices = @transform_0, window_bounds = array<i64: 8, 4, 8>}, {transform_indices = @transform_1, window_bounds = array<i64: 8, 8>}, {pipeline_mode = #tpu.pipeline_mode<synchronous>, transform_indices = @transform_2, window_bounds = array<i64: 32, 4>}, {pipeline_mode = #tpu.pipeline_mode<synchronous>, transform_indices = @transform_3, window_bounds = array<i64: 32, 1>}, {pipeline_mode = #tpu.pipeline_mode<synchronous>, transform_indices = @transform_4, window_bounds = array<i64: 128, 32>}, {pipeline_mode = #tpu.pipeline_mode<synchronous>, transform_indices = @transform_5, window_bounds = array<i64: 128, 32>}, {pipeline_mode = #tpu.pipeline_mode<synchronous>, transform_indices = @transform_6, window_bounds = array<i64: 128, 1>}, {transform_indices = @transform_7, window_bounds = array<i64: 2, 8>}]} {
    %c0 = arith.constant 0 : index
    %c0_0 = arith.constant 0 : index
    %0 = vector.load %arg3[%c0, %c0_0] : memref<32x4xf32, #tpu.memory_space<vmem>>, vector<32x4xf32>
    %c0_1 = arith.constant 0 : index
    %c0_2 = arith.constant 0 : index
    %1 = vector.load %arg4[%c0_1, %c0_2] : memref<32x1xf32, #tpu.memory_space<vmem>>, vector<32x1xf32>
    %c0_3 = arith.constant 0 : index
    %c0_4 = arith.constant 0 : index
    %2 = vector.load %arg5[%c0_3, %c0_4] : memref<128x32xf32, #tpu.memory_space<vmem>>, vector<128x32xf32>
    %c0_5 = arith.constant 0 : index
    %c0_6 = arith.constant 0 : index
    %3 = vector.load %arg6[%c0_5, %c0_6] : memref<128x32xf32, #tpu.memory_space<vmem>>, vector<128x32xf32>
    %c0_7 = arith.constant 0 : index
    %c0_8 = arith.constant 0 : index
    %4 = vector.load %arg7[%c0_7, %c0_8] : memref<128x1xf32, #tpu.memory_space<vmem>>, vector<128x1xf32>
    %cst = arith.constant 0.000000e+00 : f32
    %5 = vector.broadcast %cst : f32 to vector<32x8xf32>
    %cst_9 = arith.constant 0.000000e+00 : f32
    %6 = vector.broadcast %cst_9 : f32 to vector<32x8xf32>
    %c0_10 = arith.constant 0 : index
    %c0_11 = arith.constant 0 : index
    %c0_12 = arith.constant 0 : index
    %7 = vector.load %arg1[%c0_10, %c0_11, %c0_12] : memref<8x4x8xf32, #tpu.memory_space<vmem>>, vector<1x4x8xf32>
    %8 = vector.shape_cast %7 : vector<1x4x8xf32> to vector<4x8xf32>
    %cst_13 = arith.constant dense<0.000000e+00> : vector<32x8xf32>
    %9 = tpu.matmul %0, %8, %cst_13 {dimension_numbers = #tpu.dot_dimension_numbers<[1], [0], [0], [1], [0, 0, 1, 1], [], []>} : vector<32x4xf32>, vector<4x8xf32>, vector<32x8xf32> -> vector<32x8xf32>
    %10 = vector.broadcast %1 : vector<32x1xf32> to vector<32x8xf32>
    %11 = arith.addf %9, %10 : vector<32x8xf32>
    %12 = math.tanh %11 : vector<32x8xf32>
    %cst_14 = arith.constant dense<0.000000e+00> : vector<128x8xf32>
    %13 = tpu.matmul %2, %12, %cst_14 {dimension_numbers = #tpu.dot_dimension_numbers<[1], [0], [0], [1], [0, 0, 1, 1], [], []>} : vector<128x32xf32>, vector<32x8xf32>, vector<128x8xf32> -> vector<128x8xf32>
    %14 = vector.broadcast %4 : vector<128x1xf32> to vector<128x8xf32>
    %15 = arith.addf %13, %14 : vector<128x8xf32>
    %c0_15 = arith.constant 0 : index
    %c0_16 = arith.constant 0 : index
    %c0_17 = arith.constant 0 : index
    %16 = vector.load %arg10[%c0_15, %c0_16, %c0_17] : memref<8x128x8xf32, #tpu.memory_space<vmem>>, vector<1x128x8xf32>
    %17 = vector.shape_cast %16 : vector<1x128x8xf32> to vector<128x8xf32>
    %18 = vector.shape_cast %15 : vector<128x8xf32> to vector<1x128x8xf32>
    tpu.vector_store %arg10[%c0_15, %c0_16, %c0_17], %18 {strides = array<i32>} : memref<8x128x8xf32, #tpu.memory_space<vmem>>, vector<1x128x8xf32>,
    %c1 = arith.constant 1 : index
    %c0_18 = arith.constant 0 : index
    %c0_19 = arith.constant 0 : index
    %19 = vector.load %arg1[%c1, %c0_18, %c0_19] : memref<8x4x8xf32, #tpu.memory_space<vmem>>, vector<1x4x8xf32>
    %20 = vector.shape_cast %19 : vector<1x4x8xf32> to vector<4x8xf32>
    %cst_20 = arith.constant dense<0.000000e+00> : vector<32x8xf32>
    %21 = tpu.matmul %0, %20, %cst_20 {dimension_numbers = #tpu.dot_dimension_numbers<[1], [0], [0], [1], [0, 0, 1, 1], [], []>} : vector<32x4xf32>, vector<4x8xf32>, vector<32x8xf32> -> vector<32x8xf32>
    %22 = vector.broadcast %1 : vector<32x1xf32> to vector<32x8xf32>
    %23 = arith.addf %21, %22 : vector<32x8xf32>
    %24 = math.tanh %23 : vector<32x8xf32>
    %cst_21 = arith.constant dense<0.000000e+00> : vector<128x8xf32>
    %25 = tpu.matmul %2, %24, %cst_21 {dimension_numbers = #tpu.dot_dimension_numbers<[1], [0], [0], [1], [0, 0, 1, 1], [], []>} : vector<128x32xf32>, vector<32x8xf32>, vector<128x8xf32> -> vector<128x8xf32>
    %26 = vector.broadcast %4 : vector<128x1xf32> to vector<128x8xf32>
    %27 = arith.addf %25, %26 : vector<128x8xf32>
    %c1_22 = arith.constant 1 : index
    %c0_23 = arith.constant 0 : index
    %c0_24 = arith.constant 0 : index
    %28 = vector.load %arg10[%c1_22, %c0_23, %c0_24] : memref<8x128x8xf32, #tpu.memory_space<vmem>>, vector<1x128x8xf32>
    %29 = vector.shape_cast %28 : vector<1x128x8xf32> to vector<128x8xf32>
    %30 = vector.shape_cast %27 : vector<128x8xf32> to vector<1x128x8xf32>
    tpu.vector_store %arg10[%c1_22, %c0_23, %c0_24], %30 {strides = array<i32>} : memref<8x128x8xf32, #tpu.memory_space<vmem>>, vector<1x128x8xf32>,
    %c2 = arith.constant 2 : index
    %c0_25 = arith.constant 0 : index
    %c0_26 = arith.constant 0 : index
    %31 = vector.load %arg1[%c2, %c0_25, %c0_26] : memref<8x4x8xf32, #tpu.memory_space<vmem>>, vector<1x4x8xf32>
    %32 = vector.shape_cast %31 : vector<1x4x8xf32> to vector<4x8xf32>
    %cst_27 = arith.constant dense<0.000000e+00> : vector<32x8xf32>
    %33 = tpu.matmul %0, %32, %cst_27 {dimension_numbers = #tpu.dot_dimension_numbers<[1], [0], [0], [1], [0, 0, 1, 1], [], []>} : vector<32x4xf32>, vector<4x8xf32>, vector<32x8xf32> -> vector<32x8xf32>
    %34 = vector.broadcast %1 : vector<32x1xf32> to vector<32x8xf32>
    %35 = arith.addf %33, %34 : vector<32x8xf32>
    %36 = math.tanh %35 : vector<32x8xf32>
    %cst_28 = arith.constant dense<0.000000e+00> : vector<128x8xf32>
    %37 = tpu.matmul %2, %36, %cst_28 {dimension_numbers = #tpu.dot_dimension_numbers<[1], [0], [0], [1], [0, 0, 1, 1], [], []>} : vector<128x32xf32>, vector<32x8xf32>, vector<128x8xf32> -> vector<128x8xf32>
    %38 = vector.broadcast %4 : vector<128x1xf32> to vector<128x8xf32>
    %39 = arith.addf %37, %38 : vector<128x8xf32>
    %c2_29 = arith.constant 2 : index
    %c0_30 = arith.constant 0 : index
    %c0_31 = arith.constant 0 : index
    %40 = vector.load %arg10[%c2_29, %c0_30, %c0_31] : memref<8x128x8xf32, #tpu.memory_space<vmem>>, vector<1x128x8xf32>
    %41 = vector.shape_cast %40 : vector<1x128x8xf32> to vector<128x8xf32>
    %42 = vector.shape_cast %39 : vector<128x8xf32> to vector<1x128x8xf32>
    tpu.vector_store %arg10[%c2_29, %c0_30, %c0_31], %42 {strides = array<i32>} : memref<8x128x8xf32, #tpu.memory_space<vmem>>, vector<1x128x8xf32>,
    %c3 = arith.constant 3 : index
    %c0_32 = arith.constant 0 : index
    %c0_33 = arith.constant 0 : index
    %43 = vector.load %arg1[%c3, %c0_32, %c0_33] : memref<8x4x8xf32, #tpu.memory_space<vmem>>, vector<1x4x8xf32>
    %44 = vector.shape_cast %43 : vector<1x4x8xf32> to vector<4x8xf32>
    %cst_34 = arith.constant dense<0.000000e+00> : vector<32x8xf32>
    %45 = tpu.matmul %0, %44, %cst_34 {dimension_numbers = #tpu.dot_dimension_numbers<[1], [0], [0], [1], [0, 0, 1, 1], [], []>} : vector<32x4xf32>, vector<4x8xf32>, vector<32x8xf32> -> vector<32x8xf32>
    %46 = vector.broadcast %1 : vector<32x1xf32> to vector<32x8xf32>
    %47 = arith.addf %45, %46 : vector<32x8xf32>
    %48 = math.tanh %47 : vector<32x8xf32>
    %cst_35 = arith.constant dense<0.000000e+00> : vector<128x8xf32>
    %49 = tpu.matmul %2, %48, %cst_35 {dimension_numbers = #tpu.dot_dimension_numbers<[1], [0], [0], [1], [0, 0, 1, 1], [], []>} : vector<128x32xf32>, vector<32x8xf32>, vector<128x8xf32> -> vector<128x8xf32>
    %50 = vector.broadcast %4 : vector<128x1xf32> to vector<128x8xf32>
    %51 = arith.addf %49, %50 : vector<128x8xf32>
    %c3_36 = arith.constant 3 : index
    %c0_37 = arith.constant 0 : index
    %c0_38 = arith.constant 0 : index
    %52 = vector.load %arg10[%c3_36, %c0_37, %c0_38] : memref<8x128x8xf32, #tpu.memory_space<vmem>>, vector<1x128x8xf32>
    %53 = vector.shape_cast %52 : vector<1x128x8xf32> to vector<128x8xf32>
    %54 = vector.shape_cast %51 : vector<128x8xf32> to vector<1x128x8xf32>
    tpu.vector_store %arg10[%c3_36, %c0_37, %c0_38], %54 {strides = array<i32>} : memref<8x128x8xf32, #tpu.memory_space<vmem>>, vector<1x128x8xf32>,
    %c4 = arith.constant 4 : index
    %c0_39 = arith.constant 0 : index
    %c0_40 = arith.constant 0 : index
    %55 = vector.load %arg1[%c4, %c0_39, %c0_40] : memref<8x4x8xf32, #tpu.memory_space<vmem>>, vector<1x4x8xf32>
    %56 = vector.shape_cast %55 : vector<1x4x8xf32> to vector<4x8xf32>
    %cst_41 = arith.constant dense<0.000000e+00> : vector<32x8xf32>
    %57 = tpu.matmul %0, %56, %cst_41 {dimension_numbers = #tpu.dot_dimension_numbers<[1], [0], [0], [1], [0, 0, 1, 1], [], []>} : vector<32x4xf32>, vector<4x8xf32>, vector<32x8xf32> -> vector<32x8xf32>
    %58 = vector.broadcast %1 : vector<32x1xf32> to vector<32x8xf32>
    %59 = arith.addf %57, %58 : vector<32x8xf32>
    %60 = math.tanh %59 : vector<32x8xf32>
    %cst_42 = arith.constant dense<0.000000e+00> : vector<128x8xf32>
    %61 = tpu.matmul %2, %60, %cst_42 {dimension_numbers = #tpu.dot_dimension_numbers<[1], [0], [0], [1], [0, 0, 1, 1], [], []>} : vector<128x32xf32>, vector<32x8xf32>, vector<128x8xf32> -> vector<128x8xf32>
    %62 = vector.broadcast %4 : vector<128x1xf32> to vector<128x8xf32>
    %63 = arith.addf %61, %62 : vector<128x8xf32>
    %c4_43 = arith.constant 4 : index
    %c0_44 = arith.constant 0 : index
    %c0_45 = arith.constant 0 : index
    %64 = vector.load %arg10[%c4_43, %c0_44, %c0_45] : memref<8x128x8xf32, #tpu.memory_space<vmem>>, vector<1x128x8xf32>
    %65 = vector.shape_cast %64 : vector<1x128x8xf32> to vector<128x8xf32>
    %66 = vector.shape_cast %63 : vector<128x8xf32> to vector<1x128x8xf32>
    tpu.vector_store %arg10[%c4_43, %c0_44, %c0_45], %66 {strides = array<i32>} : memref<8x128x8xf32, #tpu.memory_space<vmem>>, vector<1x128x8xf32>,
    %c5 = arith.constant 5 : index
    %c0_46 = arith.constant 0 : index
    %c0_47 = arith.constant 0 : index
    %67 = vector.load %arg1[%c5, %c0_46, %c0_47] : memref<8x4x8xf32, #tpu.memory_space<vmem>>, vector<1x4x8xf32>
    %68 = vector.shape_cast %67 : vector<1x4x8xf32> to vector<4x8xf32>
    %cst_48 = arith.constant dense<0.000000e+00> : vector<32x8xf32>
    %69 = tpu.matmul %0, %68, %cst_48 {dimension_numbers = #tpu.dot_dimension_numbers<[1], [0], [0], [1], [0, 0, 1, 1], [], []>} : vector<32x4xf32>, vector<4x8xf32>, vector<32x8xf32> -> vector<32x8xf32>
    %70 = vector.broadcast %1 : vector<32x1xf32> to vector<32x8xf32>
    %71 = arith.addf %69, %70 : vector<32x8xf32>
    %72 = math.tanh %71 : vector<32x8xf32>
    %cst_49 = arith.constant dense<0.000000e+00> : vector<128x8xf32>
    %73 = tpu.matmul %2, %72, %cst_49 {dimension_numbers = #tpu.dot_dimension_numbers<[1], [0], [0], [1], [0, 0, 1, 1], [], []>} : vector<128x32xf32>, vector<32x8xf32>, vector<128x8xf32> -> vector<128x8xf32>
    %74 = vector.broadcast %4 : vector<128x1xf32> to vector<128x8xf32>
    %75 = arith.addf %73, %74 : vector<128x8xf32>
    %c5_50 = arith.constant 5 : index
    %c0_51 = arith.constant 0 : index
    %c0_52 = arith.constant 0 : index
    %76 = vector.load %arg10[%c5_50, %c0_51, %c0_52] : memref<8x128x8xf32, #tpu.memory_space<vmem>>, vector<1x128x8xf32>
    %77 = vector.shape_cast %76 : vector<1x128x8xf32> to vector<128x8xf32>
    %78 = vector.shape_cast %75 : vector<128x8xf32> to vector<1x128x8xf32>
    tpu.vector_store %arg10[%c5_50, %c0_51, %c0_52], %78 {strides = array<i32>} : memref<8x128x8xf32, #tpu.memory_space<vmem>>, vector<1x128x8xf32>,
    %c6 = arith.constant 6 : index
    %c0_53 = arith.constant 0 : index
    %c0_54 = arith.constant 0 : index
    %79 = vector.load %arg1[%c6, %c0_53, %c0_54] : memref<8x4x8xf32, #tpu.memory_space<vmem>>, vector<1x4x8xf32>
    %80 = vector.shape_cast %79 : vector<1x4x8xf32> to vector<4x8xf32>
    %cst_55 = arith.constant dense<0.000000e+00> : vector<32x8xf32>
    %81 = tpu.matmul %0, %80, %cst_55 {dimension_numbers = #tpu.dot_dimension_numbers<[1], [0], [0], [1], [0, 0, 1, 1], [], []>} : vector<32x4xf32>, vector<4x8xf32>, vector<32x8xf32> -> vector<32x8xf32>
    %82 = vector.broadcast %1 : vector<32x1xf32> to vector<32x8xf32>
    %83 = arith.addf %81, %82 : vector<32x8xf32>
    %84 = math.tanh %83 : vector<32x8xf32>
    %cst_56 = arith.constant dense<0.000000e+00> : vector<128x8xf32>
    %85 = tpu.matmul %2, %84, %cst_56 {dimension_numbers = #tpu.dot_dimension_numbers<[1], [0], [0], [1], [0, 0, 1, 1], [], []>} : vector<128x32xf32>, vector<32x8xf32>, vector<128x8xf32> -> vector<128x8xf32>
    %86 = vector.broadcast %4 : vector<128x1xf32> to vector<128x8xf32>
    %87 = arith.addf %85, %86 : vector<128x8xf32>
    %c6_57 = arith.constant 6 : index
    %c0_58 = arith.constant 0 : index
    %c0_59 = arith.constant 0 : index
    %88 = vector.load %arg10[%c6_57, %c0_58, %c0_59] : memref<8x128x8xf32, #tpu.memory_space<vmem>>, vector<1x128x8xf32>
    %89 = vector.shape_cast %88 : vector<1x128x8xf32> to vector<128x8xf32>
    %90 = vector.shape_cast %87 : vector<128x8xf32> to vector<1x128x8xf32>
    tpu.vector_store %arg10[%c6_57, %c0_58, %c0_59], %90 {strides = array<i32>} : memref<8x128x8xf32, #tpu.memory_space<vmem>>, vector<1x128x8xf32>,
    %c7 = arith.constant 7 : index
    %c0_60 = arith.constant 0 : index
    %c0_61 = arith.constant 0 : index
    %91 = vector.load %arg1[%c7, %c0_60, %c0_61] : memref<8x4x8xf32, #tpu.memory_space<vmem>>, vector<1x4x8xf32>
    %92 = vector.shape_cast %91 : vector<1x4x8xf32> to vector<4x8xf32>
    %cst_62 = arith.constant dense<0.000000e+00> : vector<32x8xf32>
    %93 = tpu.matmul %0, %92, %cst_62 {dimension_numbers = #tpu.dot_dimension_numbers<[1], [0], [0], [1], [0, 0, 1, 1], [], []>} : vector<32x4xf32>, vector<4x8xf32>, vector<32x8xf32> -> vector<32x8xf32>
    %94 = vector.broadcast %1 : vector<32x1xf32> to vector<32x8xf32>
    %95 = arith.addf %93, %94 : vector<32x8xf32>
    %96 = math.tanh %95 : vector<32x8xf32>
    %cst_63 = arith.constant dense<0.000000e+00> : vector<128x8xf32>
    %97 = tpu.matmul %2, %96, %cst_63 {dimension_numbers = #tpu.dot_dimension_numbers<[1], [0], [0], [1], [0, 0, 1, 1], [], []>} : vector<128x32xf32>, vector<32x8xf32>, vector<128x8xf32> -> vector<128x8xf32>
    %98 = vector.broadcast %4 : vector<128x1xf32> to vector<128x8xf32>
    %99 = arith.addf %97, %98 : vector<128x8xf32>
    %c7_64 = arith.constant 7 : index
    %c0_65 = arith.constant 0 : index
    %c0_66 = arith.constant 0 : index
    %100 = vector.load %arg10[%c7_64, %c0_65, %c0_66] : memref<8x128x8xf32, #tpu.memory_space<vmem>>, vector<1x128x8xf32>
    %101 = vector.shape_cast %100 : vector<1x128x8xf32> to vector<128x8xf32>
    %102 = vector.shape_cast %99 : vector<128x8xf32> to vector<1x128x8xf32>
    tpu.vector_store %arg10[%c7_64, %c0_65, %c0_66], %102 {strides = array<i32>} : memref<8x128x8xf32, #tpu.memory_space<vmem>>, vector<1x128x8xf32>,
    %c0_67 = arith.constant 0 : index
    %c0_68 = arith.constant 0 : index
    %c0_69 = arith.constant 0 : index
    %103 = vector.load %arg10[%c0_67, %c0_68, %c0_69] : memref<8x128x8xf32, #tpu.memory_space<vmem>>, vector<1x128x8xf32>
    %104 = vector.shape_cast %103 : vector<1x128x8xf32> to vector<128x8xf32>
    %cst_70 = arith.constant dense<0.000000e+00> : vector<128x8xf32>
    %105 = tpu.matmul %3, %5, %cst_70 {dimension_numbers = #tpu.dot_dimension_numbers<[1], [0], [0], [1], [0, 0, 1, 1], [], []>} : vector<128x32xf32>, vector<32x8xf32>, vector<128x8xf32> -> vector<128x8xf32>
    %106 = arith.addf %104, %105 : vector<128x8xf32>
    %107 = vector.extract_strided_slice %106 {offsets = [0, 0], sizes = [64, 8], strides = [1, 1]} : vector<128x8xf32> to vector<64x8xf32>
    %cst_71 = arith.constant 5.000000e-01 : f32
    %108 = vector.broadcast %cst_71 : f32 to vector<64x8xf32>
    %109 = arith.mulf %108, %107 : vector<64x8xf32>
    %110 = math.tanh %109 : vector<64x8xf32>
    %cst_72 = arith.constant 5.000000e-01 : f32
    %111 = vector.broadcast %cst_72 : f32 to vector<64x8xf32>
    %112 = arith.mulf %110, %111 : vector<64x8xf32>
    %cst_73 = arith.constant 5.000000e-01 : f32
    %113 = vector.broadcast %cst_73 : f32 to vector<64x8xf32>
    %114 = arith.addf %112, %113 : vector<64x8xf32>
    %115 = vector.extract_strided_slice %106 {offsets = [64, 0], sizes = [32, 8], strides = [1, 1]} : vector<128x8xf32> to vector<32x8xf32>
    %116 = math.tanh %115 : vector<32x8xf32>
    %117 = vector.extract_strided_slice %106 {offsets = [96, 0], sizes = [32, 8], strides = [1, 1]} : vector<128x8xf32> to vector<32x8xf32>
    %cst_74 = arith.constant 5.000000e-01 : f32
    %118 = vector.broadcast %cst_74 : f32 to vector<32x8xf32>
    %119 = arith.mulf %118, %117 : vector<32x8xf32>
    %120 = math.tanh %119 : vector<32x8xf32>
    %cst_75 = arith.constant 5.000000e-01 : f32
    %121 = vector.broadcast %cst_75 : f32 to vector<32x8xf32>
    %122 = arith.mulf %120, %121 : vector<32x8xf32>
    %cst_76 = arith.constant 5.000000e-01 : f32
    %123 = vector.broadcast %cst_76 : f32 to vector<32x8xf32>
    %124 = arith.addf %122, %123 : vector<32x8xf32>
    %125 = vector.extract_strided_slice %114 {offsets = [32, 0], sizes = [32, 8], strides = [1, 1]} : vector<64x8xf32> to vector<32x8xf32>
    %126 = arith.mulf %125, %6 : vector<32x8xf32>
    %127 = vector.extract_strided_slice %114 {offsets = [0, 0], sizes = [32, 8], strides = [1, 1]} : vector<64x8xf32> to vector<32x8xf32>
    %128 = arith.mulf %127, %116 : vector<32x8xf32>
    %129 = arith.addf %126, %128 : vector<32x8xf32>
    %130 = math.tanh %129 : vector<32x8xf32>
    %131 = arith.mulf %124, %130 : vector<32x8xf32>
    %c0_77 = arith.constant 0 : index
    %c0_78 = arith.constant 0 : index
    %c0_79 = arith.constant 0 : index
    %132 = vector.load %arg9[%c0_77, %c0_78, %c0_79] : memref<8x32x8xf32, #tpu.memory_space<vmem>>, vector<1x32x8xf32>
    %133 = vector.shape_cast %132 : vector<1x32x8xf32> to vector<32x8xf32>
    %134 = vector.shape_cast %131 : vector<32x8xf32> to vector<1x32x8xf32>
    tpu.vector_store %arg9[%c0_77, %c0_78, %c0_79], %134 {strides = array<i32>} : memref<8x32x8xf32, #tpu.memory_space<vmem>>, vector<1x32x8xf32>,
    %c1_80 = arith.constant 1 : index
    %c0_81 = arith.constant 0 : index
    %c0_82 = arith.constant 0 : index
    %135 = vector.load %arg10[%c1_80, %c0_81, %c0_82] : memref<8x128x8xf32, #tpu.memory_space<vmem>>, vector<1x128x8xf32>
    %136 = vector.shape_cast %135 : vector<1x128x8xf32> to vector<128x8xf32>
    %cst_83 = arith.constant dense<0.000000e+00> : vector<128x8xf32>
    %137 = tpu.matmul %3, %131, %cst_83 {dimension_numbers = #tpu.dot_dimension_numbers<[1], [0], [0], [1], [0, 0, 1, 1], [], []>} : vector<128x32xf32>, vector<32x8xf32>, vector<128x8xf32> -> vector<128x8xf32>
    %138 = arith.addf %136, %137 : vector<128x8xf32>
    %139 = vector.extract_strided_slice %138 {offsets = [0, 0], sizes = [64, 8], strides = [1, 1]} : vector<128x8xf32> to vector<64x8xf32>
    %cst_84 = arith.constant 5.000000e-01 : f32
    %140 = vector.broadcast %cst_84 : f32 to vector<64x8xf32>
    %141 = arith.mulf %140, %139 : vector<64x8xf32>
    %142 = math.tanh %141 : vector<64x8xf32>
    %cst_85 = arith.constant 5.000000e-01 : f32
    %143 = vector.broadcast %cst_85 : f32 to vector<64x8xf32>
    %144 = arith.mulf %142, %143 : vector<64x8xf32>
    %cst_86 = arith.constant 5.000000e-01 : f32
    %145 = vector.broadcast %cst_86 : f32 to vector<64x8xf32>
    %146 = arith.addf %144, %145 : vector<64x8xf32>
    %147 = vector.extract_strided_slice %138 {offsets = [64, 0], sizes = [32, 8], strides = [1, 1]} : vector<128x8xf32> to vector<32x8xf32>
    %148 = math.tanh %147 : vector<32x8xf32>
    %149 = vector.extract_strided_slice %138 {offsets = [96, 0], sizes = [32, 8], strides = [1, 1]} : vector<128x8xf32> to vector<32x8xf32>
    %cst_87 = arith.constant 5.000000e-01 : f32
    %150 = vector.broadcast %cst_87 : f32 to vector<32x8xf32>
    %151 = arith.mulf %150, %149 : vector<32x8xf32>
    %152 = math.tanh %151 : vector<32x8xf32>
    %cst_88 = arith.constant 5.000000e-01 : f32
    %153 = vector.broadcast %cst_88 : f32 to vector<32x8xf32>
    %154 = arith.mulf %152, %153 : vector<32x8xf32>
    %cst_89 = arith.constant 5.000000e-01 : f32
    %155 = vector.broadcast %cst_89 : f32 to vector<32x8xf32>
    %156 = arith.addf %154, %155 : vector<32x8xf32>
    %157 = vector.extract_strided_slice %146 {offsets = [32, 0], sizes = [32, 8], strides = [1, 1]} : vector<64x8xf32> to vector<32x8xf32>
    %158 = arith.mulf %157, %129 : vector<32x8xf32>
    %159 = vector.extract_strided_slice %146 {offsets = [0, 0], sizes = [32, 8], strides = [1, 1]} : vector<64x8xf32> to vector<32x8xf32>
    %160 = arith.mulf %159, %148 : vector<32x8xf32>
    %161 = arith.addf %158, %160 : vector<32x8xf32>
    %162 = math.tanh %161 : vector<32x8xf32>
    %163 = arith.mulf %156, %162 : vector<32x8xf32>
    %c1_90 = arith.constant 1 : index
    %c0_91 = arith.constant 0 : index
    %c0_92 = arith.constant 0 : index
    %164 = vector.load %arg9[%c1_90, %c0_91, %c0_92] : memref<8x32x8xf32, #tpu.memory_space<vmem>>, vector<1x32x8xf32>
    %165 = vector.shape_cast %164 : vector<1x32x8xf32> to vector<32x8xf32>
    %166 = vector.shape_cast %163 : vector<32x8xf32> to vector<1x32x8xf32>
    tpu.vector_store %arg9[%c1_90, %c0_91, %c0_92], %166 {strides = array<i32>} : memref<8x32x8xf32, #tpu.memory_space<vmem>>, vector<1x32x8xf32>,
    %c2_93 = arith.constant 2 : index
    %c0_94 = arith.constant 0 : index
    %c0_95 = arith.constant 0 : index
    %167 = vector.load %arg10[%c2_93, %c0_94, %c0_95] : memref<8x128x8xf32, #tpu.memory_space<vmem>>, vector<1x128x8xf32>
    %168 = vector.shape_cast %167 : vector<1x128x8xf32> to vector<128x8xf32>
    %cst_96 = arith.constant dense<0.000000e+00> : vector<128x8xf32>
    %169 = tpu.matmul %3, %163, %cst_96 {dimension_numbers = #tpu.dot_dimension_numbers<[1], [0], [0], [1], [0, 0, 1, 1], [], []>} : vector<128x32xf32>, vector<32x8xf32>, vector<128x8xf32> -> vector<128x8xf32>
    %170 = arith.addf %168, %169 : vector<128x8xf32>
    %171 = vector.extract_strided_slice %170 {offsets = [0, 0], sizes = [64, 8], strides = [1, 1]} : vector<128x8xf32> to vector<64x8xf32>
    %cst_97 = arith.constant 5.000000e-01 : f32
    %172 = vector.broadcast %cst_97 : f32 to vector<64x8xf32>
    %173 = arith.mulf %172, %171 : vector<64x8xf32>
    %174 = math.tanh %173 : vector<64x8xf32>
    %cst_98 = arith.constant 5.000000e-01 : f32
    %175 = vector.broadcast %cst_98 : f32 to vector<64x8xf32>
    %176 = arith.mulf %174, %175 : vector<64x8xf32>
    %cst_99 = arith.constant 5.000000e-01 : f32
    %177 = vector.broadcast %cst_99 : f32 to vector<64x8xf32>
    %178 = arith.addf %176, %177 : vector<64x8xf32>
    %179 = vector.extract_strided_slice %170 {offsets = [64, 0], sizes = [32, 8], strides = [1, 1]} : vector<128x8xf32> to vector<32x8xf32>
    %180 = math.tanh %179 : vector<32x8xf32>
    %181 = vector.extract_strided_slice %170 {offsets = [96, 0], sizes = [32, 8], strides = [1, 1]} : vector<128x8xf32> to vector<32x8xf32>
    %cst_100 = arith.constant 5.000000e-01 : f32
    %182 = vector.broadcast %cst_100 : f32 to vector<32x8xf32>
    %183 = arith.mulf %182, %181 : vector<32x8xf32>
    %184 = math.tanh %183 : vector<32x8xf32>
    %cst_101 = arith.constant 5.000000e-01 : f32
    %185 = vector.broadcast %cst_101 : f32 to vector<32x8xf32>
    %186 = arith.mulf %184, %185 : vector<32x8xf32>
    %cst_102 = arith.constant 5.000000e-01 : f32
    %187 = vector.broadcast %cst_102 : f32 to vector<32x8xf32>
    %188 = arith.addf %186, %187 : vector<32x8xf32>
    %189 = vector.extract_strided_slice %178 {offsets = [32, 0], sizes = [32, 8], strides = [1, 1]} : vector<64x8xf32> to vector<32x8xf32>
    %190 = arith.mulf %189, %161 : vector<32x8xf32>
    %191 = vector.extract_strided_slice %178 {offsets = [0, 0], sizes = [32, 8], strides = [1, 1]} : vector<64x8xf32> to vector<32x8xf32>
    %192 = arith.mulf %191, %180 : vector<32x8xf32>
    %193 = arith.addf %190, %192 : vector<32x8xf32>
    %194 = math.tanh %193 : vector<32x8xf32>
    %195 = arith.mulf %188, %194 : vector<32x8xf32>
    %c2_103 = arith.constant 2 : index
    %c0_104 = arith.constant 0 : index
    %c0_105 = arith.constant 0 : index
    %196 = vector.load %arg9[%c2_103, %c0_104, %c0_105] : memref<8x32x8xf32, #tpu.memory_space<vmem>>, vector<1x32x8xf32>
    %197 = vector.shape_cast %196 : vector<1x32x8xf32> to vector<32x8xf32>
    %198 = vector.shape_cast %195 : vector<32x8xf32> to vector<1x32x8xf32>
    tpu.vector_store %arg9[%c2_103, %c0_104, %c0_105], %198 {strides = array<i32>} : memref<8x32x8xf32, #tpu.memory_space<vmem>>, vector<1x32x8xf32>,
    %c3_106 = arith.constant 3 : index
    %c0_107 = arith.constant 0 : index
    %c0_108 = arith.constant 0 : index
    %199 = vector.load %arg10[%c3_106, %c0_107, %c0_108] : memref<8x128x8xf32, #tpu.memory_space<vmem>>, vector<1x128x8xf32>
    %200 = vector.shape_cast %199 : vector<1x128x8xf32> to vector<128x8xf32>
    %cst_109 = arith.constant dense<0.000000e+00> : vector<128x8xf32>
    %201 = tpu.matmul %3, %195, %cst_109 {dimension_numbers = #tpu.dot_dimension_numbers<[1], [0], [0], [1], [0, 0, 1, 1], [], []>} : vector<128x32xf32>, vector<32x8xf32>, vector<128x8xf32> -> vector<128x8xf32>
    %202 = arith.addf %200, %201 : vector<128x8xf32>
    %203 = vector.extract_strided_slice %202 {offsets = [0, 0], sizes = [64, 8], strides = [1, 1]} : vector<128x8xf32> to vector<64x8xf32>
    %cst_110 = arith.constant 5.000000e-01 : f32
    %204 = vector.broadcast %cst_110 : f32 to vector<64x8xf32>
    %205 = arith.mulf %204, %203 : vector<64x8xf32>
    %206 = math.tanh %205 : vector<64x8xf32>
    %cst_111 = arith.constant 5.000000e-01 : f32
    %207 = vector.broadcast %cst_111 : f32 to vector<64x8xf32>
    %208 = arith.mulf %206, %207 : vector<64x8xf32>
    %cst_112 = arith.constant 5.000000e-01 : f32
    %209 = vector.broadcast %cst_112 : f32 to vector<64x8xf32>
    %210 = arith.addf %208, %209 : vector<64x8xf32>
    %211 = vector.extract_strided_slice %202 {offsets = [64, 0], sizes = [32, 8], strides = [1, 1]} : vector<128x8xf32> to vector<32x8xf32>
    %212 = math.tanh %211 : vector<32x8xf32>
    %213 = vector.extract_strided_slice %202 {offsets = [96, 0], sizes = [32, 8], strides = [1, 1]} : vector<128x8xf32> to vector<32x8xf32>
    %cst_113 = arith.constant 5.000000e-01 : f32
    %214 = vector.broadcast %cst_113 : f32 to vector<32x8xf32>
    %215 = arith.mulf %214, %213 : vector<32x8xf32>
    %216 = math.tanh %215 : vector<32x8xf32>
    %cst_114 = arith.constant 5.000000e-01 : f32
    %217 = vector.broadcast %cst_114 : f32 to vector<32x8xf32>
    %218 = arith.mulf %216, %217 : vector<32x8xf32>
    %cst_115 = arith.constant 5.000000e-01 : f32
    %219 = vector.broadcast %cst_115 : f32 to vector<32x8xf32>
    %220 = arith.addf %218, %219 : vector<32x8xf32>
    %221 = vector.extract_strided_slice %210 {offsets = [32, 0], sizes = [32, 8], strides = [1, 1]} : vector<64x8xf32> to vector<32x8xf32>
    %222 = arith.mulf %221, %193 : vector<32x8xf32>
    %223 = vector.extract_strided_slice %210 {offsets = [0, 0], sizes = [32, 8], strides = [1, 1]} : vector<64x8xf32> to vector<32x8xf32>
    %224 = arith.mulf %223, %212 : vector<32x8xf32>
    %225 = arith.addf %222, %224 : vector<32x8xf32>
    %226 = math.tanh %225 : vector<32x8xf32>
    %227 = arith.mulf %220, %226 : vector<32x8xf32>
    %c3_116 = arith.constant 3 : index
    %c0_117 = arith.constant 0 : index
    %c0_118 = arith.constant 0 : index
    %228 = vector.load %arg9[%c3_116, %c0_117, %c0_118] : memref<8x32x8xf32, #tpu.memory_space<vmem>>, vector<1x32x8xf32>
    %229 = vector.shape_cast %228 : vector<1x32x8xf32> to vector<32x8xf32>
    %230 = vector.shape_cast %227 : vector<32x8xf32> to vector<1x32x8xf32>
    tpu.vector_store %arg9[%c3_116, %c0_117, %c0_118], %230 {strides = array<i32>} : memref<8x32x8xf32, #tpu.memory_space<vmem>>, vector<1x32x8xf32>,
    %c4_119 = arith.constant 4 : index
    %c0_120 = arith.constant 0 : index
    %c0_121 = arith.constant 0 : index
    %231 = vector.load %arg10[%c4_119, %c0_120, %c0_121] : memref<8x128x8xf32, #tpu.memory_space<vmem>>, vector<1x128x8xf32>
    %232 = vector.shape_cast %231 : vector<1x128x8xf32> to vector<128x8xf32>
    %cst_122 = arith.constant dense<0.000000e+00> : vector<128x8xf32>
    %233 = tpu.matmul %3, %227, %cst_122 {dimension_numbers = #tpu.dot_dimension_numbers<[1], [0], [0], [1], [0, 0, 1, 1], [], []>} : vector<128x32xf32>, vector<32x8xf32>, vector<128x8xf32> -> vector<128x8xf32>
    %234 = arith.addf %232, %233 : vector<128x8xf32>
    %235 = vector.extract_strided_slice %234 {offsets = [0, 0], sizes = [64, 8], strides = [1, 1]} : vector<128x8xf32> to vector<64x8xf32>
    %cst_123 = arith.constant 5.000000e-01 : f32
    %236 = vector.broadcast %cst_123 : f32 to vector<64x8xf32>
    %237 = arith.mulf %236, %235 : vector<64x8xf32>
    %238 = math.tanh %237 : vector<64x8xf32>
    %cst_124 = arith.constant 5.000000e-01 : f32
    %239 = vector.broadcast %cst_124 : f32 to vector<64x8xf32>
    %240 = arith.mulf %238, %239 : vector<64x8xf32>
    %cst_125 = arith.constant 5.000000e-01 : f32
    %241 = vector.broadcast %cst_125 : f32 to vector<64x8xf32>
    %242 = arith.addf %240, %241 : vector<64x8xf32>
    %243 = vector.extract_strided_slice %234 {offsets = [64, 0], sizes = [32, 8], strides = [1, 1]} : vector<128x8xf32> to vector<32x8xf32>
    %244 = math.tanh %243 : vector<32x8xf32>
    %245 = vector.extract_strided_slice %234 {offsets = [96, 0], sizes = [32, 8], strides = [1, 1]} : vector<128x8xf32> to vector<32x8xf32>
    %cst_126 = arith.constant 5.000000e-01 : f32
    %246 = vector.broadcast %cst_126 : f32 to vector<32x8xf32>
    %247 = arith.mulf %246, %245 : vector<32x8xf32>
    %248 = math.tanh %247 : vector<32x8xf32>
    %cst_127 = arith.constant 5.000000e-01 : f32
    %249 = vector.broadcast %cst_127 : f32 to vector<32x8xf32>
    %250 = arith.mulf %248, %249 : vector<32x8xf32>
    %cst_128 = arith.constant 5.000000e-01 : f32
    %251 = vector.broadcast %cst_128 : f32 to vector<32x8xf32>
    %252 = arith.addf %250, %251 : vector<32x8xf32>
    %253 = vector.extract_strided_slice %242 {offsets = [32, 0], sizes = [32, 8], strides = [1, 1]} : vector<64x8xf32> to vector<32x8xf32>
    %254 = arith.mulf %253, %225 : vector<32x8xf32>
    %255 = vector.extract_strided_slice %242 {offsets = [0, 0], sizes = [32, 8], strides = [1, 1]} : vector<64x8xf32> to vector<32x8xf32>
    %256 = arith.mulf %255, %244 : vector<32x8xf32>
    %257 = arith.addf %254, %256 : vector<32x8xf32>
    %258 = math.tanh %257 : vector<32x8xf32>
    %259 = arith.mulf %252, %258 : vector<32x8xf32>
    %c4_129 = arith.constant 4 : index
    %c0_130 = arith.constant 0 : index
    %c0_131 = arith.constant 0 : index
    %260 = vector.load %arg9[%c4_129, %c0_130, %c0_131] : memref<8x32x8xf32, #tpu.memory_space<vmem>>, vector<1x32x8xf32>
    %261 = vector.shape_cast %260 : vector<1x32x8xf32> to vector<32x8xf32>
    %262 = vector.shape_cast %259 : vector<32x8xf32> to vector<1x32x8xf32>
    tpu.vector_store %arg9[%c4_129, %c0_130, %c0_131], %262 {strides = array<i32>} : memref<8x32x8xf32, #tpu.memory_space<vmem>>, vector<1x32x8xf32>,
    %c5_132 = arith.constant 5 : index
    %c0_133 = arith.constant 0 : index
    %c0_134 = arith.constant 0 : index
    %263 = vector.load %arg10[%c5_132, %c0_133, %c0_134] : memref<8x128x8xf32, #tpu.memory_space<vmem>>, vector<1x128x8xf32>
    %264 = vector.shape_cast %263 : vector<1x128x8xf32> to vector<128x8xf32>
    %cst_135 = arith.constant dense<0.000000e+00> : vector<128x8xf32>
    %265 = tpu.matmul %3, %259, %cst_135 {dimension_numbers = #tpu.dot_dimension_numbers<[1], [0], [0], [1], [0, 0, 1, 1], [], []>} : vector<128x32xf32>, vector<32x8xf32>, vector<128x8xf32> -> vector<128x8xf32>
    %266 = arith.addf %264, %265 : vector<128x8xf32>
    %267 = vector.extract_strided_slice %266 {offsets = [0, 0], sizes = [64, 8], strides = [1, 1]} : vector<128x8xf32> to vector<64x8xf32>
    %cst_136 = arith.constant 5.000000e-01 : f32
    %268 = vector.broadcast %cst_136 : f32 to vector<64x8xf32>
    %269 = arith.mulf %268, %267 : vector<64x8xf32>
    %270 = math.tanh %269 : vector<64x8xf32>
    %cst_137 = arith.constant 5.000000e-01 : f32
    %271 = vector.broadcast %cst_137 : f32 to vector<64x8xf32>
    %272 = arith.mulf %270, %271 : vector<64x8xf32>
    %cst_138 = arith.constant 5.000000e-01 : f32
    %273 = vector.broadcast %cst_138 : f32 to vector<64x8xf32>
    %274 = arith.addf %272, %273 : vector<64x8xf32>
    %275 = vector.extract_strided_slice %266 {offsets = [64, 0], sizes = [32, 8], strides = [1, 1]} : vector<128x8xf32> to vector<32x8xf32>
    %276 = math.tanh %275 : vector<32x8xf32>
    %277 = vector.extract_strided_slice %266 {offsets = [96, 0], sizes = [32, 8], strides = [1, 1]} : vector<128x8xf32> to vector<32x8xf32>
    %cst_139 = arith.constant 5.000000e-01 : f32
    %278 = vector.broadcast %cst_139 : f32 to vector<32x8xf32>
    %279 = arith.mulf %278, %277 : vector<32x8xf32>
    %280 = math.tanh %279 : vector<32x8xf32>
    %cst_140 = arith.constant 5.000000e-01 : f32
    %281 = vector.broadcast %cst_140 : f32 to vector<32x8xf32>
    %282 = arith.mulf %280, %281 : vector<32x8xf32>
    %cst_141 = arith.constant 5.000000e-01 : f32
    %283 = vector.broadcast %cst_141 : f32 to vector<32x8xf32>
    %284 = arith.addf %282, %283 : vector<32x8xf32>
    %285 = vector.extract_strided_slice %274 {offsets = [32, 0], sizes = [32, 8], strides = [1, 1]} : vector<64x8xf32> to vector<32x8xf32>
    %286 = arith.mulf %285, %257 : vector<32x8xf32>
    %287 = vector.extract_strided_slice %274 {offsets = [0, 0], sizes = [32, 8], strides = [1, 1]} : vector<64x8xf32> to vector<32x8xf32>
    %288 = arith.mulf %287, %276 : vector<32x8xf32>
    %289 = arith.addf %286, %288 : vector<32x8xf32>
    %290 = math.tanh %289 : vector<32x8xf32>
    %291 = arith.mulf %284, %290 : vector<32x8xf32>
    %c5_142 = arith.constant 5 : index
    %c0_143 = arith.constant 0 : index
    %c0_144 = arith.constant 0 : index
    %292 = vector.load %arg9[%c5_142, %c0_143, %c0_144] : memref<8x32x8xf32, #tpu.memory_space<vmem>>, vector<1x32x8xf32>
    %293 = vector.shape_cast %292 : vector<1x32x8xf32> to vector<32x8xf32>
    %294 = vector.shape_cast %291 : vector<32x8xf32> to vector<1x32x8xf32>
    tpu.vector_store %arg9[%c5_142, %c0_143, %c0_144], %294 {strides = array<i32>} : memref<8x32x8xf32, #tpu.memory_space<vmem>>, vector<1x32x8xf32>,
    %c6_145 = arith.constant 6 : index
    %c0_146 = arith.constant 0 : index
    %c0_147 = arith.constant 0 : index
    %295 = vector.load %arg10[%c6_145, %c0_146, %c0_147] : memref<8x128x8xf32, #tpu.memory_space<vmem>>, vector<1x128x8xf32>
    %296 = vector.shape_cast %295 : vector<1x128x8xf32> to vector<128x8xf32>
    %cst_148 = arith.constant dense<0.000000e+00> : vector<128x8xf32>
    %297 = tpu.matmul %3, %291, %cst_148 {dimension_numbers = #tpu.dot_dimension_numbers<[1], [0], [0], [1], [0, 0, 1, 1], [], []>} : vector<128x32xf32>, vector<32x8xf32>, vector<128x8xf32> -> vector<128x8xf32>
    %298 = arith.addf %296, %297 : vector<128x8xf32>
    %299 = vector.extract_strided_slice %298 {offsets = [0, 0], sizes = [64, 8], strides = [1, 1]} : vector<128x8xf32> to vector<64x8xf32>
    %cst_149 = arith.constant 5.000000e-01 : f32
    %300 = vector.broadcast %cst_149 : f32 to vector<64x8xf32>
    %301 = arith.mulf %300, %299 : vector<64x8xf32>
    %302 = math.tanh %301 : vector<64x8xf32>
    %cst_150 = arith.constant 5.000000e-01 : f32
    %303 = vector.broadcast %cst_150 : f32 to vector<64x8xf32>
    %304 = arith.mulf %302, %303 : vector<64x8xf32>
    %cst_151 = arith.constant 5.000000e-01 : f32
    %305 = vector.broadcast %cst_151 : f32 to vector<64x8xf32>
    %306 = arith.addf %304, %305 : vector<64x8xf32>
    %307 = vector.extract_strided_slice %298 {offsets = [64, 0], sizes = [32, 8], strides = [1, 1]} : vector<128x8xf32> to vector<32x8xf32>
    %308 = math.tanh %307 : vector<32x8xf32>
    %309 = vector.extract_strided_slice %298 {offsets = [96, 0], sizes = [32, 8], strides = [1, 1]} : vector<128x8xf32> to vector<32x8xf32>
    %cst_152 = arith.constant 5.000000e-01 : f32
    %310 = vector.broadcast %cst_152 : f32 to vector<32x8xf32>
    %311 = arith.mulf %310, %309 : vector<32x8xf32>
    %312 = math.tanh %311 : vector<32x8xf32>
    %cst_153 = arith.constant 5.000000e-01 : f32
    %313 = vector.broadcast %cst_153 : f32 to vector<32x8xf32>
    %314 = arith.mulf %312, %313 : vector<32x8xf32>
    %cst_154 = arith.constant 5.000000e-01 : f32
    %315 = vector.broadcast %cst_154 : f32 to vector<32x8xf32>
    %316 = arith.addf %314, %315 : vector<32x8xf32>
    %317 = vector.extract_strided_slice %306 {offsets = [32, 0], sizes = [32, 8], strides = [1, 1]} : vector<64x8xf32> to vector<32x8xf32>
    %318 = arith.mulf %317, %289 : vector<32x8xf32>
    %319 = vector.extract_strided_slice %306 {offsets = [0, 0], sizes = [32, 8], strides = [1, 1]} : vector<64x8xf32> to vector<32x8xf32>
    %320 = arith.mulf %319, %308 : vector<32x8xf32>
    %321 = arith.addf %318, %320 : vector<32x8xf32>
    %322 = math.tanh %321 : vector<32x8xf32>
    %323 = arith.mulf %316, %322 : vector<32x8xf32>
    %c6_155 = arith.constant 6 : index
    %c0_156 = arith.constant 0 : index
    %c0_157 = arith.constant 0 : index
    %324 = vector.load %arg9[%c6_155, %c0_156, %c0_157] : memref<8x32x8xf32, #tpu.memory_space<vmem>>, vector<1x32x8xf32>
    %325 = vector.shape_cast %324 : vector<1x32x8xf32> to vector<32x8xf32>
    %326 = vector.shape_cast %323 : vector<32x8xf32> to vector<1x32x8xf32>
    tpu.vector_store %arg9[%c6_155, %c0_156, %c0_157], %326 {strides = array<i32>} : memref<8x32x8xf32, #tpu.memory_space<vmem>>, vector<1x32x8xf32>,
    %c7_158 = arith.constant 7 : index
    %c0_159 = arith.constant 0 : index
    %c0_160 = arith.constant 0 : index
    %327 = vector.load %arg10[%c7_158, %c0_159, %c0_160] : memref<8x128x8xf32, #tpu.memory_space<vmem>>, vector<1x128x8xf32>
    %328 = vector.shape_cast %327 : vector<1x128x8xf32> to vector<128x8xf32>
    %cst_161 = arith.constant dense<0.000000e+00> : vector<128x8xf32>
    %329 = tpu.matmul %3, %323, %cst_161 {dimension_numbers = #tpu.dot_dimension_numbers<[1], [0], [0], [1], [0, 0, 1, 1], [], []>} : vector<128x32xf32>, vector<32x8xf32>, vector<128x8xf32> -> vector<128x8xf32>
    %330 = arith.addf %328, %329 : vector<128x8xf32>
    %331 = vector.extract_strided_slice %330 {offsets = [0, 0], sizes = [64, 8], strides = [1, 1]} : vector<128x8xf32> to vector<64x8xf32>
    %cst_162 = arith.constant 5.000000e-01 : f32
    %332 = vector.broadcast %cst_162 : f32 to vector<64x8xf32>
    %333 = arith.mulf %332, %331 : vector<64x8xf32>
    %334 = math.tanh %333 : vector<64x8xf32>
    %cst_163 = arith.constant 5.000000e-01 : f32
    %335 = vector.broadcast %cst_163 : f32 to vector<64x8xf32>
    %336 = arith.mulf %334, %335 : vector<64x8xf32>
    %cst_164 = arith.constant 5.000000e-01 : f32
    %337 = vector.broadcast %cst_164 : f32 to vector<64x8xf32>
    %338 = arith.addf %336, %337 : vector<64x8xf32>
    %339 = vector.extract_strided_slice %330 {offsets = [64, 0], sizes = [32, 8], strides = [1, 1]} : vector<128x8xf32> to vector<32x8xf32>
    %340 = math.tanh %339 : vector<32x8xf32>
    %341 = vector.extract_strided_slice %330 {offsets = [96, 0], sizes = [32, 8], strides = [1, 1]} : vector<128x8xf32> to vector<32x8xf32>
    %cst_165 = arith.constant 5.000000e-01 : f32
    %342 = vector.broadcast %cst_165 : f32 to vector<32x8xf32>
    %343 = arith.mulf %342, %341 : vector<32x8xf32>
    %344 = math.tanh %343 : vector<32x8xf32>
    %cst_166 = arith.constant 5.000000e-01 : f32
    %345 = vector.broadcast %cst_166 : f32 to vector<32x8xf32>
    %346 = arith.mulf %344, %345 : vector<32x8xf32>
    %cst_167 = arith.constant 5.000000e-01 : f32
    %347 = vector.broadcast %cst_167 : f32 to vector<32x8xf32>
    %348 = arith.addf %346, %347 : vector<32x8xf32>
    %349 = vector.extract_strided_slice %338 {offsets = [32, 0], sizes = [32, 8], strides = [1, 1]} : vector<64x8xf32> to vector<32x8xf32>
    %350 = arith.mulf %349, %321 : vector<32x8xf32>
    %351 = vector.extract_strided_slice %338 {offsets = [0, 0], sizes = [32, 8], strides = [1, 1]} : vector<64x8xf32> to vector<32x8xf32>
    %352 = arith.mulf %351, %340 : vector<32x8xf32>
    %353 = arith.addf %350, %352 : vector<32x8xf32>
    %354 = math.tanh %353 : vector<32x8xf32>
    %355 = arith.mulf %348, %354 : vector<32x8xf32>
    %c7_168 = arith.constant 7 : index
    %c0_169 = arith.constant 0 : index
    %c0_170 = arith.constant 0 : index
    %356 = vector.load %arg9[%c7_168, %c0_169, %c0_170] : memref<8x32x8xf32, #tpu.memory_space<vmem>>, vector<1x32x8xf32>
    %357 = vector.shape_cast %356 : vector<1x32x8xf32> to vector<32x8xf32>
    %358 = vector.shape_cast %355 : vector<32x8xf32> to vector<1x32x8xf32>
    tpu.vector_store %arg9[%c7_168, %c0_169, %c0_170], %358 {strides = array<i32>} : memref<8x32x8xf32, #tpu.memory_space<vmem>>, vector<1x32x8xf32>,
    %c0_171 = arith.constant 0 : index
    %c0_172 = arith.constant 0 : index
    %c0_173 = arith.constant 0 : index
    %359 = vector.load %arg9[%c0_171, %c0_172, %c0_173] : memref<8x32x8xf32, #tpu.memory_space<vmem>>, vector<8x32x8xf32>
    %360 = vector.shape_cast %355 : vector<32x8xf32> to vector<1x32x8xf32>
    %361 = vector.broadcast %360 : vector<1x32x8xf32> to vector<8x32x8xf32>
    %362 = arith.mulf %359, %361 : vector<8x32x8xf32>
    %cst_174 = arith.constant dense<0.000000e+00> : vector<8x8xf32>
    %363 = vector.multi_reduction <add>, %362, %cst_174 [1] : vector<8x32x8xf32> to vector<8x8xf32>
    %cst_175 = arith.constant dense<0xFF800000> : vector<8xf32>
    %364 = vector.multi_reduction <maximumf>, %363, %cst_175 [0] : vector<8x8xf32> to vector<8xf32>
    %365 = vector.shape_cast %364 : vector<8xf32> to vector<1x8xf32>
    %366 = vector.broadcast %365 : vector<1x8xf32> to vector<8x8xf32>
    %367 = arith.subf %363, %366 : vector<8x8xf32>
    %368 = math.exp %367 : vector<8x8xf32>
    %cst_176 = arith.constant dense<0.000000e+00> : vector<8xf32>
    %369 = vector.multi_reduction <add>, %368, %cst_176 [0] : vector<8x8xf32> to vector<8xf32>
    %370 = vector.shape_cast %369 : vector<8xf32> to vector<1x8xf32>
    %371 = vector.broadcast %370 : vector<1x8xf32> to vector<8x8xf32>
    %372 = arith.divf %368, %371 : vector<8x8xf32>
    %c0_177 = arith.constant 0 : index
    %c0_178 = arith.constant 0 : index
    %373 = vector.load %arg2[%c0_177, %c0_178] : memref<8x8xf32, #tpu.memory_space<vmem>>, vector<8x8xf32>
    %374 = arith.mulf %372, %373 : vector<8x8xf32>
    %cst_179 = arith.constant dense<0.000000e+00> : vector<8xf32>
    %375 = vector.multi_reduction <add>, %374, %cst_179 [0] : vector<8x8xf32> to vector<8xf32>
    %376 = vector.shape_cast %375 : vector<8xf32> to vector<1x8xf32>
    %377 = vector.broadcast %376 : vector<1x8xf32> to vector<8x8xf32>
    %378 = arith.subf %373, %377 : vector<8x8xf32>
    %379 = arith.mulf %378, %378 : vector<8x8xf32>
    %380 = arith.mulf %372, %379 : vector<8x8xf32>
    %cst_180 = arith.constant dense<0.000000e+00> : vector<8xf32>
    %381 = vector.multi_reduction <add>, %380, %cst_180 [0] : vector<8x8xf32> to vector<8xf32>
    %382 = vector.shape_cast %381 : vector<8xf32> to vector<1x8xf32>
    %383 = math.sqrt %382 : vector<1x8xf32>
    %384 = tpu.concatenate %376, %383 in 0 : vector<1x8xf32>, vector<1x8xf32> -> vector<2x8xf32>
    %c0_181 = arith.constant 0 : index
    %c0_182 = arith.constant 0 : index
    %385 = vector.load %arg8[%c0_181, %c0_182] : memref<2x8xf32, #tpu.memory_space<vmem>>, vector<2x8xf32>
    tpu.vector_store %arg8[%c0_181, %c0_182], %384 {strides = array<i32>} : memref<2x8xf32, #tpu.memory_space<vmem>>, vector<2x8xf32>,
    return
  }
  func.func @transform_0(%arg0: i32) -> (i32, i32, i32) {
    %c0_i32 = arith.constant 0 : i32
    %c0_i32_0 = arith.constant 0 : i32
    %c0_i32_1 = arith.constant 0 : i32
    return %c0_i32, %c0_i32_0, %arg0 : i32, i32, i32
  }
  func.func @transform_1(%arg0: i32) -> (i32, i32) {
    %c0_i32 = arith.constant 0 : i32
    %c0_i32_0 = arith.constant 0 : i32
    return %c0_i32, %arg0 : i32, i32
  }
  func.func @transform_2(%arg0: i32) -> (i32, i32) {
    %c0_i32 = arith.constant 0 : i32
    %c0_i32_0 = arith.constant 0 : i32
    %c0_i32_1 = arith.constant 0 : i32
    return %c0_i32, %c0_i32_0 : i32, i32
  }
  func.func @transform_3(%arg0: i32) -> (i32, i32) {
    %c0_i32 = arith.constant 0 : i32
    %c0_i32_0 = arith.constant 0 : i32
    %c0_i32_1 = arith.constant 0 : i32
    return %c0_i32, %c0_i32_0 : i32, i32
  }
  func.func @transform_4(%arg0: i32) -> (i32, i32) {
    %c0_i32 = arith.constant 0 : i32
    %c0_i32_0 = arith.constant 0 : i32
    %c0_i32_1 = arith.constant 0 : i32
    return %c0_i32, %c0_i32_0 : i32, i32
  }
  func.func @transform_5(%arg0: i32) -> (i32, i32) {
    %c0_i32 = arith.constant 0 : i32
    %c0_i32_0 = arith.constant 0 : i32
    %c0_i32_1 = arith.constant 0 : i32
    return %c0_i32, %c0_i32_0 : i32, i32
  }
  func.func @transform_6(%arg0: i32) -> (i32, i32) {
    %c0_i32 = arith.constant 0 : i32
    %c0_i32_0 = arith.constant 0 : i32
    %c0_i32_1 = arith.constant 0 : i32
    return %c0_i32, %c0_i32_0 : i32, i32
  }
  func.func @transform_7(%arg0: i32) -> (i32, i32) {
    %c0_i32 = arith.constant 0 : i32
    %c0_i32_0 = arith.constant 0 : i32
    return %c0_i32, %arg0 : i32, i32
  }
}

</mosaic_0001>

<bundles_post_ra>
// kernel: tpu_custom_call.1
= control target key start
LH: loop header
LB: loop body
LE: loop exit
PB: predicated region body
PF: predicated region fallthrough
CT: control target
= control target key end

     0   :  { %vm117_vm0 = vcmask 1043456   ;;  %vm104_vm1 = vcmask 31744   ;;  %v6605_v8 = vmov 0   ;;  %s8226_s0 = inlined_call_operand.vmem [shape: f32[8,4,8], index: 0, kind: input, shape index: {}]   ;;  %s8227_s1 = inlined_call_operand.vmem [shape: f32[8,8], index: 1, kind: input, shape index: {}]   ;;  %s8228_s2 = inlined_call_operand.vmem [shape: f32[32,4], index: 2, kind: input, shape index: {}]   ;;  %s8229_s3 = inlined_call_operand.vmem [shape: f32[32,1], index: 3, kind: input, shape index: {}]   ;;  %s8230_s4 = inlined_call_operand.vmem [shape: f32[128,32], index: 4, kind: input, shape index: {}]   ;;  %s8231_s5 = inlined_call_operand.vmem [shape: f32[128,32], index: 5, kind: input, shape index: {}]   ;;  %s8232_s6 = inlined_call_operand.vmem [shape: f32[128,1], index: 6, kind: input, shape index: {}]   ;;  %s8233_s7 = inlined_call_operand.hbm [shape: f32[2,8], index: 7, kind: output, shape index: {}]  }
   0x1   :  { %v83_v0 = vld [vmem:[%s8226_s0] sm:$0xf]  ;;  %v4793_v1 = vld [vmem:[%s8226_s0 + $0x4] sm:$0xf]  ;;  %v6664_v3 = vld [vmem:[%s8228_s2 + $0x8] sm:$0xff]  ;;  %6125 = vset.pattern.permute.xlu0 %v6605_v8  ;;  %6126 = vset.pattern.permute.xlu1 %v6605_v8 }
   0x2   :  { %v6657_v2 = vld [vmem:[%s8228_s2] sm:$0xff]  ;;  %5432 = vmatprep.subr.msk.mxu1 %vm117_vm0, %v83_v0  ;;  %5472 = vmatprep.subr.msk.mxu0 %vm117_vm0, %v4793_v1  ;;  %v6672_v4 = vld [vmem:[%s8228_s2 + $0x10] sm:$0xff]  ;;  %v6694_v7 = vld [vmem:[%s8228_s2 + $0x18] sm:$0xff] }
   0x3   :  { %5433 = vmatpush3.msk.msra.mxu1 %vm117_vm0, %v83_v0  ;;  %5434 = vmatprep.mubr.msk.f32.mxu1 %vm104_vm1, %v6657_v2  ;;  %v31_v5 = vld [vmem:[%s8229_s3] sm:$0xff]  ;;  %v33_v6 = vld [vmem:[%s8229_s3 + $0x10] sm:$0xff]  ;;  %v32_v9 = vld [vmem:[%s8229_s3 + $0x8] sm:$0xff] }
   0x4   :  { %5473 = vmatpush3.msk.msra.mxu0 %vm117_vm0, %v4793_v1  ;;  %5474 = vmatprep.mubr.msk.f32.mxu0 %vm104_vm1, %v6657_v2  ;;  %v34_v10 = vld [vmem:[%s8229_s3 + $0x18] sm:$0xff] }
   0x5   :  { %5435 = vmatmul.mubr.msk.f32.vlgmr.msra.gmra.mrb[0].mxu1 %vm104_vm1, %v6664_v3  ;;  %5475 = vmatmul.mubr.msk.f32.vlgmr.msra.gmra.mrb[0].mxu0 %vm104_vm1, %v6664_v3 }
   0x6   :  { %5437 = vmatprep.mubr.msk.f32.mxu1 %vm104_vm1, %v6672_v4  ;;  %5477 = vmatprep.mubr.msk.f32.mxu0 %vm104_vm1, %v6672_v4 }
   0x7   :  { %86 = vperm.xlu0 %6125, %v31_v5   ;;  %96 = vperm.xlu1 %6126, %v33_v6  }
   0x9   :  { %5438 = vmatmul.mubr.msk.f32.gmra.mrb[2].mxu1 %vm104_vm1, %v6694_v7  ;;  %5478 = vmatmul.mubr.msk.f32.gmra.mrb[2].mxu0 %vm104_vm1, %v6694_v7 }
   0xa   :  { %12 = vsyncpa [#allocation5], 0  ;;  %v67_v11 = vld [vmem:[%s8232_s6] sm:$0xff]  ;;  %v68_v12 = vld [vmem:[%s8232_s6 + $0x8] sm:$0xff]  ;;  %vm290_vm2 = vcmask 261120   ;;  %vm484_vm3 = vcmask 64512  }
   0xb   :  { %91 = vperm.xlu0 %6125, %v32_v9   ;;  %101 = vperm.xlu1 %6126, %v34_v10   ;;  %v71_v13 = vld [vmem:[%s8232_s6 + $0x20] sm:$0xff]  ;;  %v72_v14 = vld [vmem:[%s8232_s6 + $0x28] sm:$0xff]  ;;  %v69_v15 = vld [vmem:[%s8232_s6 + $0x10] sm:$0xff]  ;;  %vm4588_vm4 = vcmask 1041409   ;;  %vm4591_vm5 = vcmask 1042434   ;;  %vm4594_vm6 = vcmask 1043459  }
   0xc   :  { %v70_v16 = vld [vmem:[%s8232_s6 + $0x18] sm:$0xff]  ;;  %v73_v17 = vld [vmem:[%s8232_s6 + $0x30] sm:$0xff]  ;;  %v75_v19 = vld [vmem:[%s8232_s6 + $0x40] sm:$0xff]  ;;  %vm4597_vm7 = vcmask 1044484   ;;  %vm4600_vm8 = vcmask 1045509   ;;  %vm4603_vm9 = vcmask 1046534  }
   0xd   :  { %v74_v18 = vld [vmem:[%s8232_s6 + $0x38] sm:$0xff]  ;;  %v76_v20 = vld [vmem:[%s8232_s6 + $0x48] sm:$0xff]  ;;  %v77_v21 = vld [vmem:[%s8232_s6 + $0x50] sm:$0xff]  ;;  %vm4606_vm10 = vcmask 1047559   ;;  %vm4754_vm13 = vcmask 1040384   ;;  %vm4756_vm14 = vcmask 58368  }
   0xe   :  { %v78_v22 = vld [vmem:[%s8232_s6 + $0x58] sm:$0xff]  ;;  %v79_v23 = vld [vmem:[%s8232_s6 + $0x60] sm:$0xff]  ;;  %v80_v24 = vld [vmem:[%s8232_s6 + $0x68] sm:$0xff] }
   0xf   :  { %212 = vperm.xlu0 %6125, %v67_v11   ;;  %217 = vperm.xlu1 %6126, %v68_v12   ;;  %v81_v25 = vld [vmem:[%s8232_s6 + $0x70] sm:$0xff]  ;;  %v82_v26 = vld [vmem:[%s8232_s6 + $0x78] sm:$0xff]  ;;  %v6757_v27 = vld [vmem:[%s8230_s4] sm:$0xff] }
  0x10   :  { %5448 = vmatprep.mubr.msk.f32.mxu1 %vm290_vm2, %v6757_v27  ;;  %5488 = vmatprep.mubr.msk.f32.mxu0 %vm290_vm2, %v6757_v27  ;;  %v4815_v60 = vld [vmem:[%s8226_s0 + $0x8] sm:$0xf]  ;;  %v4837_v61 = vld [vmem:[%s8226_s0 + $0xc] sm:$0xf]  ;;  %v6793_v63 = vld [vmem:[%s8230_s4 + $0x10] sm:$0xff] }
  0x11   :  { %v6788_v62 = vld [vmem:[%s8230_s4 + $0x8] sm:$0xff]  ;;  %v6806_v0 = vld [vmem:[%s8230_s4 + $0x18] sm:$0xff]  ;;  %v6813_v1 = vld [vmem:[%s8230_s4 + $0x20] sm:$0xff] }
  0x12   :  { %v6826_v5 = vld [vmem:[%s8230_s4 + $0x28] sm:$0xff]  ;;  %v6833_v6 = vld [vmem:[%s8230_s4 + $0x30] sm:$0xff]  ;;  %v6844_v8 = vld [vmem:[%s8230_s4 + $0x38] sm:$0xff] }
  0x13   :  { %232 = vperm.xlu0 %6125, %v71_v13   ;;  %237 = vperm.xlu1 %6126, %v72_v14   ;;  %v6851_v9 = vld [vmem:[%s8230_s4 + $0x40] sm:$0xff]  ;;  %v6862_v10 = vld [vmem:[%s8230_s4 + $0x48] sm:$0xff]  ;;  %v6869_v11 = vld [vmem:[%s8230_s4 + $0x50] sm:$0xff] }
  0x14   :  { %v6880_v12 = vld [vmem:[%s8230_s4 + $0x58] sm:$0xff]  ;;  %v6887_v13 = vld [vmem:[%s8230_s4 + $0x60] sm:$0xff]  ;;  %v6898_v14 = vld [vmem:[%s8230_s4 + $0x68] sm:$0xff] }
  0x17   :  { %222 = vperm.xlu0 %6125, %v69_v15   ;;  %227 = vperm.xlu1 %6126, %v70_v16   ;;  %v6905_v15 = vld [vmem:[%s8230_s4 + $0x70] sm:$0xff]  ;;  %v6916_v16 = vld [vmem:[%s8230_s4 + $0x78] sm:$0xff] }
  0x1b   :  { %242 = vperm.xlu0 %6125, %v73_v17   ;;  %247 = vperm.xlu1 %6126, %v74_v18  }
  0x1f   :  { %252 = vperm.xlu0 %6125, %v75_v19   ;;  %257 = vperm.xlu1 %6126, %v76_v20  }
  0x23   :  { %262 = vperm.xlu0 %6125, %v77_v21   ;;  %267 = vperm.xlu1 %6126, %v78_v22  }
  0x27   :  { %272 = vperm.xlu0 %6125, %v79_v23   ;;  %277 = vperm.xlu1 %6126, %v80_v24  }
  0x2b   :  { %282 = vperm.xlu0 %6125, %v81_v25   ;;  %287 = vperm.xlu1 %6126, %v82_v26  }
  0x86   :  { %v6763_v28 = vpop.permute.xlu0 %86  ;;  %v6765_v29 = vpop.permute.xlu1 %96 }
  0x8a   :  { %v6767_v30 = vpop.permute.xlu0 %91  ;;  %v6773_v39 = vpop.permute.xlu1 %101 }
  0x8e   :  { %v6944_v17 = vpop.permute.xlu0 %212  ;;  %v6946_v18 = vpop.permute.xlu1 %217 }
  0x92   :  { %v6948_v19 = vpop.permute.xlu0 %232  ;;  %v6950_v20 = vpop.permute.xlu1 %237 }
  0x96   :  { %v6952_v21 = vpop.permute.xlu0 %222  ;;  %v6954_v22 = vpop.permute.xlu1 %227 }
  0xd8   :  { %v5436_v31 = vpop.f32.mrb[0].mxu1  ;;  %v5476_v32 = vpop.f32.mrb[0].mxu0 }
  0xd9   :  { %v193_v33 = vadd.f32 %v5436_v31, %v6767_v30  ;;  %v578_v34 = vadd.f32 %v5476_v32, %v6767_v30  ;;  %v187_v35 = vpop.f32.mrb[1].mxu1  ;;  %v572_v36 = vpop.f32.mrb[1].mxu0 }
  0xda   :  { %v188_v37 = vadd.f32 %v187_v35, %v6763_v28  ;;  %v573_v38 = vadd.f32 %v572_v36, %v6763_v28  ;;  %v6957_v31 = vpop.permute.xlu0 %242  ;;  %v6963_v36 = vpop.permute.xlu1 %247 }
  0xdb   :  { %6127 = vtanh.f32 %v193_v33 }
  0xdc   :  { %6129 = vtanh.f32 %v578_v34  ;;  %v5439_v40 = vpop.f32.mrb[2].mxu1  ;;  %v5479_v41 = vpop.f32.mrb[2].mxu0 }
  0xdd   :  { %6131 = vtanh.f32 %v188_v37  ;;  %v203_v42 = vadd.f32 %v5439_v40, %v6773_v39  ;;  %v588_v43 = vadd.f32 %v5479_v41, %v6773_v39  ;;  %v197_v44 = vpop.f32.mrb[3].mxu1  ;;  %v582_v45 = vpop.f32.mrb[3].mxu0 }
  0xde   :  { %6133 = vtanh.f32 %v573_v38  ;;  %v198_v46 = vadd.f32 %v197_v44, %v6765_v29  ;;  %v583_v47 = vadd.f32 %v582_v45, %v6765_v29 }
  0xdf   :  { %6135 = vtanh.f32 %v203_v42 }
  0xe0   :  { %6137 = vtanh.f32 %v588_v43 }
  0xe1   :  { %6139 = vtanh.f32 %v198_v46  ;;  %v6973_v46 = vpop.permute.xlu0 %252 }
  0xe2   :  { %6141 = vtanh.f32 %v583_v47 }
  0xe5   :  { %v6128_v48 = vpop.eup %6127 }
  0xe6   :  { %v6130_v49 = vpop.eup %6129 }
  0xe7   :  { %v6132_v50 = vpop.eup %6131 }
  0xe8   :  { %v6134_v51 = vpop.eup %6133  ;;  %v6002_v52 = vpack.c.bf16 %v6128_v48, %v6132_v50 }
  0xe9   :  { %v6136_v53 = vpop.eup %6135  ;;  %v6010_v54 = vpack.c.bf16 %v6130_v49, %v6134_v51  ;;  %v6979_v51 = vpop.permute.xlu1 %257 }
  0xea   :  { %v6138_v55 = vpop.eup %6137  ;;  %6003 = vmatprep.subr.bf16.mxu1 %v6002_v52 }
  0xeb   :  { %v6140_v56 = vpop.eup %6139  ;;  %6011 = vmatprep.subr.bf16.mxu0 %v6010_v54  ;;  %6005 = vmatpush3.bf16.msra.mxu1 %v6002_v52 }
  0xec   :  { %v6142_v57 = vpop.eup %6141  ;;  %6013 = vmatpush3.bf16.msra.mxu0 %v6010_v54  ;;  %v6006_v58 = vpack.c.bf16 %v6136_v53, %v6140_v56 }
  0xed   :  { %v6014_v59 = vpack.c.bf16 %v6138_v55, %v6142_v57 }
  0xee   :  { %6007 = vmatprep.subr.bf16.mxu1 %v6006_v58 }
  0xef   :  { %6015 = vmatprep.subr.bf16.mxu0 %v6014_v59  ;;  %6009 = vmatpush3.bf16.msra.mxu1 %v6006_v58 }
  0xf0   :  { %6017 = vmatpush3.bf16.msra.mxu0 %v6014_v59  ;;  %5512 = vmatprep.subr.msk.mxu1 %vm117_vm0, %v4815_v60 }
  0xf1   :  { %5552 = vmatprep.subr.msk.mxu0 %vm117_vm0, %v4837_v61 }
  0xf2   :  { %5449 = vmatmul.mubr.msk.f32.vlgmr.msra.gmra.mrb[4].mxu1 %vm290_vm2, %v6788_v62 }
  0xf3   :  { %5489 = vmatmul.mubr.msk.f32.vlgmr.msra.gmra.mrb[4].mxu0 %vm290_vm2, %v6788_v62  ;;  %5451 = vmatprep.mubr.msk.f32.mxu1 %vm290_vm2, %v6793_v63 }
  0xf4   :  { %5491 = vmatprep.mubr.msk.f32.mxu0 %vm290_vm2, %v6793_v63  ;;  %5513 = vmatpush3.msk.msra.mxu1 %vm117_vm0, %v4815_v60  ;;  %v6989_v60 = vpop.permute.xlu0 %262 }
  0xf5   :  { %5553 = vmatpush3.msk.msra.mxu0 %vm117_vm0, %v4837_v61 }
  0xf6   :  { %5452 = vmatmul.mubr.msk.f32.gmra.mrb[6].mxu1 %vm290_vm2, %v6806_v0 }
  0xf7   :  { %5492 = vmatmul.mubr.msk.f32.gmra.mrb[6].mxu0 %vm290_vm2, %v6806_v0  ;;  %5454 = vmatprep.mubr.msk.f32.mxu1 %vm290_vm2, %v6813_v1 }
  0xf8   :  { %5494 = vmatprep.mubr.msk.f32.mxu0 %vm290_vm2, %v6813_v1 }
  0xfa   :  { %5455 = vmatmul.mubr.msk.f32.gmra.mrb[8].mxu1 %vm290_vm2, %v6826_v5 }
  0xfb   :  { %5495 = vmatmul.mubr.msk.f32.gmra.mrb[8].mxu0 %vm290_vm2, %v6826_v5  ;;  %5457 = vmatprep.mubr.msk.f32.mxu1 %vm290_vm2, %v6833_v6 }
  0xfc   :  { %5497 = vmatprep.mubr.msk.f32.mxu0 %vm290_vm2, %v6833_v6 }
  0xfe   :  { %5458 = vmatmul.mubr.msk.f32.gmra.mrb[10].mxu1 %vm290_vm2, %v6844_v8 }
  0xff   :  { %5498 = vmatmul.mubr.msk.f32.gmra.mrb[10].mxu0 %vm290_vm2, %v6844_v8  ;;  %5460 = vmatprep.mubr.msk.f32.mxu1 %vm290_vm2, %v6851_v9 }
 0x100   :  { %5500 = vmatprep.mubr.msk.f32.mxu0 %vm290_vm2, %v6851_v9 }
 0x102   :  { %5461 = vmatmul.mubr.msk.f32.gmra.mrb[12].mxu1 %vm290_vm2, %v6862_v10 }
 0x103   :  { %5501 = vmatmul.mubr.msk.f32.gmra.mrb[12].mxu0 %vm290_vm2, %v6862_v10  ;;  %5463 = vmatprep.mubr.msk.f32.mxu1 %vm290_vm2, %v6869_v11 }
 0x104   :  { %5503 = vmatprep.mubr.msk.f32.mxu0 %vm290_vm2, %v6869_v11 }
 0x106   :  { %5464 = vmatmul.mubr.msk.f32.gmra.mrb[14].mxu1 %vm290_vm2, %v6880_v12 }
 0x107   :  { %5504 = vmatmul.mubr.msk.f32.gmra.mrb[14].mxu0 %vm290_vm2, %v6880_v12  ;;  %5466 = vmatprep.mubr.msk.f32.mxu1 %vm290_vm2, %v6887_v13 }
 0x108   :  { %5506 = vmatprep.mubr.msk.f32.mxu0 %vm290_vm2, %v6887_v13 }
 0x10a   :  { %5467 = vmatmul.mubr.msk.f32.gmra.mrb[16].mxu1 %vm290_vm2, %v6898_v14 }
 0x10b   :  { %5507 = vmatmul.mubr.msk.f32.gmra.mrb[16].mxu0 %vm290_vm2, %v6898_v14  ;;  %5469 = vmatprep.mubr.msk.f32.mxu1 %vm290_vm2, %v6905_v15 }
 0x10c   :  { %5509 = vmatprep.mubr.msk.f32.mxu0 %vm290_vm2, %v6905_v15 }
 0x10e   :  { %5470 = vmatmul.mubr.msk.f32.gmra.mrb[18].mxu1 %vm290_vm2, %v6916_v16 }
 0x10f   :  { %5510 = vmatmul.mubr.msk.f32.gmra.mrb[18].mxu0 %vm290_vm2, %v6916_v16  ;;  %5514 = vmatprep.mubr.msk.f32.mxu1 %vm104_vm1, %v6657_v2 }
 0x110   :  { %5554 = vmatprep.mubr.msk.f32.mxu0 %vm104_vm1, %v6657_v2 }
 0x112   :  { %5515 = vmatmul.mubr.msk.f32.vlgmr.msra.gmra.mrb[20].mxu1 %vm104_vm1, %v6664_v3 }
 0x113   :  { %5555 = vmatmul.mubr.msk.f32.vlgmr.msra.gmra.mrb[20].mxu0 %vm104_vm1, %v6664_v3  ;;  %5517 = vmatprep.mubr.msk.f32.mxu1 %vm104_vm1, %v6672_v4 }
 0x114   :  { %5557 = vmatprep.mubr.msk.f32.mxu0 %vm104_vm1, %v6672_v4 }
 0x116   :  { %5518 = vmatmul.mubr.msk.f32.gmra.mrb[22].mxu1 %vm104_vm1, %v6694_v7 }
 0x117   :  { %5558 = vmatmul.mubr.msk.f32.gmra.mrb[22].mxu0 %vm104_vm1, %v6694_v7  ;;  %5528 = vmatprep.mubr.msk.f32.mxu1 %vm290_vm2, %v6757_v27 }
 0x118   :  { %5568 = vmatprep.mubr.msk.f32.mxu0 %vm290_vm2, %v6757_v27 }
 0x1c5   :  { %v5450_v23 = vpop.f32.mrb[4].mxu1 }
 0x1c6   :  { %v411_v24 = vadd.f32 %v5450_v23, %v6946_v18  ;;  %v5490_v25 = vpop.f32.mrb[4].mxu0  ;;  %v405_v26 = vpop.f32.mrb[5].mxu1 }
 0x1c7   :  { %v667_v32 = vadd.f32 %v5490_v25, %v6946_v18  ;;  %v406_v33 = vadd.f32 %v405_v26, %v6944_v17  ;;  %v661_v34 = vpop.f32.mrb[5].mxu0  ;;  %v6995_v26 = vpop.permute.xlu1 %267 }
 0x1c8   :  { %486 = vst.msk [vmem:[#allocation3 + $0x8] sm:$0xff] %vm484_vm3, %v411_v24  ;;  %v662_v35 = vadd.f32 %v661_v34, %v6944_v17 }
 0x1c9   :  { %742 = vst.msk [vmem:[#allocation3 + $0x88] sm:$0xff] %vm484_vm3, %v667_v32  ;;  %485 = vst.msk [vmem:[#allocation3] sm:$0xff] %vm484_vm3, %v406_v33  ;;  %v5453_v37 = vpop.f32.mrb[6].mxu1 }
 0x1ca   :  { %741 = vst.msk [vmem:[#allocation3 + $0x80] sm:$0xff] %vm484_vm3, %v662_v35  ;;  %v421_v38 = vadd.f32 %v5453_v37, %v6954_v22  ;;  %v5493_v40 = vpop.f32.mrb[6].mxu0  ;;  %v415_v41 = vpop.f32.mrb[7].mxu1 }
 0x1cb   :  { %v677_v42 = vadd.f32 %v5493_v40, %v6954_v22  ;;  %v416_v43 = vadd.f32 %v415_v41, %v6952_v21  ;;  %v671_v44 = vpop.f32.mrb[7].mxu0 }
 0x1cc   :  { %488 = vst.msk [vmem:[#allocation3 + $0x18] sm:$0xff] %vm484_vm3, %v421_v38  ;;  %v672_v45 = vadd.f32 %v671_v44, %v6952_v21 }
 0x1cd   :  { %744 = vst.msk [vmem:[#allocation3 + $0x98] sm:$0xff] %vm484_vm3, %v677_v42  ;;  %487 = vst.msk [vmem:[#allocation3 + $0x10] sm:$0xff] %vm484_vm3, %v416_v43  ;;  %v5456_v47 = vpop.f32.mrb[8].mxu1  ;;  %v7005_v42 = vpop.permute.xlu0 %272 }
 0x1ce   :  { %743 = vst.msk [vmem:[#allocation3 + $0x90] sm:$0xff] %vm484_vm3, %v672_v45  ;;  %v431_v48 = vadd.f32 %v5456_v47, %v6950_v20  ;;  %v5496_v49 = vpop.f32.mrb[8].mxu0  ;;  %v425_v50 = vpop.f32.mrb[9].mxu1 }
 0x1cf   :  { %v687_v52 = vadd.f32 %v5496_v49, %v6950_v20  ;;  %v426_v53 = vadd.f32 %v425_v50, %v6948_v19  ;;  %v681_v54 = vpop.f32.mrb[9].mxu0 }
 0x1d0   :  { %490 = vst.msk [vmem:[#allocation3 + $0x28] sm:$0xff] %vm484_vm3, %v431_v48  ;;  %v682_v55 = vadd.f32 %v681_v54, %v6948_v19  ;;  %v7011_v48 = vpop.permute.xlu1 %277 }
 0x1d1   :  { %746 = vst.msk [vmem:[#allocation3 + $0xa8] sm:$0xff] %vm484_vm3, %v687_v52  ;;  %489 = vst.msk [vmem:[#allocation3 + $0x20] sm:$0xff] %vm484_vm3, %v426_v53  ;;  %v5459_v56 = vpop.f32.mrb[10].mxu1 }
 0x1d2   :  { %745 = vst.msk [vmem:[#allocation3 + $0xa0] sm:$0xff] %vm484_vm3, %v682_v55  ;;  %v441_v57 = vadd.f32 %v5459_v56, %v6963_v36  ;;  %v5499_v58 = vpop.f32.mrb[10].mxu0  ;;  %v435_v59 = vpop.f32.mrb[11].mxu1 }
 0x1d3   :  { %v697_v61 = vadd.f32 %v5499_v58, %v6963_v36  ;;  %v436_v23 = vadd.f32 %v435_v59, %v6957_v31  ;;  %v691_v24 = vpop.f32.mrb[11].mxu0 }
 0x1d4   :  { %492 = vst.msk [vmem:[#allocation3 + $0x38] sm:$0xff] %vm484_vm3, %v441_v57  ;;  %v692_v25 = vadd.f32 %v691_v24, %v6957_v31 }
 0x1d5   :  { %748 = vst.msk [vmem:[#allocation3 + $0xb8] sm:$0xff] %vm484_vm3, %v697_v61  ;;  %491 = vst.msk [vmem:[#allocation3 + $0x30] sm:$0xff] %vm484_vm3, %v436_v23  ;;  %v5462_v32 = vpop.f32.mrb[12].mxu1  ;;  %v7023_v23 = vpop.permute.xlu0 %282 }
 0x1d6   :  { %747 = vst.msk [vmem:[#allocation3 + $0xb0] sm:$0xff] %vm484_vm3, %v692_v25  ;;  %v451_v33 = vadd.f32 %v5462_v32, %v6979_v51  ;;  %v5502_v34 = vpop.f32.mrb[12].mxu0  ;;  %v445_v35 = vpop.f32.mrb[13].mxu1 }
 0x1d7   :  { %v707_v37 = vadd.f32 %v5502_v34, %v6979_v51  ;;  %v446_v38 = vadd.f32 %v445_v35, %v6973_v46  ;;  %v701_v40 = vpop.f32.mrb[13].mxu0  ;;  %v7027_v25 = vpop.permute.xlu1 %287 }
 0x1d8   :  { %494 = vst.msk [vmem:[#allocation3 + $0x48] sm:$0xff] %vm484_vm3, %v451_v33  ;;  %v702_v41 = vadd.f32 %v701_v40, %v6973_v46 }
 0x1d9   :  { %750 = vst.msk [vmem:[#allocation3 + $0xc8] sm:$0xff] %vm484_vm3, %v707_v37  ;;  %493 = vst.msk [vmem:[#allocation3 + $0x40] sm:$0xff] %vm484_vm3, %v446_v38  ;;  %v5465_v43 = vpop.f32.mrb[14].mxu1 }
 0x1da   :  { %749 = vst.msk [vmem:[#allocation3 + $0xc0] sm:$0xff] %vm484_vm3, %v702_v41  ;;  %v461_v44 = vadd.f32 %v5465_v43, %v6995_v26  ;;  %v5505_v45 = vpop.f32.mrb[14].mxu0  ;;  %v455_v47 = vpop.f32.mrb[15].mxu1 }
 0x1db   :  { %v717_v49 = vadd.f32 %v5505_v45, %v6995_v26  ;;  %v456_v50 = vadd.f32 %v455_v47, %v6989_v60  ;;  %v711_v52 = vpop.f32.mrb[15].mxu0 }
 0x1dc   :  { %496 = vst.msk [vmem:[#allocation3 + $0x58] sm:$0xff] %vm484_vm3, %v461_v44  ;;  %v712_v53 = vadd.f32 %v711_v52, %v6989_v60 }
 0x1dd   :  { %752 = vst.msk [vmem:[#allocation3 + $0xd8] sm:$0xff] %vm484_vm3, %v717_v49  ;;  %495 = vst.msk [vmem:[#allocation3 + $0x50] sm:$0xff] %vm484_vm3, %v456_v50  ;;  %v5468_v54 = vpop.f32.mrb[16].mxu1 }
 0x1de   :  { %751 = vst.msk [vmem:[#allocation3 + $0xd0] sm:$0xff] %vm484_vm3, %v712_v53  ;;  %v471_v55 = vadd.f32 %v5468_v54, %v7011_v48  ;;  %v5508_v56 = vpop.f32.mrb[16].mxu0  ;;  %v465_v57 = vpop.f32.mrb[17].mxu1 }
 0x1df   :  { %v727_v58 = vadd.f32 %v5508_v56, %v7011_v48  ;;  %v466_v59 = vadd.f32 %v465_v57, %v7005_v42  ;;  %v721_v61 = vpop.f32.mrb[17].mxu0 }
 0x1e0   :  { %498 = vst.msk [vmem:[#allocation3 + $0x68] sm:$0xff] %vm484_vm3, %v471_v55  ;;  %v722_v24 = vadd.f32 %v721_v61, %v7005_v42 }
 0x1e1   :  { %754 = vst.msk [vmem:[#allocation3 + $0xe8] sm:$0xff] %vm484_vm3, %v727_v58  ;;  %497 = vst.msk [vmem:[#allocation3 + $0x60] sm:$0xff] %vm484_vm3, %v466_v59  ;;  %v5471_v32 = vpop.f32.mrb[18].mxu1 }
 0x1e2   :  { %753 = vst.msk [vmem:[#allocation3 + $0xe0] sm:$0xff] %vm484_vm3, %v722_v24  ;;  %v481_v33 = vadd.f32 %v5471_v32, %v7027_v25  ;;  %v5511_v34 = vpop.f32.mrb[18].mxu0  ;;  %v475_v35 = vpop.f32.mrb[19].mxu1 }
 0x1e3   :  { %v737_v37 = vadd.f32 %v5511_v34, %v7027_v25  ;;  %v476_v38 = vadd.f32 %v475_v35, %v7023_v23  ;;  %v731_v40 = vpop.f32.mrb[19].mxu0 }
 0x1e4   :  { %500 = vst.msk [vmem:[#allocation3 + $0x78] sm:$0xff] %vm484_vm3, %v481_v33  ;;  %v732_v41 = vadd.f32 %v731_v40, %v7023_v23 }
 0x1e5   :  { %756 = vst.msk [vmem:[#allocation3 + $0xf8] sm:$0xff] %vm484_vm3, %v737_v37  ;;  %499 = vst.msk [vmem:[#allocation3 + $0x70] sm:$0xff] %vm484_vm3, %v476_v38  ;;  %v5516_v43 = vpop.f32.mrb[20].mxu1 }
 0x1e6   :  { %755 = vst.msk [vmem:[#allocation3 + $0xf0] sm:$0xff] %vm484_vm3, %v732_v41  ;;  %v834_v44 = vadd.f32 %v5516_v43, %v6767_v30  ;;  %v5556_v45 = vpop.f32.mrb[20].mxu0  ;;  %v828_v47 = vpop.f32.mrb[21].mxu1 }
 0x1e7   :  { %v1090_v49 = vadd.f32 %v5556_v45, %v6767_v30  ;;  %v829_v50 = vadd.f32 %v828_v47, %v6763_v28  ;;  %v1084_v52 = vpop.f32.mrb[21].mxu0 }
 0x1e8   :  { %6143 = vtanh.f32 %v834_v44  ;;  %v1085_v53 = vadd.f32 %v1084_v52, %v6763_v28 }
 0x1e9   :  { %6145 = vtanh.f32 %v1090_v49  ;;  %v5519_v54 = vpop.f32.mrb[22].mxu1  ;;  %v4859_v49 = vld [vmem:[%s8226_s0 + $0x10] sm:$0xf] }
 0x1ea   :  { %6147 = vtanh.f32 %v829_v50  ;;  %v844_v55 = vadd.f32 %v5519_v54, %v6773_v39  ;;  %v5559_v56 = vpop.f32.mrb[22].mxu0  ;;  %v838_v57 = vpop.f32.mrb[23].mxu1  ;;  %v4881_v50 = vld [vmem:[%s8226_s0 + $0x14] sm:$0xf] }
 0x1eb   :  { %6149 = vtanh.f32 %v1085_v53  ;;  %v1100_v58 = vadd.f32 %v5559_v56, %v6773_v39  ;;  %v839_v59 = vadd.f32 %v838_v57, %v6765_v29  ;;  %v1094_v61 = vpop.f32.mrb[23].mxu0 }
 0x1ec   :  { %6151 = vtanh.f32 %v844_v55  ;;  %v1095_v24 = vadd.f32 %v1094_v61, %v6765_v29 }
 0x1ed   :  { %6153 = vtanh.f32 %v1100_v58 }
 0x1ee   :  { %6155 = vtanh.f32 %v839_v59 }
 0x1ef   :  { %6157 = vtanh.f32 %v1095_v24 }
 0x1f2   :  { %v6144_v32 = vpop.eup %6143 }
 0x1f3   :  { %v6146_v33 = vpop.eup %6145 }
 0x1f4   :  { %v6148_v34 = vpop.eup %6147 }
 0x1f5   :  { %v6150_v35 = vpop.eup %6149  ;;  %v6018_v37 = vpack.c.bf16 %v6144_v32, %v6148_v34 }
 0x1f6   :  { %v6152_v38 = vpop.eup %6151  ;;  %v6026_v40 = vpack.c.bf16 %v6146_v33, %v6150_v35 }
 0x1f7   :  { %v6154_v41 = vpop.eup %6153  ;;  %6019 = vmatprep.subr.bf16.mxu1 %v6018_v37 }
 0x1f8   :  { %v6156_v43 = vpop.eup %6155  ;;  %6027 = vmatprep.subr.bf16.mxu0 %v6026_v40  ;;  %6021 = vmatpush3.bf16.msra.mxu1 %v6018_v37 }
 0x1f9   :  { %v6158_v44 = vpop.eup %6157  ;;  %6029 = vmatpush3.bf16.msra.mxu0 %v6026_v40  ;;  %v6022_v45 = vpack.c.bf16 %v6152_v38, %v6156_v43 }
 0x1fa   :  { %v6030_v47 = vpack.c.bf16 %v6154_v41, %v6158_v44 }
 0x1fb   :  { %6023 = vmatprep.subr.bf16.mxu1 %v6022_v45 }
 0x1fc   :  { %6031 = vmatprep.subr.bf16.mxu0 %v6030_v47  ;;  %6025 = vmatpush3.bf16.msra.mxu1 %v6022_v45 }
 0x1fd   :  { %6033 = vmatpush3.bf16.msra.mxu0 %v6030_v47  ;;  %5592 = vmatprep.subr.msk.mxu1 %vm117_vm0, %v4859_v49 }
 0x1fe   :  { %5632 = vmatprep.subr.msk.mxu0 %vm117_vm0, %v4881_v50 }
 0x1ff   :  { %5529 = vmatmul.mubr.msk.f32.vlgmr.msra.gmra.mrb[24].mxu1 %vm290_vm2, %v6788_v62 }
 0x200   :  { %5569 = vmatmul.mubr.msk.f32.vlgmr.msra.gmra.mrb[24].mxu0 %vm290_vm2, %v6788_v62  ;;  %5531 = vmatprep.mubr.msk.f32.mxu1 %vm290_vm2, %v6793_v63 }
 0x201   :  { %5571 = vmatprep.mubr.msk.f32.mxu0 %vm290_vm2, %v6793_v63  ;;  %5593 = vmatpush3.msk.msra.mxu1 %vm117_vm0, %v4859_v49 }
 0x202   :  { %5633 = vmatpush3.msk.msra.mxu0 %vm117_vm0, %v4881_v50 }
 0x203   :  { %5532 = vmatmul.mubr.msk.f32.gmra.mrb[26].mxu1 %vm290_vm2, %v6806_v0 }
 0x204   :  { %5572 = vmatmul.mubr.msk.f32.gmra.mrb[26].mxu0 %vm290_vm2, %v6806_v0  ;;  %5534 = vmatprep.mubr.msk.f32.mxu1 %vm290_vm2, %v6813_v1 }
 0x205   :  { %5574 = vmatprep.mubr.msk.f32.mxu0 %vm290_vm2, %v6813_v1 }
 0x207   :  { %5535 = vmatmul.mubr.msk.f32.gmra.mrb[28].mxu1 %vm290_vm2, %v6826_v5 }
 0x208   :  { %5575 = vmatmul.mubr.msk.f32.gmra.mrb[28].mxu0 %vm290_vm2, %v6826_v5  ;;  %5537 = vmatprep.mubr.msk.f32.mxu1 %vm290_vm2, %v6833_v6 }
 0x209   :  { %5577 = vmatprep.mubr.msk.f32.mxu0 %vm290_vm2, %v6833_v6 }
 0x20b   :  { %5538 = vmatmul.mubr.msk.f32.gmra.mrb[30].mxu1 %vm290_vm2, %v6844_v8 }
 0x20c   :  { %5578 = vmatmul.mubr.msk.f32.gmra.mrb[30].mxu0 %vm290_vm2, %v6844_v8  ;;  %5540 = vmatprep.mubr.msk.f32.mxu1 %vm290_vm2, %v6851_v9 }
 0x20d   :  { %5580 = vmatprep.mubr.msk.f32.mxu0 %vm290_vm2, %v6851_v9 }
 0x20f   :  { %5541 = vmatmul.mubr.msk.f32.gmra.mrb[32].mxu1 %vm290_vm2, %v6862_v10 }
 0x210   :  { %5581 = vmatmul.mubr.msk.f32.gmra.mrb[32].mxu0 %vm290_vm2, %v6862_v10  ;;  %5543 = vmatprep.mubr.msk.f32.mxu1 %vm290_vm2, %v6869_v11 }
 0x211   :  { %5583 = vmatprep.mubr.msk.f32.mxu0 %vm290_vm2, %v6869_v11 }
 0x213   :  { %5544 = vmatmul.mubr.msk.f32.gmra.mrb[34].mxu1 %vm290_vm2, %v6880_v12 }
 0x214   :  { %5584 = vmatmul.mubr.msk.f32.gmra.mrb[34].mxu0 %vm290_vm2, %v6880_v12  ;;  %5546 = vmatprep.mubr.msk.f32.mxu1 %vm290_vm2, %v6887_v13 }
 0x215   :  { %5586 = vmatprep.mubr.msk.f32.mxu0 %vm290_vm2, %v6887_v13 }
 0x217   :  { %5547 = vmatmul.mubr.msk.f32.gmra.mrb[36].mxu1 %vm290_vm2, %v6898_v14 }
 0x218   :  { %5587 = vmatmul.mubr.msk.f32.gmra.mrb[36].mxu0 %vm290_vm2, %v6898_v14  ;;  %5549 = vmatprep.mubr.msk.f32.mxu1 %vm290_vm2, %v6905_v15 }
 0x219   :  { %5589 = vmatprep.mubr.msk.f32.mxu0 %vm290_vm2, %v6905_v15 }
 0x21b   :  { %5550 = vmatmul.mubr.msk.f32.gmra.mrb[38].mxu1 %vm290_vm2, %v6916_v16 }
 0x21c   :  { %5590 = vmatmul.mubr.msk.f32.gmra.mrb[38].mxu0 %vm290_vm2, %v6916_v16  ;;  %5594 = vmatprep.mubr.msk.f32.mxu1 %vm104_vm1, %v6657_v2 }
 0x21d   :  { %5634 = vmatprep.mubr.msk.f32.mxu0 %vm104_vm1, %v6657_v2 }
 0x21f   :  { %5595 = vmatmul.mubr.msk.f32.vlgmr.msra.gmra.mrb[40].mxu1 %vm104_vm1, %v6664_v3 }
 0x220   :  { %5635 = vmatmul.mubr.msk.f32.vlgmr.msra.gmra.mrb[40].mxu0 %vm104_vm1, %v6664_v3  ;;  %5597 = vmatprep.mubr.msk.f32.mxu1 %vm104_vm1, %v6672_v4 }
 0x221   :  { %5637 = vmatprep.mubr.msk.f32.mxu0 %vm104_vm1, %v6672_v4 }
 0x223   :  { %5598 = vmatmul.mubr.msk.f32.gmra.mrb[42].mxu1 %vm104_vm1, %v6694_v7 }
 0x224   :  { %5638 = vmatmul.mubr.msk.f32.gmra.mrb[42].mxu0 %vm104_vm1, %v6694_v7  ;;  %5608 = vmatprep.mubr.msk.f32.mxu1 %vm290_vm2, %v6757_v27 }
 0x225   :  { %5648 = vmatprep.mubr.msk.f32.mxu0 %vm290_vm2, %v6757_v27 }
 0x2d2   :  { %v5530_v2 = vpop.f32.mrb[24].mxu1 }
 0x2d3   :  { %v923_v3 = vadd.f32 %v5530_v2, %v6946_v18  ;;  %v5570_v52 = vpop.f32.mrb[24].mxu0  ;;  %v917_v53 = vpop.f32.mrb[25].mxu1 }
 0x2d4   :  { %v1179_v54 = vadd.f32 %v5570_v52, %v6946_v18  ;;  %v918_v4 = vadd.f32 %v917_v53, %v6944_v17  ;;  %v1173_v55 = vpop.f32.mrb[25].mxu0 }
 0x2d5   :  { %998 = vst.msk [vmem:[#allocation3 + $0x108] sm:$0xff] %vm484_vm3, %v923_v3  ;;  %v1174_v7 = vadd.f32 %v1173_v55, %v6944_v17 }
 0x2d6   :  { %1254 = vst.msk [vmem:[#allocation3 + $0x188] sm:$0xff] %vm484_vm3, %v1179_v54  ;;  %997 = vst.msk [vmem:[#allocation3 + $0x100] sm:$0xff] %vm484_vm3, %v918_v4  ;;  %v5533_v56 = vpop.f32.mrb[26].mxu1 }
 0x2d7   :  { %1253 = vst.msk [vmem:[#allocation3 + $0x180] sm:$0xff] %vm484_vm3, %v1174_v7  ;;  %v933_v57 = vadd.f32 %v5533_v56, %v6954_v22  ;;  %v5573_v58 = vpop.f32.mrb[26].mxu0  ;;  %v927_v59 = vpop.f32.mrb[27].mxu1 }
 0x2d8   :  { %v1189_v61 = vadd.f32 %v5573_v58, %v6954_v22  ;;  %v928_v24 = vadd.f32 %v927_v59, %v6952_v21  ;;  %v1183_v32 = vpop.f32.mrb[27].mxu0 }
 0x2d9   :  { %1000 = vst.msk [vmem:[#allocation3 + $0x118] sm:$0xff] %vm484_vm3, %v933_v57  ;;  %v1184_v33 = vadd.f32 %v1183_v32, %v6952_v21 }
 0x2da   :  { %1256 = vst.msk [vmem:[#allocation3 + $0x198] sm:$0xff] %vm484_vm3, %v1189_v61  ;;  %999 = vst.msk [vmem:[#allocation3 + $0x110] sm:$0xff] %vm484_vm3, %v928_v24  ;;  %v5536_v34 = vpop.f32.mrb[28].mxu1 }
 0x2db   :  { %1255 = vst.msk [vmem:[#allocation3 + $0x190] sm:$0xff] %vm484_vm3, %v1184_v33  ;;  %v943_v35 = vadd.f32 %v5536_v34, %v6950_v20  ;;  %v5576_v37 = vpop.f32.mrb[28].mxu0  ;;  %v937_v38 = vpop.f32.mrb[29].mxu1 }
 0x2dc   :  { %v1199_v40 = vadd.f32 %v5576_v37, %v6950_v20  ;;  %v938_v41 = vadd.f32 %v937_v38, %v6948_v19  ;;  %v1193_v43 = vpop.f32.mrb[29].mxu0 }
 0x2dd   :  { %1002 = vst.msk [vmem:[#allocation3 + $0x128] sm:$0xff] %vm484_vm3, %v943_v35  ;;  %v1194_v44 = vadd.f32 %v1193_v43, %v6948_v19 }
 0x2de   :  { %1258 = vst.msk [vmem:[#allocation3 + $0x1a8] sm:$0xff] %vm484_vm3, %v1199_v40  ;;  %1001 = vst.msk [vmem:[#allocation3 + $0x120] sm:$0xff] %vm484_vm3, %v938_v41  ;;  %v5539_v45 = vpop.f32.mrb[30].mxu1 }
 0x2df   :  { %1257 = vst.msk [vmem:[#allocation3 + $0x1a0] sm:$0xff] %vm484_vm3, %v1194_v44  ;;  %v953_v47 = vadd.f32 %v5539_v45, %v6963_v36  ;;  %v5579_v49 = vpop.f32.mrb[30].mxu0  ;;  %v947_v50 = vpop.f32.mrb[31].mxu1 }
 0x2e0   :  { %v1209_v2 = vadd.f32 %v5579_v49, %v6963_v36  ;;  %v948_v3 = vadd.f32 %v947_v50, %v6957_v31  ;;  %v1203_v52 = vpop.f32.mrb[31].mxu0 }
 0x2e1   :  { %1004 = vst.msk [vmem:[#allocation3 + $0x138] sm:$0xff] %vm484_vm3, %v953_v47  ;;  %v1204_v53 = vadd.f32 %v1203_v52, %v6957_v31 }
 0x2e2   :  { %1260 = vst.msk [vmem:[#allocation3 + $0x1b8] sm:$0xff] %vm484_vm3, %v1209_v2  ;;  %1003 = vst.msk [vmem:[#allocation3 + $0x130] sm:$0xff] %vm484_vm3, %v948_v3  ;;  %v5542_v54 = vpop.f32.mrb[32].mxu1 }
 0x2e3   :  { %1259 = vst.msk [vmem:[#allocation3 + $0x1b0] sm:$0xff] %vm484_vm3, %v1204_v53  ;;  %v963_v4 = vadd.f32 %v5542_v54, %v6979_v51  ;;  %v5582_v55 = vpop.f32.mrb[32].mxu0  ;;  %v957_v7 = vpop.f32.mrb[33].mxu1 }
 0x2e4   :  { %v1219_v56 = vadd.f32 %v5582_v55, %v6979_v51  ;;  %v958_v57 = vadd.f32 %v957_v7, %v6973_v46  ;;  %v1213_v58 = vpop.f32.mrb[33].mxu0 }
 0x2e5   :  { %1006 = vst.msk [vmem:[#allocation3 + $0x148] sm:$0xff] %vm484_vm3, %v963_v4  ;;  %v1214_v59 = vadd.f32 %v1213_v58, %v6973_v46 }
 0x2e6   :  { %1262 = vst.msk [vmem:[#allocation3 + $0x1c8] sm:$0xff] %vm484_vm3, %v1219_v56  ;;  %1005 = vst.msk [vmem:[#allocation3 + $0x140] sm:$0xff] %vm484_vm3, %v958_v57  ;;  %v5545_v61 = vpop.f32.mrb[34].mxu1 }
 0x2e7   :  { %1261 = vst.msk [vmem:[#allocation3 + $0x1c0] sm:$0xff] %vm484_vm3, %v1214_v59  ;;  %v973_v24 = vadd.f32 %v5545_v61, %v6995_v26  ;;  %v5585_v32 = vpop.f32.mrb[34].mxu0  ;;  %v967_v33 = vpop.f32.mrb[35].mxu1 }
 0x2e8   :  { %v1229_v34 = vadd.f32 %v5585_v32, %v6995_v26  ;;  %v968_v35 = vadd.f32 %v967_v33, %v6989_v60  ;;  %v1223_v37 = vpop.f32.mrb[35].mxu0 }
 0x2e9   :  { %1008 = vst.msk [vmem:[#allocation3 + $0x158] sm:$0xff] %vm484_vm3, %v973_v24  ;;  %v1224_v38 = vadd.f32 %v1223_v37, %v6989_v60 }
 0x2ea   :  { %1264 = vst.msk [vmem:[#allocation3 + $0x1d8] sm:$0xff] %vm484_vm3, %v1229_v34  ;;  %1007 = vst.msk [vmem:[#allocation3 + $0x150] sm:$0xff] %vm484_vm3, %v968_v35  ;;  %v5548_v40 = vpop.f32.mrb[36].mxu1 }
 0x2eb   :  { %1263 = vst.msk [vmem:[#allocation3 + $0x1d0] sm:$0xff] %vm484_vm3, %v1224_v38  ;;  %v983_v41 = vadd.f32 %v5548_v40, %v7011_v48  ;;  %v5588_v43 = vpop.f32.mrb[36].mxu0  ;;  %v977_v44 = vpop.f32.mrb[37].mxu1 }
 0x2ec   :  { %v1239_v45 = vadd.f32 %v5588_v43, %v7011_v48  ;;  %v978_v47 = vadd.f32 %v977_v44, %v7005_v42  ;;  %v1233_v49 = vpop.f32.mrb[37].mxu0 }
 0x2ed   :  { %1010 = vst.msk [vmem:[#allocation3 + $0x168] sm:$0xff] %vm484_vm3, %v983_v41  ;;  %v1234_v50 = vadd.f32 %v1233_v49, %v7005_v42 }
 0x2ee   :  { %1266 = vst.msk [vmem:[#allocation3 + $0x1e8] sm:$0xff] %vm484_vm3, %v1239_v45  ;;  %1009 = vst.msk [vmem:[#allocation3 + $0x160] sm:$0xff] %vm484_vm3, %v978_v47  ;;  %v5551_v2 = vpop.f32.mrb[38].mxu1 }
 0x2ef   :  { %1265 = vst.msk [vmem:[#allocation3 + $0x1e0] sm:$0xff] %vm484_vm3, %v1234_v50  ;;  %v993_v3 = vadd.f32 %v5551_v2, %v7027_v25  ;;  %v5591_v52 = vpop.f32.mrb[38].mxu0  ;;  %v987_v53 = vpop.f32.mrb[39].mxu1 }
 0x2f0   :  { %v1249_v54 = vadd.f32 %v5591_v52, %v7027_v25  ;;  %v988_v4 = vadd.f32 %v987_v53, %v7023_v23  ;;  %v1243_v55 = vpop.f32.mrb[39].mxu0 }
 0x2f1   :  { %1012 = vst.msk [vmem:[#allocation3 + $0x178] sm:$0xff] %vm484_vm3, %v993_v3  ;;  %v1244_v7 = vadd.f32 %v1243_v55, %v7023_v23 }
 0x2f2   :  { %1268 = vst.msk [vmem:[#allocation3 + $0x1f8] sm:$0xff] %vm484_vm3, %v1249_v54  ;;  %1011 = vst.msk [vmem:[#allocation3 + $0x170] sm:$0xff] %vm484_vm3, %v988_v4  ;;  %v5596_v56 = vpop.f32.mrb[40].mxu1 }
 0x2f3   :  { %1267 = vst.msk [vmem:[#allocation3 + $0x1f0] sm:$0xff] %vm484_vm3, %v1244_v7  ;;  %v1346_v57 = vadd.f32 %v5596_v56, %v6767_v30  ;;  %v5636_v58 = vpop.f32.mrb[40].mxu0  ;;  %v1340_v59 = vpop.f32.mrb[41].mxu1  ;;  %v4903_v56 = vld [vmem:[%s8226_s0 + $0x18] sm:$0xf] }
 0x2f4   :  { %v1602_v61 = vadd.f32 %v5636_v58, %v6767_v30  ;;  %v1341_v24 = vadd.f32 %v1340_v59, %v6763_v28  ;;  %v1596_v32 = vpop.f32.mrb[41].mxu0 }
 0x2f5   :  { %6159 = vtanh.f32 %v1346_v57  ;;  %v1597_v33 = vadd.f32 %v1596_v32, %v6763_v28  ;;  %v4925_v57 = vld [vmem:[%s8226_s0 + $0x1c] sm:$0xf] }
 0x2f6   :  { %6161 = vtanh.f32 %v1602_v61  ;;  %v5599_v34 = vpop.f32.mrb[42].mxu1 }
 0x2f7   :  { %6163 = vtanh.f32 %v1341_v24  ;;  %v1356_v35 = vadd.f32 %v5599_v34, %v6773_v39  ;;  %v5639_v37 = vpop.f32.mrb[42].mxu0  ;;  %v1350_v38 = vpop.f32.mrb[43].mxu1 }
 0x2f8   :  { %6165 = vtanh.f32 %v1597_v33  ;;  %v1612_v40 = vadd.f32 %v5639_v37, %v6773_v39  ;;  %v1351_v41 = vadd.f32 %v1350_v38, %v6765_v29  ;;  %v1606_v43 = vpop.f32.mrb[43].mxu0 }
 0x2f9   :  { %6167 = vtanh.f32 %v1356_v35  ;;  %v1607_v44 = vadd.f32 %v1606_v43, %v6765_v29 }
 0x2fa   :  { %6169 = vtanh.f32 %v1612_v40 }
 0x2fb   :  { %6171 = vtanh.f32 %v1351_v41 }
 0x2fc   :  { %6173 = vtanh.f32 %v1607_v44 }
 0x2ff   :  { %v6160_v45 = vpop.eup %6159 }
 0x300   :  { %v6162_v47 = vpop.eup %6161 }
 0x301   :  { %v6164_v49 = vpop.eup %6163 }
 0x302   :  { %v6166_v50 = vpop.eup %6165  ;;  %v6034_v2 = vpack.c.bf16 %v6160_v45, %v6164_v49 }
 0x303   :  { %v6168_v3 = vpop.eup %6167  ;;  %v6042_v52 = vpack.c.bf16 %v6162_v47, %v6166_v50 }
 0x304   :  { %v6170_v53 = vpop.eup %6169  ;;  %6035 = vmatprep.subr.bf16.mxu1 %v6034_v2 }
 0x305   :  { %v6172_v54 = vpop.eup %6171  ;;  %6043 = vmatprep.subr.bf16.mxu0 %v6042_v52  ;;  %6037 = vmatpush3.bf16.msra.mxu1 %v6034_v2 }
 0x306   :  { %v6174_v4 = vpop.eup %6173  ;;  %6045 = vmatpush3.bf16.msra.mxu0 %v6042_v52  ;;  %v6038_v55 = vpack.c.bf16 %v6168_v3, %v6172_v54 }
 0x307   :  { %v6046_v7 = vpack.c.bf16 %v6170_v53, %v6174_v4 }
 0x308   :  { %6039 = vmatprep.subr.bf16.mxu1 %v6038_v55 }
 0x309   :  { %6047 = vmatprep.subr.bf16.mxu0 %v6046_v7  ;;  %6041 = vmatpush3.bf16.msra.mxu1 %v6038_v55 }
 0x30a   :  { %6049 = vmatpush3.bf16.msra.mxu0 %v6046_v7  ;;  %5672 = vmatprep.subr.msk.mxu1 %vm117_vm0, %v4903_v56 }
 0x30b   :  { %5712 = vmatprep.subr.msk.mxu0 %vm117_vm0, %v4925_v57 }
 0x30c   :  { %5609 = vmatmul.mubr.msk.f32.vlgmr.msra.gmra.mrb[44].mxu1 %vm290_vm2, %v6788_v62 }
 0x30d   :  { %5649 = vmatmul.mubr.msk.f32.vlgmr.msra.gmra.mrb[44].mxu0 %vm290_vm2, %v6788_v62  ;;  %5611 = vmatprep.mubr.msk.f32.mxu1 %vm290_vm2, %v6793_v63  ;;  %v6531_v62 = vld [vmem:[%s8228_s2] sm:$0xff] }
 0x30e   :  { %5651 = vmatprep.mubr.msk.f32.mxu0 %vm290_vm2, %v6793_v63  ;;  %5673 = vmatpush3.msk.msra.mxu1 %vm117_vm0, %v4903_v56  ;;  %v6532_v63 = vld [vmem:[%s8228_s2 + $0x8] sm:$0xff] }
 0x30f   :  { %5713 = vmatpush3.msk.msra.mxu0 %vm117_vm0, %v4925_v57 }
 0x310   :  { %5612 = vmatmul.mubr.msk.f32.gmra.mrb[46].mxu1 %vm290_vm2, %v6806_v0 }
 0x311   :  { %5652 = vmatmul.mubr.msk.f32.gmra.mrb[46].mxu0 %vm290_vm2, %v6806_v0  ;;  %5614 = vmatprep.mubr.msk.f32.mxu1 %vm290_vm2, %v6813_v1  ;;  %v6533_v0 = vld [vmem:[%s8228_s2 + $0x10] sm:$0xff] }
 0x312   :  { %5654 = vmatprep.mubr.msk.f32.mxu0 %vm290_vm2, %v6813_v1  ;;  %v6534_v1 = vld [vmem:[%s8228_s2 + $0x18] sm:$0xff] }
 0x314   :  { %5615 = vmatmul.mubr.msk.f32.gmra.mrb[48].mxu1 %vm290_vm2, %v6826_v5 }
 0x315   :  { %5655 = vmatmul.mubr.msk.f32.gmra.mrb[48].mxu0 %vm290_vm2, %v6826_v5  ;;  %5617 = vmatprep.mubr.msk.f32.mxu1 %vm290_vm2, %v6833_v6 }
 0x316   :  { %5657 = vmatprep.mubr.msk.f32.mxu0 %vm290_vm2, %v6833_v6 }
 0x318   :  { %5618 = vmatmul.mubr.msk.f32.gmra.mrb[50].mxu1 %vm290_vm2, %v6844_v8 }
 0x319   :  { %5658 = vmatmul.mubr.msk.f32.gmra.mrb[50].mxu0 %vm290_vm2, %v6844_v8  ;;  %5620 = vmatprep.mubr.msk.f32.mxu1 %vm290_vm2, %v6851_v9 }
 0x31a   :  { %5660 = vmatprep.mubr.msk.f32.mxu0 %vm290_vm2, %v6851_v9 }
 0x31c   :  { %5621 = vmatmul.mubr.msk.f32.gmra.mrb[52].mxu1 %vm290_vm2, %v6862_v10 }
 0x31d   :  { %5661 = vmatmul.mubr.msk.f32.gmra.mrb[52].mxu0 %vm290_vm2, %v6862_v10  ;;  %5623 = vmatprep.mubr.msk.f32.mxu1 %vm290_vm2, %v6869_v11 }
 0x31e   :  { %5663 = vmatprep.mubr.msk.f32.mxu0 %vm290_vm2, %v6869_v11 }
 0x320   :  { %5624 = vmatmul.mubr.msk.f32.gmra.mrb[54].mxu1 %vm290_vm2, %v6880_v12 }
 0x321   :  { %5664 = vmatmul.mubr.msk.f32.gmra.mrb[54].mxu0 %vm290_vm2, %v6880_v12  ;;  %5626 = vmatprep.mubr.msk.f32.mxu1 %vm290_vm2, %v6887_v13 }
 0x322   :  { %5666 = vmatprep.mubr.msk.f32.mxu0 %vm290_vm2, %v6887_v13 }
 0x324   :  { %5627 = vmatmul.mubr.msk.f32.gmra.mrb[56].mxu1 %vm290_vm2, %v6898_v14 }
 0x325   :  { %5667 = vmatmul.mubr.msk.f32.gmra.mrb[56].mxu0 %vm290_vm2, %v6898_v14  ;;  %5629 = vmatprep.mubr.msk.f32.mxu1 %vm290_vm2, %v6905_v15 }
 0x326   :  { %5669 = vmatprep.mubr.msk.f32.mxu0 %vm290_vm2, %v6905_v15 }
 0x328   :  { %5630 = vmatmul.mubr.msk.f32.gmra.mrb[58].mxu1 %vm290_vm2, %v6916_v16 }
 0x329   :  { %5670 = vmatmul.mubr.msk.f32.gmra.mrb[58].mxu0 %vm290_vm2, %v6916_v16  ;;  %5674 = vmatprep.mubr.msk.f32.mxu1 %vm104_vm1, %v6531_v62 }
 0x32a   :  { %5714 = vmatprep.mubr.msk.f32.mxu0 %vm104_vm1, %v6531_v62 }
 0x32c   :  { %5675 = vmatmul.mubr.msk.f32.vlgmr.msra.gmra.mrb[60].mxu1 %vm104_vm1, %v6532_v63 }
 0x32d   :  { %5715 = vmatmul.mubr.msk.f32.vlgmr.msra.gmra.mrb[60].mxu0 %vm104_vm1, %v6532_v63  ;;  %5677 = vmatprep.mubr.msk.f32.mxu1 %vm104_vm1, %v6533_v0 }
 0x32e   :  { %5717 = vmatprep.mubr.msk.f32.mxu0 %vm104_vm1, %v6533_v0 }
 0x330   :  { %5678 = vmatmul.mubr.msk.f32.gmra.mrb[62].mxu1 %vm104_vm1, %v6534_v1 }
 0x331   :  { %5718 = vmatmul.mubr.msk.f32.gmra.mrb[62].mxu0 %vm104_vm1, %v6534_v1  ;;  %5688 = vmatprep.mubr.msk.f32.mxu1 %vm290_vm2, %v6757_v27 }
 0x332   :  { %5728 = vmatprep.mubr.msk.f32.mxu0 %vm290_vm2, %v6757_v27 }
 0x3df   :  { %v5610_v5 = vpop.f32.mrb[44].mxu1 }
 0x3e0   :  { %v1435_v6 = vadd.f32 %v5610_v5, %v6946_v18  ;;  %v5650_v8 = vpop.f32.mrb[44].mxu0  ;;  %v1429_v9 = vpop.f32.mrb[45].mxu1 }
 0x3e1   :  { %v1691_v10 = vadd.f32 %v5650_v8, %v6946_v18  ;;  %v1430_v11 = vadd.f32 %v1429_v9, %v6944_v17  ;;  %v1685_v12 = vpop.f32.mrb[45].mxu0 }
 0x3e2   :  { %1510 = vst.msk [vmem:[#allocation3 + $0x208] sm:$0xff] %vm484_vm3, %v1435_v6  ;;  %v1686_v13 = vadd.f32 %v1685_v12, %v6944_v17 }
 0x3e3   :  { %1766 = vst.msk [vmem:[#allocation3 + $0x288] sm:$0xff] %vm484_vm3, %v1691_v10  ;;  %1509 = vst.msk [vmem:[#allocation3 + $0x200] sm:$0xff] %vm484_vm3, %v1430_v11  ;;  %v5613_v14 = vpop.f32.mrb[46].mxu1 }
 0x3e4   :  { %1765 = vst.msk [vmem:[#allocation3 + $0x280] sm:$0xff] %vm484_vm3, %v1686_v13  ;;  %v1445_v27 = vadd.f32 %v5613_v14, %v6954_v22  ;;  %v5653_v15 = vpop.f32.mrb[46].mxu0  ;;  %v1439_v16 = vpop.f32.mrb[47].mxu1 }
 0x3e5   :  { %v1701_v58 = vadd.f32 %v5653_v15, %v6954_v22  ;;  %v1440_v59 = vadd.f32 %v1439_v16, %v6952_v21  ;;  %v1695_v61 = vpop.f32.mrb[47].mxu0 }
 0x3e6   :  { %1512 = vst.msk [vmem:[#allocation3 + $0x218] sm:$0xff] %vm484_vm3, %v1445_v27  ;;  %v1696_v24 = vadd.f32 %v1695_v61, %v6952_v21 }
 0x3e7   :  { %1768 = vst.msk [vmem:[#allocation3 + $0x298] sm:$0xff] %vm484_vm3, %v1701_v58  ;;  %1511 = vst.msk [vmem:[#allocation3 + $0x210] sm:$0xff] %vm484_vm3, %v1440_v59  ;;  %v5616_v32 = vpop.f32.mrb[48].mxu1 }
 0x3e8   :  { %1767 = vst.msk [vmem:[#allocation3 + $0x290] sm:$0xff] %vm484_vm3, %v1696_v24  ;;  %v1455_v33 = vadd.f32 %v5616_v32, %v6950_v20  ;;  %v5656_v34 = vpop.f32.mrb[48].mxu0  ;;  %v1449_v35 = vpop.f32.mrb[49].mxu1 }
 0x3e9   :  { %v1711_v37 = vadd.f32 %v5656_v34, %v6950_v20  ;;  %v1450_v38 = vadd.f32 %v1449_v35, %v6948_v19  ;;  %v1705_v40 = vpop.f32.mrb[49].mxu0 }
 0x3ea   :  { %1514 = vst.msk [vmem:[#allocation3 + $0x228] sm:$0xff] %vm484_vm3, %v1455_v33  ;;  %v1706_v41 = vadd.f32 %v1705_v40, %v6948_v19 }
 0x3eb   :  { %1770 = vst.msk [vmem:[#allocation3 + $0x2a8] sm:$0xff] %vm484_vm3, %v1711_v37  ;;  %1513 = vst.msk [vmem:[#allocation3 + $0x220] sm:$0xff] %vm484_vm3, %v1450_v38  ;;  %v5619_v43 = vpop.f32.mrb[50].mxu1 }
 0x3ec   :  { %1769 = vst.msk [vmem:[#allocation3 + $0x2a0] sm:$0xff] %vm484_vm3, %v1706_v41  ;;  %v1465_v44 = vadd.f32 %v5619_v43, %v6963_v36  ;;  %v5659_v45 = vpop.f32.mrb[50].mxu0  ;;  %v1459_v47 = vpop.f32.mrb[51].mxu1 }
 0x3ed   :  { %v1721_v49 = vadd.f32 %v5659_v45, %v6963_v36  ;;  %v1460_v50 = vadd.f32 %v1459_v47, %v6957_v31  ;;  %v1715_v2 = vpop.f32.mrb[51].mxu0 }
 0x3ee   :  { %1516 = vst.msk [vmem:[#allocation3 + $0x238] sm:$0xff] %vm484_vm3, %v1465_v44  ;;  %v1716_v3 = vadd.f32 %v1715_v2, %v6957_v31 }
 0x3ef   :  { %1772 = vst.msk [vmem:[#allocation3 + $0x2b8] sm:$0xff] %vm484_vm3, %v1721_v49  ;;  %1515 = vst.msk [vmem:[#allocation3 + $0x230] sm:$0xff] %vm484_vm3, %v1460_v50  ;;  %v5622_v52 = vpop.f32.mrb[52].mxu1 }
 0x3f0   :  { %1771 = vst.msk [vmem:[#allocation3 + $0x2b0] sm:$0xff] %vm484_vm3, %v1716_v3  ;;  %v1475_v53 = vadd.f32 %v5622_v52, %v6979_v51  ;;  %v5662_v54 = vpop.f32.mrb[52].mxu0  ;;  %v1469_v4 = vpop.f32.mrb[53].mxu1 }
 0x3f1   :  { %v1731_v55 = vadd.f32 %v5662_v54, %v6979_v51  ;;  %v1470_v7 = vadd.f32 %v1469_v4, %v6973_v46  ;;  %v1725_v56 = vpop.f32.mrb[53].mxu0 }
 0x3f2   :  { %1518 = vst.msk [vmem:[#allocation3 + $0x248] sm:$0xff] %vm484_vm3, %v1475_v53  ;;  %v1726_v57 = vadd.f32 %v1725_v56, %v6973_v46 }
 0x3f3   :  { %1774 = vst.msk [vmem:[#allocation3 + $0x2c8] sm:$0xff] %vm484_vm3, %v1731_v55  ;;  %1517 = vst.msk [vmem:[#allocation3 + $0x240] sm:$0xff] %vm484_vm3, %v1470_v7  ;;  %v5625_v62 = vpop.f32.mrb[54].mxu1 }
 0x3f4   :  { %1773 = vst.msk [vmem:[#allocation3 + $0x2c0] sm:$0xff] %vm484_vm3, %v1726_v57  ;;  %v1485_v63 = vadd.f32 %v5625_v62, %v6995_v26  ;;  %v5665_v0 = vpop.f32.mrb[54].mxu0  ;;  %v1479_v1 = vpop.f32.mrb[55].mxu1 }
 0x3f5   :  { %v1741_v5 = vadd.f32 %v5665_v0, %v6995_v26  ;;  %v1480_v6 = vadd.f32 %v1479_v1, %v6989_v60  ;;  %v1735_v8 = vpop.f32.mrb[55].mxu0 }
 0x3f6   :  { %1520 = vst.msk [vmem:[#allocation3 + $0x258] sm:$0xff] %vm484_vm3, %v1485_v63  ;;  %v1736_v9 = vadd.f32 %v1735_v8, %v6989_v60  ;;  %v6536_v8 = vld [vmem:[%s8230_s4 + $0x10] sm:$0xff] }
 0x3f7   :  { %1776 = vst.msk [vmem:[#allocation3 + $0x2d8] sm:$0xff] %vm484_vm3, %v1741_v5  ;;  %1519 = vst.msk [vmem:[#allocation3 + $0x250] sm:$0xff] %vm484_vm3, %v1480_v6  ;;  %v5628_v10 = vpop.f32.mrb[56].mxu1  ;;  %v6535_v6 = vld [vmem:[%s8230_s4 + $0x8] sm:$0xff] }
 0x3f8   :  { %1775 = vst.msk [vmem:[#allocation3 + $0x2d0] sm:$0xff] %vm484_vm3, %v1736_v9  ;;  %v1495_v11 = vadd.f32 %v5628_v10, %v7011_v48  ;;  %v5668_v12 = vpop.f32.mrb[56].mxu0  ;;  %v1489_v13 = vpop.f32.mrb[57].mxu1  ;;  %v6537_v9 = vld [vmem:[%s8230_s4 + $0x18] sm:$0xff]  ;;  %v6538_v10 = vld [vmem:[%s8230_s4 + $0x20] sm:$0xff] }
 0x3f9   :  { %v1751_v14 = vadd.f32 %v5668_v12, %v7011_v48  ;;  %v1490_v27 = vadd.f32 %v1489_v13, %v7005_v42  ;;  %v1745_v15 = vpop.f32.mrb[57].mxu0  ;;  %v6540_v12 = vld [vmem:[%s8230_s4 + $0x30] sm:$0xff]  ;;  %v6541_v13 = vld [vmem:[%s8230_s4 + $0x38] sm:$0xff] }
 0x3fa   :  { %1522 = vst.msk [vmem:[#allocation3 + $0x268] sm:$0xff] %vm484_vm3, %v1495_v11  ;;  %v1746_v16 = vadd.f32 %v1745_v15, %v7005_v42  ;;  %v6539_v11 = vld [vmem:[%s8230_s4 + $0x28] sm:$0xff]  ;;  %v6544_v15 = vld [vmem:[%s8230_s4 + $0x50] sm:$0xff] }
 0x3fb   :  { %1778 = vst.msk [vmem:[#allocation3 + $0x2e8] sm:$0xff] %vm484_vm3, %v1751_v14  ;;  %1521 = vst.msk [vmem:[#allocation3 + $0x260] sm:$0xff] %vm484_vm3, %v1490_v27  ;;  %v5631_v58 = vpop.f32.mrb[58].mxu1  ;;  %v6542_v14 = vld [vmem:[%s8230_s4 + $0x40] sm:$0xff]  ;;  %v6543_v27 = vld [vmem:[%s8230_s4 + $0x48] sm:$0xff] }
 0x3fc   :  { %1777 = vst.msk [vmem:[#allocation3 + $0x2e0] sm:$0xff] %vm484_vm3, %v1746_v16  ;;  %v1505_v59 = vadd.f32 %v5631_v58, %v7027_v25  ;;  %v5671_v61 = vpop.f32.mrb[58].mxu0  ;;  %v1499_v24 = vpop.f32.mrb[59].mxu1  ;;  %v6545_v16 = vld [vmem:[%s8230_s4 + $0x58] sm:$0xff]  ;;  %v6546_v58 = vld [vmem:[%s8230_s4 + $0x60] sm:$0xff] }
 0x3fd   :  { %v1761_v32 = vadd.f32 %v5671_v61, %v7027_v25  ;;  %v1500_v33 = vadd.f32 %v1499_v24, %v7023_v23  ;;  %v1755_v34 = vpop.f32.mrb[59].mxu0  ;;  %v6548_v61 = vld [vmem:[%s8230_s4 + $0x70] sm:$0xff]  ;;  %v7449_v24 = vld [vmem:[%s8231_s5] sm:$0xff] }
 0x3fe   :  { %1524 = vst.msk [vmem:[#allocation3 + $0x278] sm:$0xff] %vm484_vm3, %v1505_v59  ;;  %v1756_v35 = vadd.f32 %v1755_v34, %v7023_v23  ;;  %v6547_v59 = vld [vmem:[%s8230_s4 + $0x68] sm:$0xff]  ;;  %v7466_v34 = vld [vmem:[%s8231_s5 + $0x10] sm:$0xff] }
 0x3ff   :  { %1780 = vst.msk [vmem:[#allocation3 + $0x2f8] sm:$0xff] %vm484_vm3, %v1761_v32  ;;  %1523 = vst.msk [vmem:[#allocation3 + $0x270] sm:$0xff] %vm484_vm3, %v1500_v33  ;;  %v5676_v37 = vpop.f32.mrb[60].mxu1  ;;  %v6549_v32 = vld [vmem:[%s8230_s4 + $0x78] sm:$0xff]  ;;  %v7461_v33 = vld [vmem:[%s8231_s5 + $0x8] sm:$0xff] }
 0x400   :  { %1779 = vst.msk [vmem:[#allocation3 + $0x2f0] sm:$0xff] %vm484_vm3, %v1756_v35  ;;  %v1858_v38 = vadd.f32 %v5676_v37, %v6767_v30  ;;  %v5716_v40 = vpop.f32.mrb[60].mxu0  ;;  %v1852_v41 = vpop.f32.mrb[61].mxu1  ;;  %v7477_v35 = vld [vmem:[%s8231_s5 + $0x18] sm:$0xff]  ;;  %v7482_v37 = vld [vmem:[%s8231_s5 + $0x20] sm:$0xff] }
 0x401   :  { %v2114_v43 = vadd.f32 %v5716_v40, %v6767_v30  ;;  %v1853_v44 = vadd.f32 %v1852_v41, %v6763_v28  ;;  %v2108_v45 = vpop.f32.mrb[61].mxu0  ;;  %v7496_v40 = vld [vmem:[%s8231_s5 + $0x30] sm:$0xff]  ;;  %v7505_v41 = vld [vmem:[%s8231_s5 + $0x38] sm:$0xff] }
 0x402   :  { %6175 = vtanh.f32 %v1858_v38  ;;  %v2109_v47 = vadd.f32 %v2108_v45, %v6763_v28  ;;  %v7491_v38 = vld [vmem:[%s8231_s5 + $0x28] sm:$0xff]  ;;  %v7524_v45 = vld [vmem:[%s8231_s5 + $0x50] sm:$0xff] }
 0x403   :  { %6177 = vtanh.f32 %v2114_v43  ;;  %v5679_v49 = vpop.f32.mrb[62].mxu1  ;;  %v7510_v43 = vld [vmem:[%s8231_s5 + $0x40] sm:$0xff] }
 0x404   :  { %6179 = vtanh.f32 %v1853_v44  ;;  %v1868_v50 = vadd.f32 %v5679_v49, %v6773_v39  ;;  %v5719_v2 = vpop.f32.mrb[62].mxu0  ;;  %v1862_v3 = vpop.f32.mrb[63].mxu1  ;;  %v7519_v44 = vld [vmem:[%s8231_s5 + $0x48] sm:$0xff]  ;;  %v7538_v49 = vld [vmem:[%s8231_s5 + $0x60] sm:$0xff] }
 0x405   :  { %6181 = vtanh.f32 %v2109_v47  ;;  %v2124_v52 = vadd.f32 %v5719_v2, %v6773_v39  ;;  %v1863_v53 = vadd.f32 %v1862_v3, %v6765_v29  ;;  %v2118_v54 = vpop.f32.mrb[63].mxu0  ;;  %v7533_v47 = vld [vmem:[%s8231_s5 + $0x58] sm:$0xff]  ;;  %v7552_v2 = vld [vmem:[%s8231_s5 + $0x70] sm:$0xff] }
 0x406   :  { %6183 = vtanh.f32 %v1868_v50  ;;  %v2119_v30 = vadd.f32 %v2118_v54, %v6765_v29  ;;  %v6606_v29 = vmov 0.0   ;;  %v7547_v50 = vld [vmem:[%s8231_s5 + $0x68] sm:$0xff]  ;;  %v7561_v3 = vld [vmem:[%s8231_s5 + $0x78] sm:$0xff] }
 0x407   :  { %6185 = vtanh.f32 %v2124_v52 }
 0x408   :  { %6187 = vtanh.f32 %v1863_v53 }
 0x409   :  { %6189 = vtanh.f32 %v2119_v30 }
 0x40c   :  { %v6176_v28 = vpop.eup %6175 }
 0x40d   :  { %v6178_v4 = vpop.eup %6177 }
 0x40e   :  { %v6180_v55 = vpop.eup %6179 }
 0x40f   :  { %v6182_v7 = vpop.eup %6181  ;;  %v6050_v56 = vpack.c.bf16 %v6176_v28, %v6180_v55 }
 0x410   :  { %v6184_v57 = vpop.eup %6183  ;;  %v6058_v62 = vpack.c.bf16 %v6178_v4, %v6182_v7 }
 0x411   :  { %v6186_v63 = vpop.eup %6185  ;;  %6051 = vmatprep.subr.bf16.mxu1 %v6050_v56 }
 0x412   :  { %v6188_v0 = vpop.eup %6187  ;;  %6059 = vmatprep.subr.bf16.mxu0 %v6058_v62  ;;  %6053 = vmatpush3.bf16.msra.mxu1 %v6050_v56 }
 0x413   :  { %v6190_v39 = vpop.eup %6189  ;;  %6061 = vmatpush3.bf16.msra.mxu0 %v6058_v62  ;;  %v6054_v1 = vpack.c.bf16 %v6184_v57, %v6188_v0 }
 0x414   :  { %v6062_v5 = vpack.c.bf16 %v6186_v63, %v6190_v39 }
 0x415   :  { %6055 = vmatprep.subr.bf16.mxu1 %v6054_v1 }
 0x416   :  { %6063 = vmatprep.subr.bf16.mxu0 %v6062_v5  ;;  %6057 = vmatpush3.bf16.msra.mxu1 %v6054_v1 }
 0x417   :  { %6065 = vmatpush3.bf16.msra.mxu0 %v6062_v5  ;;  %5752 = vmatprep.subr.mxu1 %v6606_v29 }
 0x419   :  { %5689 = vmatmul.mubr.msk.f32.vlgmr.msra.gmra.mrb[64].mxu1 %vm290_vm2, %v6535_v6 }
 0x41a   :  { %5729 = vmatmul.mubr.msk.f32.vlgmr.msra.gmra.mrb[64].mxu0 %vm290_vm2, %v6535_v6  ;;  %5691 = vmatprep.mubr.msk.f32.mxu1 %vm290_vm2, %v6536_v8 }
 0x41b   :  { %5731 = vmatprep.mubr.msk.f32.mxu0 %vm290_vm2, %v6536_v8  ;;  %5753 = vmatpush3.msra.mxu1 %v6606_v29 }
 0x41d   :  { %5692 = vmatmul.mubr.msk.f32.gmra.mrb[66].mxu1 %vm290_vm2, %v6537_v9 }
 0x41e   :  { %5732 = vmatmul.mubr.msk.f32.gmra.mrb[66].mxu0 %vm290_vm2, %v6537_v9  ;;  %5694 = vmatprep.mubr.msk.f32.mxu1 %vm290_vm2, %v6538_v10 }
 0x41f   :  { %5734 = vmatprep.mubr.msk.f32.mxu0 %vm290_vm2, %v6538_v10 }
 0x421   :  { %5695 = vmatmul.mubr.msk.f32.gmra.mrb[68].mxu1 %vm290_vm2, %v6539_v11 }
 0x422   :  { %5735 = vmatmul.mubr.msk.f32.gmra.mrb[68].mxu0 %vm290_vm2, %v6539_v11  ;;  %5697 = vmatprep.mubr.msk.f32.mxu1 %vm290_vm2, %v6540_v12 }
 0x423   :  { %5737 = vmatprep.mubr.msk.f32.mxu0 %vm290_vm2, %v6540_v12 }
 0x425   :  { %5698 = vmatmul.mubr.msk.f32.gmra.mrb[70].mxu1 %vm290_vm2, %v6541_v13 }
 0x426   :  { %5738 = vmatmul.mubr.msk.f32.gmra.mrb[70].mxu0 %vm290_vm2, %v6541_v13  ;;  %5700 = vmatprep.mubr.msk.f32.mxu1 %vm290_vm2, %v6542_v14 }
 0x427   :  { %5740 = vmatprep.mubr.msk.f32.mxu0 %vm290_vm2, %v6542_v14 }
 0x429   :  { %5701 = vmatmul.mubr.msk.f32.gmra.mrb[72].mxu1 %vm290_vm2, %v6543_v27 }
 0x42a   :  { %5741 = vmatmul.mubr.msk.f32.gmra.mrb[72].mxu0 %vm290_vm2, %v6543_v27  ;;  %5703 = vmatprep.mubr.msk.f32.mxu1 %vm290_vm2, %v6544_v15 }
 0x42b   :  { %5743 = vmatprep.mubr.msk.f32.mxu0 %vm290_vm2, %v6544_v15 }
 0x42d   :  { %5704 = vmatmul.mubr.msk.f32.gmra.mrb[74].mxu1 %vm290_vm2, %v6545_v16 }
 0x42e   :  { %5744 = vmatmul.mubr.msk.f32.gmra.mrb[74].mxu0 %vm290_vm2, %v6545_v16  ;;  %5706 = vmatprep.mubr.msk.f32.mxu1 %vm290_vm2, %v6546_v58 }
 0x42f   :  { %5746 = vmatprep.mubr.msk.f32.mxu0 %vm290_vm2, %v6546_v58 }
 0x431   :  { %5707 = vmatmul.mubr.msk.f32.gmra.mrb[76].mxu1 %vm290_vm2, %v6547_v59 }
 0x432   :  { %5747 = vmatmul.mubr.msk.f32.gmra.mrb[76].mxu0 %vm290_vm2, %v6547_v59  ;;  %5709 = vmatprep.mubr.msk.f32.mxu1 %vm290_vm2, %v6548_v61 }
 0x433   :  { %5749 = vmatprep.mubr.msk.f32.mxu0 %vm290_vm2, %v6548_v61 }
 0x435   :  { %5710 = vmatmul.mubr.msk.f32.gmra.mrb[78].mxu1 %vm290_vm2, %v6549_v32 }
 0x436   :  { %5750 = vmatmul.mubr.msk.f32.gmra.mrb[78].mxu0 %vm290_vm2, %v6549_v32  ;;  %5754 = vmatprep.mubr.msk.f32.mxu1 %vm290_vm2, %v7449_v24 }
 0x437   :  { %5786 = vmatprep.mubr.msk.f32.mxu0 %vm290_vm2, %v7449_v24 }
 0x439   :  { %5755 = vmatmul.mubr.msk.f32.vlgmr.msra.gmra.mrb[80].mxu1 %vm290_vm2, %v7461_v33 }
 0x43a   :  { %5757 = vmatprep.mubr.msk.f32.mxu1 %vm290_vm2, %v7466_v34 }
 0x43d   :  { %5758 = vmatmul.mubr.msk.f32.gmra.mrb[82].mxu1 %vm290_vm2, %v7477_v35 }
 0x43e   :  { %5760 = vmatprep.mubr.msk.f32.mxu1 %vm290_vm2, %v7482_v37 }
 0x441   :  { %5761 = vmatmul.mubr.msk.f32.gmra.mrb[84].mxu1 %vm290_vm2, %v7491_v38 }
 0x442   :  { %5763 = vmatprep.mubr.msk.f32.mxu1 %vm290_vm2, %v7496_v40 }
 0x445   :  { %5764 = vmatmul.mubr.msk.f32.gmra.mrb[86].mxu1 %vm290_vm2, %v7505_v41 }
 0x446   :  { %5766 = vmatprep.mubr.msk.f32.mxu1 %vm290_vm2, %v7510_v43 }
 0x449   :  { %5767 = vmatmul.mubr.msk.f32.gmra.mrb[88].mxu1 %vm290_vm2, %v7519_v44 }
 0x44a   :  { %5769 = vmatprep.mubr.msk.f32.mxu1 %vm290_vm2, %v7524_v45 }
 0x44d   :  { %5770 = vmatmul.mubr.msk.f32.gmra.mrb[90].mxu1 %vm290_vm2, %v7533_v47 }
 0x44e   :  { %5772 = vmatprep.mubr.msk.f32.mxu1 %vm290_vm2, %v7538_v49 }
 0x451   :  { %5773 = vmatmul.mubr.msk.f32.gmra.mrb[92].mxu1 %vm290_vm2, %v7547_v50 }
 0x452   :  { %5775 = vmatprep.mubr.msk.f32.mxu1 %vm290_vm2, %v7552_v2 }
 0x455   :  { %5776 = vmatmul.mubr.msk.f32.gmra.mrb[94].mxu1 %vm290_vm2, %v7561_v3 }
 0x456   :  { %5818 = vmatprep.mubr.msk.f32.mxu1 %vm290_vm2, %v7449_v24 }
 0x4ec   :  { %v5690_v52 = vpop.f32.mrb[64].mxu1 }
 0x4ed   :  { %v1947_v53 = vadd.f32 %v5690_v52, %v6946_v18  ;;  %v5730_v54 = vpop.f32.mrb[64].mxu0  ;;  %v1941_v30 = vpop.f32.mrb[65].mxu1 }
 0x4ee   :  { %v2203_v28 = vadd.f32 %v5730_v54, %v6946_v18  ;;  %v1942_v4 = vadd.f32 %v1941_v30, %v6944_v17  ;;  %v2197_v55 = vpop.f32.mrb[65].mxu0 }
 0x4ef   :  { %2022 = vst.msk [vmem:[#allocation3 + $0x308] sm:$0xff] %vm484_vm3, %v1947_v53  ;;  %v2198_v7 = vadd.f32 %v2197_v55, %v6944_v17 }
 0x4f0   :  { %2278 = vst.msk [vmem:[#allocation3 + $0x388] sm:$0xff] %vm484_vm3, %v2203_v28  ;;  %2021 = vst.msk [vmem:[#allocation3 + $0x300] sm:$0xff] %vm484_vm3, %v1942_v4  ;;  %v5693_v56 = vpop.f32.mrb[66].mxu1 }
 0x4f1   :  { %2277 = vst.msk [vmem:[#allocation3 + $0x380] sm:$0xff] %vm484_vm3, %v2198_v7  ;;  %v1957_v57 = vadd.f32 %v5693_v56, %v6954_v22  ;;  %v5733_v62 = vpop.f32.mrb[66].mxu0  ;;  %v1951_v63 = vpop.f32.mrb[67].mxu1 }
 0x4f2   :  { %v2213_v18 = vadd.f32 %v5733_v62, %v6954_v22  ;;  %v1952_v0 = vadd.f32 %v1951_v63, %v6952_v21  ;;  %v2207_v39 = vpop.f32.mrb[67].mxu0 }
 0x4f3   :  { %2024 = vst.msk [vmem:[#allocation3 + $0x318] sm:$0xff] %vm484_vm3, %v1957_v57  ;;  %v2208_v17 = vadd.f32 %v2207_v39, %v6952_v21 }
 0x4f4   :  { %2280 = vst.msk [vmem:[#allocation3 + $0x398] sm:$0xff] %vm484_vm3, %v2213_v18  ;;  %2023 = vst.msk [vmem:[#allocation3 + $0x310] sm:$0xff] %vm484_vm3, %v1952_v0  ;;  %v5696_v1 = vpop.f32.mrb[68].mxu1 }
 0x4f5   :  { %2279 = vst.msk [vmem:[#allocation3 + $0x390] sm:$0xff] %vm484_vm3, %v2208_v17  ;;  %v1967_v5 = vadd.f32 %v5696_v1, %v6950_v20  ;;  %v5736_v29 = vpop.f32.mrb[68].mxu0  ;;  %v1961_v6 = vpop.f32.mrb[69].mxu1 }
 0x4f6   :  { %v2223_v22 = vadd.f32 %v5736_v29, %v6950_v20  ;;  %v1962_v8 = vadd.f32 %v1961_v6, %v6948_v19  ;;  %v2217_v9 = vpop.f32.mrb[69].mxu0  ;;  %v2294_v29 = vld [vmem:[#allocation3 + $0x8] sm:$0xff] }
 0x4f7   :  { %2026 = vst.msk [vmem:[#allocation3 + $0x328] sm:$0xff] %vm484_vm3, %v1967_v5  ;;  %v2218_v21 = vadd.f32 %v2217_v9, %v6948_v19 }
 0x4f8   :  { %2282 = vst.msk [vmem:[#allocation3 + $0x3a8] sm:$0xff] %vm484_vm3, %v2223_v22  ;;  %2025 = vst.msk [vmem:[#allocation3 + $0x320] sm:$0xff] %vm484_vm3, %v1962_v8  ;;  %v5699_v10 = vpop.f32.mrb[70].mxu1  ;;  %v2293_v8 = vld [vmem:[#allocation3] sm:$0xff] }
 0x4f9   :  { %2281 = vst.msk [vmem:[#allocation3 + $0x3a0] sm:$0xff] %vm484_vm3, %v2218_v21  ;;  %v1977_v11 = vadd.f32 %v5699_v10, %v6963_v36  ;;  %v5739_v12 = vpop.f32.mrb[70].mxu0  ;;  %v1971_v13 = vpop.f32.mrb[71].mxu1 }
 0x4fa   :  { %v2233_v20 = vadd.f32 %v5739_v12, %v6963_v36  ;;  %v1972_v14 = vadd.f32 %v1971_v13, %v6957_v31  ;;  %v2227_v27 = vpop.f32.mrb[71].mxu0 }
 0x4fb   :  { %2028 = vst.msk [vmem:[#allocation3 + $0x338] sm:$0xff] %vm484_vm3, %v1977_v11  ;;  %v2228_v19 = vadd.f32 %v2227_v27, %v6957_v31 }
 0x4fc   :  { %2284 = vst.msk [vmem:[#allocation3 + $0x3b8] sm:$0xff] %vm484_vm3, %v2233_v20  ;;  %2027 = vst.msk [vmem:[#allocation3 + $0x330] sm:$0xff] %vm484_vm3, %v1972_v14  ;;  %v5702_v15 = vpop.f32.mrb[72].mxu1  ;;  %v2295_v14 = vld [vmem:[#allocation3 + $0x10] sm:$0xff] }
 0x4fd   :  { %2283 = vst.msk [vmem:[#allocation3 + $0x3b0] sm:$0xff] %vm484_vm3, %v2228_v19  ;;  %v1987_v16 = vadd.f32 %v5702_v15, %v6979_v51  ;;  %v5742_v58 = vpop.f32.mrb[72].mxu0  ;;  %v1981_v59 = vpop.f32.mrb[73].mxu1  ;;  %v2298_v19 = vld [vmem:[#allocation3 + $0x28] sm:$0xff] }
 0x4fe   :  { %v2243_v36 = vadd.f32 %v5742_v58, %v6979_v51  ;;  %v1982_v61 = vadd.f32 %v1981_v59, %v6973_v46  ;;  %v2237_v32 = vpop.f32.mrb[73].mxu0  ;;  %v2297_v58 = vld [vmem:[#allocation3 + $0x20] sm:$0xff] }
 0x4ff   :  { %2030 = vst.msk [vmem:[#allocation3 + $0x348] sm:$0xff] %vm484_vm3, %v1987_v16  ;;  %v2238_v31 = vadd.f32 %v2237_v32, %v6973_v46 }
 0x500   :  { %2286 = vst.msk [vmem:[#allocation3 + $0x3c8] sm:$0xff] %vm484_vm3, %v2243_v36  ;;  %2029 = vst.msk [vmem:[#allocation3 + $0x340] sm:$0xff] %vm484_vm3, %v1982_v61  ;;  %v5705_v52 = vpop.f32.mrb[74].mxu1 }
 0x501   :  { %2285 = vst.msk [vmem:[#allocation3 + $0x3c0] sm:$0xff] %vm484_vm3, %v2238_v31  ;;  %v1997_v53 = vadd.f32 %v5705_v52, %v6995_v26  ;;  %v5745_v54 = vpop.f32.mrb[74].mxu0  ;;  %v1991_v30 = vpop.f32.mrb[75].mxu1  ;;  %v2300_v52 = vld [vmem:[#allocation3 + $0x38] sm:$0xff] }
 0x502   :  { %v2253_v51 = vadd.f32 %v5745_v54, %v6995_v26  ;;  %v1992_v28 = vadd.f32 %v1991_v30, %v6989_v60  ;;  %v2247_v4 = vpop.f32.mrb[75].mxu0  ;;  %v2299_v30 = vld [vmem:[#allocation3 + $0x30] sm:$0xff] }
 0x503   :  { %2032 = vst.msk [vmem:[#allocation3 + $0x358] sm:$0xff] %vm484_vm3, %v1997_v53  ;;  %v2248_v46 = vadd.f32 %v2247_v4, %v6989_v60 }
 0x504   :  { %2288 = vst.msk [vmem:[#allocation3 + $0x3d8] sm:$0xff] %vm484_vm3, %v2253_v51  ;;  %2031 = vst.msk [vmem:[#allocation3 + $0x350] sm:$0xff] %vm484_vm3, %v1992_v28  ;;  %v5708_v55 = vpop.f32.mrb[76].mxu1 }
 0x505   :  { %2287 = vst.msk [vmem:[#allocation3 + $0x3d0] sm:$0xff] %vm484_vm3, %v2248_v46  ;;  %v2007_v7 = vadd.f32 %v5708_v55, %v7011_v48  ;;  %v5748_v56 = vpop.f32.mrb[76].mxu0  ;;  %v2001_v57 = vpop.f32.mrb[77].mxu1  ;;  %v2302_v55 = vld [vmem:[#allocation3 + $0x48] sm:$0xff] }
 0x506   :  { %v2263_v26 = vadd.f32 %v5748_v56, %v7011_v48  ;;  %v2002_v62 = vadd.f32 %v2001_v57, %v7005_v42  ;;  %v2257_v63 = vpop.f32.mrb[77].mxu0  ;;  %v2301_v57 = vld [vmem:[#allocation3 + $0x40] sm:$0xff] }
 0x507   :  { %2034 = vst.msk [vmem:[#allocation3 + $0x368] sm:$0xff] %vm484_vm3, %v2007_v7  ;;  %v2258_v60 = vadd.f32 %v2257_v63, %v7005_v42 }
 0x508   :  { %2290 = vst.msk [vmem:[#allocation3 + $0x3e8] sm:$0xff] %vm484_vm3, %v2263_v26  ;;  %2033 = vst.msk [vmem:[#allocation3 + $0x360] sm:$0xff] %vm484_vm3, %v2002_v62  ;;  %v5711_v18 = vpop.f32.mrb[78].mxu1 }
 0x509   :  { %2289 = vst.msk [vmem:[#allocation3 + $0x3e0] sm:$0xff] %vm484_vm3, %v2258_v60  ;;  %v2017_v0 = vadd.f32 %v5711_v18, %v7027_v25  ;;  %v5751_v39 = vpop.f32.mrb[78].mxu0  ;;  %v2011_v17 = vpop.f32.mrb[79].mxu1  ;;  %v2304_v18 = vld [vmem:[#allocation3 + $0x58] sm:$0xff] }
 0x50a   :  { %v2273_v48 = vadd.f32 %v5751_v39, %v7027_v25  ;;  %v2012_v1 = vadd.f32 %v2011_v17, %v7023_v23  ;;  %v2267_v5 = vpop.f32.mrb[79].mxu0  ;;  %v2296_v25 = vld [vmem:[#allocation3 + $0x18] sm:$0xff]  ;;  %v2303_v17 = vld [vmem:[#allocation3 + $0x50] sm:$0xff] }
 0x50b   :  { %2036 = vst.msk [vmem:[#allocation3 + $0x378] sm:$0xff] %vm484_vm3, %v2017_v0  ;;  %v2268_v42 = vadd.f32 %v2267_v5, %v7023_v23 }
 0x50c   :  { %2292 = vst.msk [vmem:[#allocation3 + $0x3f8] sm:$0xff] %vm484_vm3, %v2273_v48  ;;  %2035 = vst.msk [vmem:[#allocation3 + $0x370] sm:$0xff] %vm484_vm3, %v2012_v1  ;;  %v5756_v6 = vpop.f32.mrb[80].mxu1 }
 0x50d   :  { %2291 = vst.msk [vmem:[#allocation3 + $0x3f0] sm:$0xff] %vm484_vm3, %v2268_v42  ;;  %v2503_v22 = vadd.f32 %v5756_v6, %v2294_v29  ;;  %v2423_v9 = vpop.f32.mrb[81].mxu1 }
 0x50e   :  { %v2502_v21 = vadd.f32 %v2423_v9, %v2293_v8  ;;  %v2306_v9 = vld [vmem:[#allocation3 + $0x68] sm:$0xff] }
 0x50f   :  { %v2519_v11 = vmul.f32 0.5, %v2503_v22 }
 0x510   :  { %v5759_v10 = vpop.f32.mrb[82].mxu1  ;;  %v2518_v20 = vmul.f32 0.5, %v2502_v21 }
 0x511   :  { %v2505_v12 = vadd.f32 %v5759_v10, %v2296_v25  ;;  %v2433_v13 = vpop.f32.mrb[83].mxu1  ;;  %6191 = vtanh.f32 %v2519_v11 }
 0x512   :  { %v2504_v23 = vadd.f32 %v2433_v13, %v2295_v14  ;;  %6193 = vtanh.f32 %v2518_v20 }
 0x513   :  { %v2521_v27 = vmul.f32 0.5, %v2505_v12  ;;  %v2305_v12 = vld [vmem:[#allocation3 + $0x60] sm:$0xff] }
 0x514   :  { %v5762_v15 = vpop.f32.mrb[84].mxu1  ;;  %v2520_v61 = vmul.f32 0.5, %v2504_v23 }
 0x515   :  { %v2507_v16 = vadd.f32 %v5762_v15, %v2298_v19  ;;  %v2443_v59 = vpop.f32.mrb[85].mxu1  ;;  %6195 = vtanh.f32 %v2521_v27 }
 0x516   :  { %v2506_v36 = vadd.f32 %v2443_v59, %v2297_v58 }
 0x517   :  { %v2523_v32 = vmul.f32 0.5, %v2507_v16 }
 0x518   :  { %v2522_v31 = vmul.f32 0.5, %v2506_v36  ;;  %v5765_v53 = vpop.f32.mrb[86].mxu1 }
 0x519   :  { %6197 = vtanh.f32 %v2523_v32  ;;  %v2509_v54 = vadd.f32 %v5765_v53, %v2300_v52  ;;  %v2453_v51 = vpop.f32.mrb[87].mxu1 }
 0x51a   :  { %6199 = vtanh.f32 %v2522_v31  ;;  %v2508_v28 = vadd.f32 %v2453_v51, %v2299_v30  ;;  %v2308_v31 = vld [vmem:[#allocation3 + $0x78] sm:$0xff] }
 0x51b   :  { %6201 = vtanh.f32 %v2520_v61  ;;  %v2525_v4 = vmul.f32 0.5, %v2509_v54  ;;  %v6192_v63 = vpop.eup %6191 }
 0x51c   :  { %v2524_v46 = vmul.f32 0.5, %v2508_v28  ;;  %v5768_v7 = vpop.f32.mrb[88].mxu1  ;;  %v6194_v60 = vpop.eup %6193  ;;  %v2535_v29 = vmul.f32 0.5, %v6192_v63  ;;  %v2307_v28 = vld [vmem:[#allocation3 + $0x70] sm:$0xff] }
 0x51d   :  { %6203 = vtanh.f32 %v2525_v4  ;;  %v2511_v56 = vadd.f32 %v5768_v7, %v2302_v55  ;;  %v2463_v26 = vpop.f32.mrb[89].mxu1  ;;  %v2534_v6 = vmul.f32 0.5, %v6194_v60 }
 0x51e   :  { %6205 = vtanh.f32 %v2524_v46  ;;  %v2510_v62 = vadd.f32 %v2463_v26, %v2301_v57  ;;  %v2543_v27 = vadd.f32 0.5, %v2535_v29 }
 0x51f   :  { %6207 = vtanh.f32 %v2511_v56  ;;  %v6196_v1 = vpop.eup %6195  ;;  %v2542_v19 = vadd.f32 0.5, %v2534_v6 }
 0x520   :  { %6209 = vtanh.f32 %v2510_v62  ;;  %v5771_v0 = vpop.f32.mrb[90].mxu1  ;;  %v2537_v59 = vmul.f32 0.5, %v6196_v1 }
 0x521   :  { %v2513_v39 = vadd.f32 %v5771_v0, %v2304_v18  ;;  %v2473_v48 = vpop.f32.mrb[91].mxu1 }
 0x522   :  { %v2512_v5 = vadd.f32 %v2473_v48, %v2303_v17  ;;  %v2545_v60 = vadd.f32 0.5, %v2537_v59 }
 0x523   :  { %v6198_v42 = vpop.eup %6197  ;;  %6211 = vtanh.f32 %v2513_v39 }
 0x524   :  { %v6200_v22 = vpop.eup %6199  ;;  %v2539_v8 = vmul.f32 0.5, %v6198_v42  ;;  %6213 = vtanh.f32 %v2512_v5  ;;  %v5774_v21 = vpop.f32.mrb[92].mxu1 }
 0x525   :  { %v6202_v25 = vpop.eup %6201  ;;  %v2538_v10 = vmul.f32 0.5, %v6200_v22  ;;  %v2515_v11 = vadd.f32 %v5774_v21, %v2306_v9  ;;  %v2483_v13 = vpop.f32.mrb[93].mxu1 }
 0x526   :  { %v2547_v20 = vadd.f32 0.5, %v2539_v8  ;;  %v2514_v14 = vadd.f32 %v2483_v13, %v2305_v12  ;;  %v2536_v36 = vmul.f32 0.5, %v6202_v25 }
 0x527   :  { %v6204_v23 = vpop.eup %6203  ;;  %v2546_v15 = vadd.f32 0.5, %v2538_v10  ;;  %v2555_v16 = vmul.f32 0.5, %v2515_v11 }
 0x528   :  { %v6206_v58 = vpop.eup %6205  ;;  %v2541_v61 = vmul.f32 0.5, %v6204_v23  ;;  %v2554_v32 = vmul.f32 0.5, %v2514_v14  ;;  %v5777_v52 = vpop.f32.mrb[94].mxu1  ;;  %v2571_v54 = vmul.f32 0.0, %v2547_v20  ;;  %v2544_v17 = vadd.f32 0.5, %v2536_v36 }
 0x529   :  { %v6208_v53 = vpop.eup %6207  ;;  %v2540_v30 = vmul.f32 0.5, %v6206_v58  ;;  %6215 = vtanh.f32 %v2555_v16  ;;  %v2517_v51 = vadd.f32 %v5777_v52, %v2308_v31  ;;  %v2493_v4 = vpop.f32.mrb[95].mxu1  ;;  %v2570_v57 = vmul.f32 0.0, %v2546_v15 }
 0x52a   :  { %v6210_v46 = vpop.eup %6209  ;;  %v2549_v55 = vadd.f32 0.5, %v2541_v61  ;;  %v2575_v7 = vmul.f32 %v6208_v53, %v2543_v27  ;;  %6217 = vtanh.f32 %v2554_v32  ;;  %v2516_v56 = vadd.f32 %v2493_v4, %v2307_v28  ;;  %v2594_v28 = vld [vmem:[#allocation3 + $0x80] sm:$0xff] }
 0x52b   :  { %v2548_v26 = vadd.f32 0.5, %v2540_v30  ;;  %v2574_v62 = vmul.f32 %v6210_v46, %v2542_v19  ;;  %v2557_v63 = vmul.f32 0.5, %v2517_v51 }
 0x52c   :  { %v7631_v18 = vadd.f32 %v2575_v7, %v2571_v54  ;;  %v2556_v0 = vmul.f32 0.5, %v2516_v56  ;;  %v2573_v5 = vmul.f32 0.0, %v2549_v55  ;;  %v2595_v54 = vld [vmem:[#allocation3 + $0x88] sm:$0xff]  ;;  %v2597_v55 = vld [vmem:[#allocation3 + $0x98] sm:$0xff] }
 0x52d   :  { %v6212_v39 = vpop.eup %6211  ;;  %v7633_v48 = vadd.f32 %v2574_v62, %v2570_v57  ;;  %6219 = vtanh.f32 %v2557_v63  ;;  %v2572_v29 = vmul.f32 0.0, %v2548_v26  ;;  %v2596_v63 = vld [vmem:[#allocation3 + $0x90] sm:$0xff] }
 0x52e   :  { %v6214_v1 = vpop.eup %6213  ;;  %6221 = vtanh.f32 %v7631_v18  ;;  %v2577_v42 = vmul.f32 %v6212_v39, %v2545_v60  ;;  %v2599_v39 = vld [vmem:[#allocation3 + $0xa8] sm:$0xff] }
 0x52f   :  { %6223 = vtanh.f32 %v7633_v48  ;;  %v2576_v6 = vmul.f32 %v6214_v1, %v2544_v17 }
 0x530   :  { %v7637_v22 = vadd.f32 %v2577_v42, %v2573_v5  ;;  %6225 = vtanh.f32 %v2556_v0  ;;  %v2598_v5 = vld [vmem:[#allocation3 + $0xa0] sm:$0xff] }
 0x531   :  { %v7639_v8 = vadd.f32 %v2576_v6, %v2572_v29 }
 0x532   :  { %6227 = vtanh.f32 %v7637_v22 }
 0x533   :  { %v6216_v9 = vpop.eup %6215  ;;  %6229 = vtanh.f32 %v7639_v8 }
 0x534   :  { %v6218_v21 = vpop.eup %6217  ;;  %v2563_v25 = vmul.f32 0.5, %v6216_v9 }
 0x535   :  { %v2562_v10 = vmul.f32 0.5, %v6218_v21 }
 0x536   :  { %v2567_v11 = vadd.f32 0.5, %v2563_v25  ;;  %v2601_v25 = vld [vmem:[#allocation3 + $0xb8] sm:$0xff] }
 0x537   :  { %v6220_v12 = vpop.eup %6219  ;;  %v2566_v13 = vadd.f32 0.5, %v2562_v10 }
 0x538   :  { %v6222_v20 = vpop.eup %6221  ;;  %v2565_v14 = vmul.f32 0.5, %v6220_v12  ;;  %v2600_v12 = vld [vmem:[#allocation3 + $0xb0] sm:$0xff] }
 0x539   :  { %v6224_v23 = vpop.eup %6223  ;;  %v2587_v27 = vmul.f32 %v6222_v20, %v2567_v11 }
 0x53a   :  { %v6226_v19 = vpop.eup %6225  ;;  %v2569_v15 = vadd.f32 0.5, %v2565_v14  ;;  %v2586_v16 = vmul.f32 %v6224_v23, %v2566_v13 }
 0x53b   :  { %v2564_v58 = vmul.f32 0.5, %v6226_v19  ;;  %2591 = vst.msk [vmem:[#allocation2 + $0x8] sm:$0xff] %vm484_vm3, %v2587_v27 }
 0x53c   :  { %v6228_v59 = vpop.eup %6227  ;;  %2590 = vst.msk [vmem:[#allocation2] sm:$0xff] %vm484_vm3, %v2586_v16  ;;  %v6066_v36 = vpack.c.bf16 %v2587_v27, %v2586_v16  ;;  %v2603_v27 = vld [vmem:[#allocation3 + $0xc8] sm:$0xff]  ;;  %v2602_v16 = vld [vmem:[#allocation3 + $0xc0] sm:$0xff] }
 0x53d   :  { %v6230_v61 = vpop.eup %6229  ;;  %v2568_v32 = vadd.f32 0.5, %v2564_v58  ;;  %v2589_v31 = vmul.f32 %v6228_v59, %v2569_v15 }
 0x53e   :  { %6067 = vmatprep.subr.bf16.mxu0 %v6066_v36 }
 0x53f   :  { %6069 = vmatpush3.bf16.msra.mxu0 %v6066_v36  ;;  %v2588_v52 = vmul.f32 %v6230_v61, %v2568_v32  ;;  %2593 = vst.msk [vmem:[#allocation2 + $0x18] sm:$0xff] %vm484_vm3, %v2589_v31  ;;  %v2605_v32 = vld [vmem:[#allocation3 + $0xd8] sm:$0xff] }
 0x541   :  { %2592 = vst.msk [vmem:[#allocation2 + $0x10] sm:$0xff] %vm484_vm3, %v2588_v52  ;;  %v6070_v53 = vpack.c.bf16 %v2589_v31, %v2588_v52 }
 0x543   :  { %6071 = vmatprep.subr.bf16.mxu0 %v6070_v53 }
 0x544   :  { %6073 = vmatpush3.bf16.msra.mxu0 %v6070_v53  ;;  %v2604_v53 = vld [vmem:[#allocation3 + $0xd0] sm:$0xff] }
 0x547   :  { %5787 = vmatmul.mubr.msk.f32.vlgmr.msra.gmra.mrb[80].mxu0 %vm290_vm2, %v7461_v33 }
 0x548   :  { %5789 = vmatprep.mubr.msk.f32.mxu0 %vm290_vm2, %v7466_v34 }
 0x54b   :  { %5790 = vmatmul.mubr.msk.f32.gmra.mrb[82].mxu0 %vm290_vm2, %v7477_v35 }
 0x54c   :  { %5792 = vmatprep.mubr.msk.f32.mxu0 %vm290_vm2, %v7482_v37 }
 0x54f   :  { %5793 = vmatmul.mubr.msk.f32.gmra.mrb[84].mxu0 %vm290_vm2, %v7491_v38 }
 0x550   :  { %5795 = vmatprep.mubr.msk.f32.mxu0 %vm290_vm2, %v7496_v40 }
 0x553   :  { %5796 = vmatmul.mubr.msk.f32.gmra.mrb[86].mxu0 %vm290_vm2, %v7505_v41 }
 0x554   :  { %5798 = vmatprep.mubr.msk.f32.mxu0 %vm290_vm2, %v7510_v43 }
 0x557   :  { %5799 = vmatmul.mubr.msk.f32.gmra.mrb[88].mxu0 %vm290_vm2, %v7519_v44 }
 0x558   :  { %5801 = vmatprep.mubr.msk.f32.mxu0 %vm290_vm2, %v7524_v45 }
 0x55b   :  { %5802 = vmatmul.mubr.msk.f32.gmra.mrb[90].mxu0 %vm290_vm2, %v7533_v47 }
 0x55c   :  { %5804 = vmatprep.mubr.msk.f32.mxu0 %vm290_vm2, %v7538_v49 }
 0x55f   :  { %5805 = vmatmul.mubr.msk.f32.gmra.mrb[92].mxu0 %vm290_vm2, %v7547_v50 }
 0x560   :  { %5807 = vmatprep.mubr.msk.f32.mxu0 %vm290_vm2, %v7552_v2 }
 0x563   :  { %5808 = vmatmul.mubr.msk.f32.gmra.mrb[94].mxu0 %vm290_vm2, %v7561_v3 }
 0x564   :  { %5850 = vmatprep.mubr.msk.f32.mxu0 %vm290_vm2, %v7449_v24 }
 0x61a   :  { %v5788_v30 = vpop.f32.mrb[80].mxu0 }
 0x61b   :  { %v2756_v51 = vadd.f32 %v5788_v30, %v2595_v54  ;;  %v2676_v4 = vpop.f32.mrb[81].mxu0 }
 0x61c   :  { %v2755_v46 = vadd.f32 %v2676_v4, %v2594_v28 }
 0x61d   :  { %v2772_v56 = vmul.f32 0.5, %v2756_v51 }
 0x61e   :  { %v5791_v7 = vpop.f32.mrb[82].mxu0  ;;  %v2771_v62 = vmul.f32 0.5, %v2755_v46 }
 0x61f   :  { %v2758_v57 = vadd.f32 %v5791_v7, %v2597_v55  ;;  %v2686_v26 = vpop.f32.mrb[83].mxu0  ;;  %6231 = vtanh.f32 %v2772_v56  ;;  %v2607_v56 = vld [vmem:[#allocation3 + $0xe8] sm:$0xff] }
 0x620   :  { %v2757_v60 = vadd.f32 %v2686_v26, %v2596_v63  ;;  %6233 = vtanh.f32 %v2771_v62 }
 0x621   :  { %v2774_v0 = vmul.f32 0.5, %v2758_v57 }
 0x622   :  { %v5794_v17 = vpop.f32.mrb[84].mxu0  ;;  %v2773_v6 = vmul.f32 0.5, %v2757_v60  ;;  %v2606_v60 = vld [vmem:[#allocation3 + $0xe0] sm:$0xff] }
 0x623   :  { %v2760_v1 = vadd.f32 %v5794_v17, %v2599_v39  ;;  %v2696_v42 = vpop.f32.mrb[85].mxu0  ;;  %6235 = vtanh.f32 %v2774_v0 }
 0x624   :  { %v2759_v29 = vadd.f32 %v2696_v42, %v2598_v5 }
 0x625   :  { %v2776_v9 = vmul.f32 0.5, %v2760_v1 }
 0x626   :  { %v2775_v21 = vmul.f32 0.5, %v2759_v29  ;;  %v5797_v10 = vpop.f32.mrb[86].mxu0 }
 0x627   :  { %6237 = vtanh.f32 %v2776_v9  ;;  %v2762_v11 = vadd.f32 %v5797_v10, %v2601_v25  ;;  %v2706_v13 = vpop.f32.mrb[87].mxu0 }
 0x628   :  { %6239 = vtanh.f32 %v2775_v21  ;;  %v2761_v20 = vadd.f32 %v2706_v13, %v2600_v12  ;;  %v2609_v12 = vld [vmem:[#allocation3 + $0xf8] sm:$0xff] }
 0x629   :  { %6241 = vtanh.f32 %v2773_v6  ;;  %v2778_v14 = vmul.f32 0.5, %v2762_v11  ;;  %v6232_v36 = vpop.eup %6231 }
 0x62a   :  { %v2777_v23 = vmul.f32 0.5, %v2761_v20  ;;  %v5800_v19 = vpop.f32.mrb[88].mxu0  ;;  %v6234_v61 = vpop.eup %6233  ;;  %v2788_v4 = vmul.f32 0.5, %v6232_v36 }
 0x62b   :  { %6243 = vtanh.f32 %v2778_v14  ;;  %v2764_v15 = vadd.f32 %v5800_v19, %v2603_v27  ;;  %v2716_v58 = vpop.f32.mrb[89].mxu0  ;;  %v2787_v46 = vmul.f32 0.5, %v6234_v61  ;;  %v2608_v19 = vld [vmem:[#allocation3 + $0xf0] sm:$0xff] }
 0x62c   :  { %6245 = vtanh.f32 %v2777_v23  ;;  %v2763_v59 = vadd.f32 %v2716_v58, %v2602_v16  ;;  %v2796_v5 = vadd.f32 0.5, %v2788_v4 }
 0x62d   :  { %6247 = vtanh.f32 %v2764_v15  ;;  %v6236_v30 = vpop.eup %6235  ;;  %v2795_v42 = vadd.f32 0.5, %v2787_v46 }
 0x62e   :  { %6249 = vtanh.f32 %v2763_v59  ;;  %v5803_v31 = vpop.f32.mrb[90].mxu0  ;;  %v2790_v21 = vmul.f32 0.5, %v6236_v30 }
 0x62f   :  { %v2766_v52 = vadd.f32 %v5803_v31, %v2605_v32  ;;  %v2726_v54 = vpop.f32.mrb[91].mxu0 }
 0x630   :  { %v2765_v51 = vadd.f32 %v2726_v54, %v2604_v53  ;;  %v2798_v53 = vadd.f32 0.5, %v2790_v21 }
 0x631   :  { %v6238_v28 = vpop.eup %6237  ;;  %6251 = vtanh.f32 %v2766_v52 }
 0x632   :  { %v6240_v55 = vpop.eup %6239  ;;  %v2792_v7 = vmul.f32 0.5, %v6238_v28  ;;  %6253 = vtanh.f32 %v2765_v51  ;;  %v5806_v57 = vpop.f32.mrb[92].mxu0 }
 0x633   :  { %v6242_v26 = vpop.eup %6241  ;;  %v2791_v62 = vmul.f32 0.5, %v6240_v55  ;;  %v2768_v63 = vadd.f32 %v5806_v57, %v2607_v56  ;;  %v2736_v0 = vpop.f32.mrb[93].mxu0 }
 0x634   :  { %v2800_v39 = vadd.f32 0.5, %v2792_v7  ;;  %v2767_v17 = vadd.f32 %v2736_v0, %v2606_v60  ;;  %v2789_v25 = vmul.f32 0.5, %v6242_v26 }
 0x635   :  { %v6244_v1 = vpop.eup %6243  ;;  %v2799_v29 = vadd.f32 0.5, %v2791_v62  ;;  %v2808_v6 = vmul.f32 0.5, %v2768_v63 }
 0x636   :  { %v6246_v9 = vpop.eup %6245  ;;  %v2794_v10 = vmul.f32 0.5, %v6244_v1  ;;  %v2807_v11 = vmul.f32 0.5, %v2767_v17  ;;  %v5809_v13 = vpop.f32.mrb[94].mxu0  ;;  %v2824_v14 = vmul.f32 %v2800_v39, %v7631_v18  ;;  %v2797_v51 = vadd.f32 0.5, %v2789_v25 }
 0x637   :  { %v6248_v20 = vpop.eup %6247  ;;  %v2793_v23 = vmul.f32 0.5, %v6246_v9  ;;  %6255 = vtanh.f32 %v2808_v6  ;;  %v2770_v27 = vadd.f32 %v5809_v13, %v2609_v12  ;;  %v2746_v15 = vpop.f32.mrb[95].mxu0  ;;  %v2823_v61 = vmul.f32 %v2799_v29, %v7633_v48 }
 0x638   :  { %v6250_v16 = vpop.eup %6249  ;;  %v2802_v58 = vadd.f32 0.5, %v2794_v10  ;;  %v2828_v59 = vmul.f32 %v6248_v20, %v2796_v5  ;;  %6257 = vtanh.f32 %v2807_v11  ;;  %v2769_v36 = vadd.f32 %v2746_v15, %v2608_v19 }
 0x639   :  { %v2801_v32 = vadd.f32 0.5, %v2793_v23  ;;  %v2827_v31 = vmul.f32 %v6250_v16, %v2795_v42  ;;  %v2810_v52 = vmul.f32 0.5, %v2770_v27  ;;  %v2853_v23 = vld [vmem:[#allocation3 + $0x128] sm:$0xff] }
 0x63a   :  { %v7681_v54 = vadd.f32 %v2828_v59, %v2824_v14  ;;  %v2809_v30 = vmul.f32 0.5, %v2769_v36  ;;  %v2826_v46 = vmul.f32 %v2802_v58, %v7637_v22  ;;  %v2855_v36 = vld [vmem:[#allocation3 + $0x138] sm:$0xff] }
 0x63b   :  { %v6252_v18 = vpop.eup %6251  ;;  %v7683_v28 = vadd.f32 %v2827_v31, %v2823_v61  ;;  %6259 = vtanh.f32 %v2810_v52  ;;  %v2825_v48 = vmul.f32 %v2801_v32, %v7639_v8  ;;  %v2854_v31 = vld [vmem:[#allocation3 + $0x130] sm:$0xff] }
 0x63c   :  { %v6254_v4 = vpop.eup %6253  ;;  %6261 = vtanh.f32 %v7681_v54  ;;  %v2830_v55 = vmul.f32 %v6252_v18, %v2798_v53 }
 0x63d   :  { %6263 = vtanh.f32 %v7683_v28  ;;  %v2829_v7 = vmul.f32 %v6254_v4, %v2797_v51  ;;  %v2857_v51 = vld [vmem:[#allocation3 + $0x148] sm:$0xff] }
 0x63e   :  { %v7689_v56 = vadd.f32 %v2830_v55, %v2826_v46  ;;  %6265 = vtanh.f32 %v2809_v30  ;;  %v2856_v55 = vld [vmem:[#allocation3 + $0x140] sm:$0xff] }
 0x63f   :  { %v7691_v57 = vadd.f32 %v2829_v7, %v2825_v48 }
 0x640   :  { %6267 = vtanh.f32 %v7689_v56 }
 0x641   :  { %v6256_v26 = vpop.eup %6255  ;;  %6269 = vtanh.f32 %v7691_v57 }
 0x642   :  { %v6258_v62 = vpop.eup %6257  ;;  %v2816_v22 = vmul.f32 0.5, %v6256_v26 }
 0x643   :  { %v2815_v63 = vmul.f32 0.5, %v6258_v62 }
 0x644   :  { %v2820_v60 = vadd.f32 0.5, %v2816_v22  ;;  %v2859_v22 = vld [vmem:[#allocation3 + $0x158] sm:$0xff] }
 0x645   :  { %v6260_v0 = vpop.eup %6259  ;;  %v2819_v39 = vadd.f32 0.5, %v2815_v63 }
 0x646   :  { %v6262_v8 = vpop.eup %6261  ;;  %v2818_v17 = vmul.f32 0.5, %v6260_v0  ;;  %v2858_v0 = vld [vmem:[#allocation3 + $0x150] sm:$0xff] }
 0x647   :  { %v6264_v1 = vpop.eup %6263  ;;  %v2840_v5 = vmul.f32 %v6262_v8, %v2820_v60 }
 0x648   :  { %v6266_v42 = vpop.eup %6265  ;;  %v2822_v29 = vadd.f32 0.5, %v2818_v17  ;;  %v2839_v6 = vmul.f32 %v6264_v1, %v2819_v39 }
 0x649   :  { %v2817_v9 = vmul.f32 0.5, %v6266_v42  ;;  %2845 = vst.msk [vmem:[#allocation2 + $0x28] sm:$0xff] %vm484_vm3, %v2840_v5 }
 0x64a   :  { %v6268_v21 = vpop.eup %6267  ;;  %2844 = vst.msk [vmem:[#allocation2 + $0x20] sm:$0xff] %vm484_vm3, %v2839_v6  ;;  %v6074_v25 = vpack.c.bf16 %v2840_v5, %v2839_v6 }
 0x64b   :  { %v6270_v10 = vpop.eup %6269  ;;  %v2821_v11 = vadd.f32 0.5, %v2817_v9  ;;  %v2842_v12 = vmul.f32 %v6268_v21, %v2822_v29  ;;  %v2861_v9 = vld [vmem:[#allocation3 + $0x168] sm:$0xff] }
 0x64c   :  { %6075 = vmatprep.subr.bf16.mxu1 %v6074_v25 }
 0x64d   :  { %6077 = vmatpush3.bf16.msra.mxu1 %v6074_v25  ;;  %v2841_v13 = vmul.f32 %v6270_v10, %v2821_v11  ;;  %2847 = vst.msk [vmem:[#allocation2 + $0x38] sm:$0xff] %vm484_vm3, %v2842_v12 }
 0x64f   :  { %2846 = vst.msk [vmem:[#allocation2 + $0x30] sm:$0xff] %vm484_vm3, %v2841_v13  ;;  %v6078_v20 = vpack.c.bf16 %v2842_v12, %v2841_v13  ;;  %v2860_v12 = vld [vmem:[#allocation3 + $0x160] sm:$0xff] }
 0x651   :  { %6079 = vmatprep.subr.bf16.mxu1 %v6078_v20 }
 0x652   :  { %6081 = vmatpush3.bf16.msra.mxu1 %v6078_v20 }
 0x655   :  { %5819 = vmatmul.mubr.msk.f32.vlgmr.msra.gmra.mrb[96].mxu1 %vm290_vm2, %v7461_v33  ;;  %v2849_v33 = vld [vmem:[#allocation3 + $0x108] sm:$0xff] }
 0x656   :  { %5821 = vmatprep.mubr.msk.f32.mxu1 %vm290_vm2, %v7466_v34 }
 0x659   :  { %5822 = vmatmul.mubr.msk.f32.gmra.mrb[98].mxu1 %vm290_vm2, %v7477_v35 }
 0x65a   :  { %5824 = vmatprep.mubr.msk.f32.mxu1 %vm290_vm2, %v7482_v37  ;;  %v2848_v37 = vld [vmem:[#allocation3 + $0x100] sm:$0xff] }
 0x65d   :  { %5825 = vmatmul.mubr.msk.f32.gmra.mrb[100].mxu1 %vm290_vm2, %v7491_v38 }
 0x65e   :  { %5827 = vmatprep.mubr.msk.f32.mxu1 %vm290_vm2, %v7496_v40 }
 0x661   :  { %5828 = vmatmul.mubr.msk.f32.gmra.mrb[102].mxu1 %vm290_vm2, %v7505_v41  ;;  %v2851_v41 = vld [vmem:[#allocation3 + $0x118] sm:$0xff] }
 0x662   :  { %5830 = vmatprep.mubr.msk.f32.mxu1 %vm290_vm2, %v7510_v43 }
 0x665   :  { %5831 = vmatmul.mubr.msk.f32.gmra.mrb[104].mxu1 %vm290_vm2, %v7519_v44 }
 0x666   :  { %5833 = vmatprep.mubr.msk.f32.mxu1 %vm290_vm2, %v7524_v45 }
 0x669   :  { %5834 = vmatmul.mubr.msk.f32.gmra.mrb[106].mxu1 %vm290_vm2, %v7533_v47 }
 0x66a   :  { %5836 = vmatprep.mubr.msk.f32.mxu1 %vm290_vm2, %v7538_v49 }
 0x66d   :  { %5837 = vmatmul.mubr.msk.f32.gmra.mrb[108].mxu1 %vm290_vm2, %v7547_v50  ;;  %v2850_v50 = vld [vmem:[#allocation3 + $0x110] sm:$0xff] }
 0x66e   :  { %5839 = vmatprep.mubr.msk.f32.mxu1 %vm290_vm2, %v7552_v2 }
 0x671   :  { %5840 = vmatmul.mubr.msk.f32.gmra.mrb[110].mxu1 %vm290_vm2, %v7561_v3 }
 0x672   :  { %5882 = vmatprep.mubr.msk.f32.mxu1 %vm290_vm2, %v7449_v24  ;;  %v2852_v24 = vld [vmem:[#allocation3 + $0x120] sm:$0xff] }
 0x728   :  { %v5820_v34 = vpop.f32.mrb[96].mxu1 }
 0x729   :  { %v3010_v35 = vadd.f32 %v5820_v34, %v2849_v33  ;;  %v2930_v38 = vpop.f32.mrb[97].mxu1 }
 0x72a   :  { %v3009_v40 = vadd.f32 %v2930_v38, %v2848_v37 }
 0x72b   :  { %v3026_v44 = vmul.f32 0.5, %v3010_v35 }
 0x72c   :  { %v5823_v43 = vpop.f32.mrb[98].mxu1  ;;  %v3025_v49 = vmul.f32 0.5, %v3009_v40 }
 0x72d   :  { %v3012_v45 = vadd.f32 %v5823_v43, %v2851_v41  ;;  %v2940_v47 = vpop.f32.mrb[99].mxu1  ;;  %6271 = vtanh.f32 %v3026_v44 }
 0x72e   :  { %v3011_v2 = vadd.f32 %v2940_v47, %v2850_v50  ;;  %6273 = vtanh.f32 %v3025_v49  ;;  %v2863_v49 = vld [vmem:[#allocation3 + $0x178] sm:$0xff] }
 0x72f   :  { %v3028_v14 = vmul.f32 0.5, %v3012_v45 }
 0x730   :  { %v5826_v3 = vpop.f32.mrb[100].mxu1  ;;  %v3027_v16 = vmul.f32 0.5, %v3011_v2 }
 0x731   :  { %v3014_v27 = vadd.f32 %v5826_v3, %v2853_v23  ;;  %v2950_v19 = vpop.f32.mrb[101].mxu1  ;;  %6275 = vtanh.f32 %v3028_v14 }
 0x732   :  { %v3013_v15 = vadd.f32 %v2950_v19, %v2852_v24 }
 0x733   :  { %v3030_v58 = vmul.f32 0.5, %v3014_v27  ;;  %v2862_v27 = vld [vmem:[#allocation3 + $0x170] sm:$0xff] }
 0x734   :  { %v3029_v59 = vmul.f32 0.5, %v3013_v15  ;;  %v5829_v61 = vpop.f32.mrb[102].mxu1 }
 0x735   :  { %6277 = vtanh.f32 %v3030_v58  ;;  %v3016_v32 = vadd.f32 %v5829_v61, %v2855_v36  ;;  %v2960_v52 = vpop.f32.mrb[103].mxu1 }
 0x736   :  { %6279 = vtanh.f32 %v3029_v59  ;;  %v3015_v53 = vadd.f32 %v2960_v52, %v2854_v31 }
 0x737   :  { %6281 = vtanh.f32 %v3027_v16  ;;  %v3032_v30 = vmul.f32 0.5, %v3016_v32  ;;  %v6272_v26 = vpop.eup %6271 }
 0x738   :  { %v3031_v18 = vmul.f32 0.5, %v3015_v53  ;;  %v5832_v4 = vpop.f32.mrb[104].mxu1  ;;  %v6274_v62 = vpop.eup %6273  ;;  %v3042_v5 = vmul.f32 0.5, %v6272_v26 }
 0x739   :  { %6283 = vtanh.f32 %v3032_v30  ;;  %v3018_v46 = vadd.f32 %v5832_v4, %v2857_v51  ;;  %v2970_v48 = vpop.f32.mrb[105].mxu1  ;;  %v3041_v42 = vmul.f32 0.5, %v6274_v62 }
 0x73a   :  { %6285 = vtanh.f32 %v3031_v18  ;;  %v3017_v7 = vadd.f32 %v2970_v48, %v2856_v55  ;;  %v3050_v35 = vadd.f32 0.5, %v3042_v5 }
 0x73b   :  { %6287 = vtanh.f32 %v3018_v46  ;;  %v6276_v8 = vpop.eup %6275  ;;  %v3049_v37 = vadd.f32 0.5, %v3041_v42 }
 0x73c   :  { %6289 = vtanh.f32 %v3017_v7  ;;  %v5835_v63 = vpop.f32.mrb[106].mxu1  ;;  %v3044_v43 = vmul.f32 0.5, %v6276_v8 }
 0x73d   :  { %v3020_v60 = vadd.f32 %v5835_v63, %v2859_v22  ;;  %v2980_v39 = vpop.f32.mrb[107].mxu1 }
 0x73e   :  { %v3019_v17 = vadd.f32 %v2980_v39, %v2858_v0  ;;  %v3052_v31 = vadd.f32 0.5, %v3044_v43  ;;  %v7817_v43 = vld [vmem:[%s8231_s5 + $0x50] sm:$0xff] }
 0x73f   :  { %v6278_v1 = vpop.eup %6277  ;;  %6291 = vtanh.f32 %v3020_v60 }
 0x740   :  { %v6280_v29 = vpop.eup %6279  ;;  %v3046_v6 = vmul.f32 0.5, %v6278_v1  ;;  %6293 = vtanh.f32 %v3019_v17  ;;  %v5838_v21 = vpop.f32.mrb[108].mxu1 }
 0x741   :  { %v6282_v25 = vpop.eup %6281  ;;  %v3045_v10 = vmul.f32 0.5, %v6280_v29  ;;  %v3022_v11 = vadd.f32 %v5838_v21, %v2861_v9  ;;  %v2990_v13 = vpop.f32.mrb[109].mxu1 }
 0x742   :  { %v3054_v20 = vadd.f32 0.5, %v3046_v6  ;;  %v3021_v33 = vadd.f32 %v2990_v13, %v2860_v12  ;;  %v3043_v44 = vmul.f32 0.5, %v6282_v25  ;;  %v7754_v13 = vld [vmem:[%s8231_s5 + $0x8] sm:$0xff] }
 0x743   :  { %v6284_v34 = vpop.eup %6283  ;;  %v3053_v38 = vadd.f32 0.5, %v3045_v10  ;;  %v3062_v40 = vmul.f32 0.5, %v3022_v11 }
 0x744   :  { %v6286_v41 = vpop.eup %6285  ;;  %v3048_v45 = vmul.f32 0.5, %v6284_v34  ;;  %v3061_v47 = vmul.f32 0.5, %v3021_v33  ;;  %v5841_v50 = vpop.f32.mrb[110].mxu1  ;;  %v3078_v14 = vmul.f32 %v3054_v20, %v7681_v54  ;;  %v3051_v30 = vadd.f32 0.5, %v3043_v44  ;;  %v7761_v20 = vld [vmem:[%s8231_s5 + $0x10] sm:$0xff]  ;;  %v7768_v33 = vld [vmem:[%s8231_s5 + $0x18] sm:$0xff] }
 0x745   :  { %v6288_v2 = vpop.eup %6287  ;;  %v3047_v23 = vmul.f32 0.5, %v6286_v41  ;;  %6295 = vtanh.f32 %v3062_v40  ;;  %v3024_v3 = vadd.f32 %v5841_v50, %v2863_v49  ;;  %v3000_v24 = vpop.f32.mrb[111].mxu1  ;;  %v3077_v59 = vmul.f32 %v3053_v38, %v7683_v28  ;;  %v7775_v34 = vld [vmem:[%s8231_s5 + $0x20] sm:$0xff]  ;;  %v7796_v38 = vld [vmem:[%s8231_s5 + $0x38] sm:$0xff]  ;;  %v7810_v41 = vld [vmem:[%s8231_s5 + $0x48] sm:$0xff] }
 0x746   :  { %v6290_v19 = vpop.eup %6289  ;;  %v3056_v15 = vadd.f32 0.5, %v3048_v45  ;;  %v3082_v16 = vmul.f32 %v6288_v2, %v3050_v35  ;;  %6297 = vtanh.f32 %v3061_v47  ;;  %v3023_v58 = vadd.f32 %v3000_v24, %v2862_v27  ;;  %v7782_v35 = vld [vmem:[%s8231_s5 + $0x28] sm:$0xff]  ;;  %v7803_v40 = vld [vmem:[%s8231_s5 + $0x40] sm:$0xff]  ;;  %v7824_v44 = vld [vmem:[%s8231_s5 + $0x58] sm:$0xff] }
 0x747   :  { %v3055_v36 = vadd.f32 0.5, %v3047_v23  ;;  %v3081_v61 = vmul.f32 %v6290_v19, %v3049_v37  ;;  %v3064_v32 = vmul.f32 0.5, %v3024_v3  ;;  %v7789_v37 = vld [vmem:[%s8231_s5 + $0x30] sm:$0xff]  ;;  %v7831_v45 = vld [vmem:[%s8231_s5 + $0x60] sm:$0xff]  ;;  %v7838_v47 = vld [vmem:[%s8231_s5 + $0x68] sm:$0xff] }
 0x748   :  { %v7733_v52 = vadd.f32 %v3082_v16, %v3078_v14  ;;  %v3063_v53 = vmul.f32 0.5, %v3023_v58  ;;  %v3080_v4 = vmul.f32 %v3056_v15, %v7689_v56  ;;  %v7845_v49 = vld [vmem:[%s8231_s5 + $0x70] sm:$0xff]  ;;  %v7852_v50 = vld [vmem:[%s8231_s5 + $0x78] sm:$0xff]  ;;  %v7859_v2 = vld [vmem:[%s8231_s5] sm:$0xff] }
 0x749   :  { %v6292_v54 = vpop.eup %6291  ;;  %v7735_v18 = vadd.f32 %v3081_v61, %v3077_v59  ;;  %6299 = vtanh.f32 %v3064_v32  ;;  %v3079_v28 = vmul.f32 %v3055_v36, %v7691_v57  ;;  %v3103_v14 = vld [vmem:[#allocation3 + $0x188] sm:$0xff]  ;;  %v3102_v27 = vld [vmem:[#allocation3 + $0x180] sm:$0xff]  ;;  %v3105_v15 = vld [vmem:[#allocation3 + $0x198] sm:$0xff] }
 0x74a   :  { %v6294_v51 = vpop.eup %6293  ;;  %6301 = vtanh.f32 %v7733_v52  ;;  %v3084_v46 = vmul.f32 %v6292_v54, %v3052_v31  ;;  %v3104_v32 = vld [vmem:[#allocation3 + $0x190] sm:$0xff]  ;;  %v3107_v54 = vld [vmem:[#allocation3 + $0x1a8] sm:$0xff] }
 0x74b   :  { %6303 = vtanh.f32 %v7735_v18  ;;  %v3083_v55 = vmul.f32 %v6294_v51, %v3051_v30 }
 0x74c   :  { %v7741_v48 = vadd.f32 %v3084_v46, %v3080_v4  ;;  %6305 = vtanh.f32 %v3063_v53  ;;  %v3106_v4 = vld [vmem:[#allocation3 + $0x1a0] sm:$0xff] }
 0x74d   :  { %v7743_v7 = vadd.f32 %v3083_v55, %v3079_v28 }
 0x74e   :  { %6307 = vtanh.f32 %v7741_v48 }
 0x74f   :  { %v6296_v26 = vpop.eup %6295  ;;  %6309 = vtanh.f32 %v7743_v7 }
 0x750   :  { %v6298_v62 = vpop.eup %6297  ;;  %v3070_v56 = vmul.f32 0.5, %v6296_v26 }
 0x751   :  { %v3069_v22 = vmul.f32 0.5, %v6298_v62 }
 0x752   :  { %v3074_v63 = vadd.f32 0.5, %v3070_v56  ;;  %v3109_v56 = vld [vmem:[#allocation3 + $0x1b8] sm:$0xff] }
 0x753   :  { %v6300_v60 = vpop.eup %6299  ;;  %v3073_v0 = vadd.f32 0.5, %v3069_v22 }
 0x754   :  { %v6302_v57 = vpop.eup %6301  ;;  %v3072_v39 = vmul.f32 0.5, %v6300_v60  ;;  %v3108_v60 = vld [vmem:[#allocation3 + $0x1b0] sm:$0xff] }
 0x755   :  { %v6304_v8 = vpop.eup %6303  ;;  %v3094_v17 = vmul.f32 %v6302_v57, %v3074_v63 }
 0x756   :  { %v6306_v1 = vpop.eup %6305  ;;  %v3076_v5 = vadd.f32 0.5, %v3072_v39  ;;  %v3093_v42 = vmul.f32 %v6304_v8, %v3073_v0 }
 0x757   :  { %v3071_v29 = vmul.f32 0.5, %v6306_v1  ;;  %3099 = vst.msk [vmem:[#allocation2 + $0x48] sm:$0xff] %vm484_vm3, %v3094_v17 }
 0x758   :  { %v6308_v6 = vpop.eup %6307  ;;  %3098 = vst.msk [vmem:[#allocation2 + $0x40] sm:$0xff] %vm484_vm3, %v3093_v42  ;;  %v6082_v9 = vpack.c.bf16 %v3094_v17, %v3093_v42  ;;  %v3111_v17 = vld [vmem:[#allocation3 + $0x1c8] sm:$0xff]  ;;  %v3110_v42 = vld [vmem:[#allocation3 + $0x1c0] sm:$0xff] }
 0x759   :  { %v6310_v21 = vpop.eup %6309  ;;  %v3075_v25 = vadd.f32 0.5, %v3071_v29  ;;  %v3096_v10 = vmul.f32 %v6308_v6, %v3076_v5 }
 0x75a   :  { %6083 = vmatprep.subr.bf16.mxu0 %v6082_v9 }
 0x75b   :  { %6085 = vmatpush3.bf16.msra.mxu0 %v6082_v9  ;;  %v3095_v11 = vmul.f32 %v6310_v21, %v3075_v25  ;;  %3101 = vst.msk [vmem:[#allocation2 + $0x58] sm:$0xff] %vm484_vm3, %v3096_v10  ;;  %v3113_v25 = vld [vmem:[#allocation3 + $0x1d8] sm:$0xff] }
 0x75d   :  { %3100 = vst.msk [vmem:[#allocation2 + $0x50] sm:$0xff] %vm484_vm3, %v3095_v11  ;;  %v6086_v12 = vpack.c.bf16 %v3096_v10, %v3095_v11 }
 0x75f   :  { %6087 = vmatprep.subr.bf16.mxu0 %v6086_v12 }
 0x760   :  { %6089 = vmatpush3.bf16.msra.mxu0 %v6086_v12  ;;  %v3112_v12 = vld [vmem:[#allocation3 + $0x1d0] sm:$0xff] }
 0x763   :  { %5851 = vmatmul.mubr.msk.f32.vlgmr.msra.gmra.mrb[96].mxu0 %vm290_vm2, %v7754_v13 }
 0x764   :  { %5853 = vmatprep.mubr.msk.f32.mxu0 %vm290_vm2, %v7761_v20 }
 0x767   :  { %5854 = vmatmul.mubr.msk.f32.gmra.mrb[98].mxu0 %vm290_vm2, %v7768_v33 }
 0x768   :  { %5856 = vmatprep.mubr.msk.f32.mxu0 %vm290_vm2, %v7775_v34 }
 0x76b   :  { %5857 = vmatmul.mubr.msk.f32.gmra.mrb[100].mxu0 %vm290_vm2, %v7782_v35 }
 0x76c   :  { %5859 = vmatprep.mubr.msk.f32.mxu0 %vm290_vm2, %v7789_v37 }
 0x76f   :  { %5860 = vmatmul.mubr.msk.f32.gmra.mrb[102].mxu0 %vm290_vm2, %v7796_v38 }
 0x770   :  { %5862 = vmatprep.mubr.msk.f32.mxu0 %vm290_vm2, %v7803_v40 }
 0x773   :  { %5863 = vmatmul.mubr.msk.f32.gmra.mrb[104].mxu0 %vm290_vm2, %v7810_v41 }
 0x774   :  { %5865 = vmatprep.mubr.msk.f32.mxu0 %vm290_vm2, %v7817_v43 }
 0x777   :  { %5866 = vmatmul.mubr.msk.f32.gmra.mrb[106].mxu0 %vm290_vm2, %v7824_v44 }
 0x778   :  { %5868 = vmatprep.mubr.msk.f32.mxu0 %vm290_vm2, %v7831_v45 }
 0x77b   :  { %5869 = vmatmul.mubr.msk.f32.gmra.mrb[108].mxu0 %vm290_vm2, %v7838_v47 }
 0x77c   :  { %5871 = vmatprep.mubr.msk.f32.mxu0 %vm290_vm2, %v7845_v49 }
 0x77f   :  { %5872 = vmatmul.mubr.msk.f32.gmra.mrb[110].mxu0 %vm290_vm2, %v7852_v50 }
 0x780   :  { %5914 = vmatprep.mubr.msk.f32.mxu0 %vm290_vm2, %v7859_v2 }
 0x836   :  { %v5852_v23 = vpop.f32.mrb[96].mxu0 }
 0x837   :  { %v3264_v3 = vadd.f32 %v5852_v23, %v3103_v14  ;;  %v3184_v24 = vpop.f32.mrb[97].mxu0 }
 0x838   :  { %v3263_v19 = vadd.f32 %v3184_v24, %v3102_v27 }
 0x839   :  { %v3280_v58 = vmul.f32 0.5, %v3264_v3 }
 0x83a   :  { %v5855_v16 = vpop.f32.mrb[98].mxu0  ;;  %v3279_v61 = vmul.f32 0.5, %v3263_v19 }
 0x83b   :  { %v3266_v59 = vadd.f32 %v5855_v16, %v3105_v15  ;;  %v3194_v36 = vpop.f32.mrb[99].mxu0  ;;  %6311 = vtanh.f32 %v3280_v58  ;;  %v3115_v58 = vld [vmem:[#allocation3 + $0x1e8] sm:$0xff] }
 0x83c   :  { %v3265_v31 = vadd.f32 %v3194_v36, %v3104_v32  ;;  %6313 = vtanh.f32 %v3279_v61 }
 0x83d   :  { %v3282_v53 = vmul.f32 0.5, %v3266_v59 }
 0x83e   :  { %v5858_v30 = vpop.f32.mrb[100].mxu0  ;;  %v3281_v55 = vmul.f32 0.5, %v3265_v31  ;;  %v3114_v31 = vld [vmem:[#allocation3 + $0x1e0] sm:$0xff] }
 0x83f   :  { %v3268_v51 = vadd.f32 %v5858_v30, %v3107_v54  ;;  %v3204_v46 = vpop.f32.mrb[101].mxu0  ;;  %6315 = vtanh.f32 %v3282_v53 }
 0x840   :  { %v3267_v28 = vadd.f32 %v3204_v46, %v3106_v4 }
 0x841   :  { %v3284_v26 = vmul.f32 0.5, %v3268_v51 }
 0x842   :  { %v3283_v62 = vmul.f32 0.5, %v3267_v28  ;;  %v5861_v22 = vpop.f32.mrb[102].mxu0 }
 0x843   :  { %6317 = vtanh.f32 %v3284_v26  ;;  %v3270_v63 = vadd.f32 %v5861_v22, %v3109_v56  ;;  %v3214_v0 = vpop.f32.mrb[103].mxu0 }
 0x844   :  { %6319 = vtanh.f32 %v3283_v62  ;;  %v3269_v57 = vadd.f32 %v3214_v0, %v3108_v60  ;;  %v3117_v60 = vld [vmem:[#allocation3 + $0x1f8] sm:$0xff] }
 0x845   :  { %6321 = vtanh.f32 %v3281_v55  ;;  %v3286_v39 = vmul.f32 0.5, %v3270_v63  ;;  %v6312_v9 = vpop.eup %6311 }
 0x846   :  { %v3285_v8 = vmul.f32 0.5, %v3269_v57  ;;  %v5864_v1 = vpop.f32.mrb[104].mxu0  ;;  %v6314_v21 = vpop.eup %6313  ;;  %v3296_v24 = vmul.f32 0.5, %v6312_v9 }
 0x847   :  { %6323 = vtanh.f32 %v3286_v39  ;;  %v3272_v5 = vadd.f32 %v5864_v1, %v3111_v17  ;;  %v3224_v29 = vpop.f32.mrb[105].mxu0  ;;  %v3295_v19 = vmul.f32 0.5, %v6314_v21  ;;  %v3116_v1 = vld [vmem:[#allocation3 + $0x1f0] sm:$0xff] }
 0x848   :  { %6325 = vtanh.f32 %v3285_v8  ;;  %v3271_v6 = vadd.f32 %v3224_v29, %v3110_v42  ;;  %v3304_v4 = vadd.f32 0.5, %v3296_v24 }
 0x849   :  { %6327 = vtanh.f32 %v3272_v5  ;;  %v6316_v23 = vpop.eup %6315  ;;  %v3303_v46 = vadd.f32 0.5, %v3295_v19 }
 0x84a   :  { %6329 = vtanh.f32 %v3271_v6  ;;  %v5867_v10 = vpop.f32.mrb[106].mxu0  ;;  %v3298_v62 = vmul.f32 0.5, %v6316_v23 }
 0x84b   :  { %v3274_v11 = vadd.f32 %v5867_v10, %v3113_v25  ;;  %v3234_v14 = vpop.f32.mrb[107].mxu0 }
 0x84c   :  { %v3273_v3 = vadd.f32 %v3234_v14, %v3112_v12  ;;  %v3306_v12 = vadd.f32 0.5, %v3298_v62 }
 0x84d   :  { %v6318_v27 = vpop.eup %6317  ;;  %6331 = vtanh.f32 %v3274_v11 }
 0x84e   :  { %v6320_v15 = vpop.eup %6319  ;;  %v3300_v16 = vmul.f32 0.5, %v6318_v27  ;;  %6333 = vtanh.f32 %v3273_v3  ;;  %v5870_v59 = vpop.f32.mrb[108].mxu0 }
 0x84f   :  { %v6322_v36 = vpop.eup %6321  ;;  %v3299_v61 = vmul.f32 0.5, %v6320_v15  ;;  %v3276_v32 = vadd.f32 %v5870_v59, %v3115_v58  ;;  %v3244_v53 = vpop.f32.mrb[109].mxu0 }
 0x850   :  { %v3308_v54 = vadd.f32 0.5, %v3300_v16  ;;  %v3275_v30 = vadd.f32 %v3244_v53, %v3114_v31  ;;  %v3297_v56 = vmul.f32 0.5, %v6322_v36 }
 0x851   :  { %v6324_v51 = vpop.eup %6323  ;;  %v3307_v28 = vadd.f32 0.5, %v3299_v61  ;;  %v3316_v55 = vmul.f32 0.5, %v3276_v32 }
 0x852   :  { %v6326_v26 = vpop.eup %6325  ;;  %v3302_v22 = vmul.f32 0.5, %v6324_v51  ;;  %v3315_v63 = vmul.f32 0.5, %v3275_v30  ;;  %v5873_v0 = vpop.f32.mrb[110].mxu0  ;;  %v3332_v39 = vmul.f32 %v3308_v54, %v7733_v52  ;;  %v3305_v3 = vadd.f32 0.5, %v3297_v56 }
 0x853   :  { %v6328_v57 = vpop.eup %6327  ;;  %v3301_v8 = vmul.f32 0.5, %v6326_v26  ;;  %6335 = vtanh.f32 %v3316_v55  ;;  %v3278_v17 = vadd.f32 %v5873_v0, %v3117_v60  ;;  %v3254_v5 = vpop.f32.mrb[111].mxu0  ;;  %v3331_v21 = vmul.f32 %v3307_v28, %v7735_v18 }
 0x854   :  { %v6330_v42 = vpop.eup %6329  ;;  %v3310_v29 = vadd.f32 0.5, %v3302_v22  ;;  %v3336_v6 = vmul.f32 %v6328_v57, %v3304_v4  ;;  %6337 = vtanh.f32 %v3315_v63  ;;  %v3277_v9 = vadd.f32 %v3254_v5, %v3116_v1  ;;  %v3356_v1 = vld [vmem:[#allocation3 + $0x200] sm:$0xff] }
 0x855   :  { %v3309_v25 = vadd.f32 0.5, %v3301_v8  ;;  %v3335_v10 = vmul.f32 %v6330_v42, %v3303_v46  ;;  %v3318_v11 = vmul.f32 0.5, %v3278_v17 }
 0x856   :  { %v7865_v14 = vadd.f32 %v3336_v6, %v3332_v39  ;;  %v3317_v23 = vmul.f32 0.5, %v3277_v9  ;;  %v3334_v19 = vmul.f32 %v3310_v29, %v7741_v48  ;;  %v3357_v39 = vld [vmem:[#allocation3 + $0x208] sm:$0xff]  ;;  %v3359_v29 = vld [vmem:[#allocation3 + $0x218] sm:$0xff] }
 0x857   :  { %v6332_v52 = vpop.eup %6331  ;;  %v7867_v27 = vadd.f32 %v3335_v10, %v3331_v21  ;;  %6339 = vtanh.f32 %v3318_v11  ;;  %v3333_v18 = vmul.f32 %v3309_v25, %v7743_v7  ;;  %v3358_v11 = vld [vmem:[#allocation3 + $0x210] sm:$0xff] }
 0x858   :  { %v6334_v24 = vpop.eup %6333  ;;  %6341 = vtanh.f32 %v7865_v14  ;;  %v3338_v15 = vmul.f32 %v6332_v52, %v3306_v12  ;;  %v3361_v52 = vld [vmem:[#allocation3 + $0x228] sm:$0xff] }
 0x859   :  { %6343 = vtanh.f32 %v7867_v27  ;;  %v3337_v16 = vmul.f32 %v6334_v24, %v3305_v3 }
 0x85a   :  { %v7873_v58 = vadd.f32 %v3338_v15, %v3334_v19  ;;  %6345 = vtanh.f32 %v3317_v23  ;;  %v3360_v19 = vld [vmem:[#allocation3 + $0x220] sm:$0xff] }
 0x85b   :  { %v7875_v59 = vadd.f32 %v3337_v16, %v3333_v18 }
 0x85c   :  { %6347 = vtanh.f32 %v7873_v58 }
 0x85d   :  { %v6336_v36 = vpop.eup %6335  ;;  %6349 = vtanh.f32 %v7875_v59 }
 0x85e   :  { %v6338_v61 = vpop.eup %6337  ;;  %v3324_v48 = vmul.f32 0.5, %v6336_v36 }
 0x85f   :  { %v3323_v32 = vmul.f32 0.5, %v6338_v61 }
 0x860   :  { %v3328_v31 = vadd.f32 0.5, %v3324_v48  ;;  %v3363_v48 = vld [vmem:[#allocation3 + $0x238] sm:$0xff] }
 0x861   :  { %v6340_v53 = vpop.eup %6339  ;;  %v3327_v54 = vadd.f32 0.5, %v3323_v32 }
 0x862   :  { %v6342_v7 = vpop.eup %6341  ;;  %v3326_v30 = vmul.f32 0.5, %v6340_v53  ;;  %v3362_v53 = vld [vmem:[#allocation3 + $0x230] sm:$0xff] }
 0x863   :  { %v6344_v51 = vpop.eup %6343  ;;  %v3348_v4 = vmul.f32 %v6342_v7, %v3328_v31 }
 0x864   :  { %v6346_v46 = vpop.eup %6345  ;;  %v3330_v28 = vadd.f32 0.5, %v3326_v30  ;;  %v3347_v55 = vmul.f32 %v6344_v51, %v3327_v54 }
 0x865   :  { %v3325_v26 = vmul.f32 0.5, %v6346_v46  ;;  %3353 = vst.msk [vmem:[#allocation2 + $0x68] sm:$0xff] %vm484_vm3, %v3348_v4 }
 0x866   :  { %v6348_v62 = vpop.eup %6347  ;;  %3352 = vst.msk [vmem:[#allocation2 + $0x60] sm:$0xff] %vm484_vm3, %v3347_v55  ;;  %v6090_v56 = vpack.c.bf16 %v3348_v4, %v3347_v55  ;;  %v3365_v4 = vld [vmem:[#allocation3 + $0x248] sm:$0xff]  ;;  %v3364_v55 = vld [vmem:[#allocation3 + $0x240] sm:$0xff] }
 0x867   :  { %v6350_v22 = vpop.eup %6349  ;;  %v3329_v63 = vadd.f32 0.5, %v3325_v26  ;;  %v3350_v60 = vmul.f32 %v6348_v62, %v3330_v28 }
 0x868   :  { %6091 = vmatprep.subr.bf16.mxu1 %v6090_v56 }
 0x869   :  { %6093 = vmatpush3.bf16.msra.mxu1 %v6090_v56  ;;  %v3349_v0 = vmul.f32 %v6350_v22, %v3329_v63  ;;  %3355 = vst.msk [vmem:[#allocation2 + $0x78] sm:$0xff] %vm484_vm3, %v3350_v60  ;;  %v3367_v63 = vld [vmem:[#allocation3 + $0x258] sm:$0xff] }
 0x86b   :  { %3354 = vst.msk [vmem:[#allocation2 + $0x70] sm:$0xff] %vm484_vm3, %v3349_v0  ;;  %v6094_v57 = vpack.c.bf16 %v3350_v60, %v3349_v0 }
 0x86d   :  { %6095 = vmatprep.subr.bf16.mxu1 %v6094_v57 }
 0x86e   :  { %6097 = vmatpush3.bf16.msra.mxu1 %v6094_v57  ;;  %v3366_v57 = vld [vmem:[#allocation3 + $0x250] sm:$0xff] }
 0x871   :  { %5883 = vmatmul.mubr.msk.f32.vlgmr.msra.gmra.mrb[112].mxu1 %vm290_vm2, %v7754_v13 }
 0x872   :  { %5885 = vmatprep.mubr.msk.f32.mxu1 %vm290_vm2, %v7761_v20 }
 0x875   :  { %5886 = vmatmul.mubr.msk.f32.gmra.mrb[114].mxu1 %vm290_vm2, %v7768_v33 }
 0x876   :  { %5888 = vmatprep.mubr.msk.f32.mxu1 %vm290_vm2, %v7775_v34 }
 0x879   :  { %5889 = vmatmul.mubr.msk.f32.gmra.mrb[116].mxu1 %vm290_vm2, %v7782_v35 }
 0x87a   :  { %5891 = vmatprep.mubr.msk.f32.mxu1 %vm290_vm2, %v7789_v37 }
 0x87d   :  { %5892 = vmatmul.mubr.msk.f32.gmra.mrb[118].mxu1 %vm290_vm2, %v7796_v38 }
 0x87e   :  { %5894 = vmatprep.mubr.msk.f32.mxu1 %vm290_vm2, %v7803_v40 }
 0x881   :  { %5895 = vmatmul.mubr.msk.f32.gmra.mrb[120].mxu1 %vm290_vm2, %v7810_v41 }
 0x882   :  { %5897 = vmatprep.mubr.msk.f32.mxu1 %vm290_vm2, %v7817_v43 }
 0x885   :  { %5898 = vmatmul.mubr.msk.f32.gmra.mrb[122].mxu1 %vm290_vm2, %v7824_v44 }
 0x886   :  { %5900 = vmatprep.mubr.msk.f32.mxu1 %vm290_vm2, %v7831_v45 }
 0x889   :  { %5901 = vmatmul.mubr.msk.f32.gmra.mrb[124].mxu1 %vm290_vm2, %v7838_v47 }
 0x88a   :  { %5903 = vmatprep.mubr.msk.f32.mxu1 %vm290_vm2, %v7845_v49 }
 0x88d   :  { %5904 = vmatmul.mubr.msk.f32.gmra.mrb[126].mxu1 %vm290_vm2, %v7852_v50 }
 0x88e   :  { %5946 = vmatprep.mubr.msk.f32.mxu1 %vm290_vm2, %v7859_v2 }
 0x944   :  { %v5884_v8 = vpop.f32.mrb[112].mxu1 }
 0x945   :  { %v3518_v17 = vadd.f32 %v5884_v8, %v3357_v39  ;;  %v3438_v5 = vpop.f32.mrb[113].mxu1 }
 0x946   :  { %v3517_v42 = vadd.f32 %v3438_v5, %v3356_v1 }
 0x947   :  { %v3534_v9 = vmul.f32 0.5, %v3518_v17 }
 0x948   :  { %v5887_v6 = vpop.f32.mrb[114].mxu1  ;;  %v3533_v10 = vmul.f32 0.5, %v3517_v42 }
 0x949   :  { %v3520_v21 = vadd.f32 %v5887_v6, %v3359_v29  ;;  %v3448_v25 = vpop.f32.mrb[115].mxu1  ;;  %6351 = vtanh.f32 %v3534_v9  ;;  %v3369_v9 = vld [vmem:[#allocation3 + $0x268] sm:$0xff] }
 0x94a   :  { %v3519_v12 = vadd.f32 %v3448_v25, %v3358_v11  ;;  %6353 = vtanh.f32 %v3533_v10 }
 0x94b   :  { %v3536_v23 = vmul.f32 0.5, %v3520_v21 }
 0x94c   :  { %v5890_v3 = vpop.f32.mrb[116].mxu1  ;;  %v3535_v16 = vmul.f32 0.5, %v3519_v12  ;;  %v3368_v12 = vld [vmem:[#allocation3 + $0x260] sm:$0xff] }
 0x94d   :  { %v3522_v24 = vadd.f32 %v5890_v3, %v3361_v52  ;;  %v3458_v15 = vpop.f32.mrb[117].mxu1  ;;  %6355 = vtanh.f32 %v3536_v23 }
 0x94e   :  { %v3521_v18 = vadd.f32 %v3458_v15, %v3360_v19 }
 0x94f   :  { %v3538_v36 = vmul.f32 0.5, %v3522_v24 }
 0x950   :  { %v3537_v61 = vmul.f32 0.5, %v3521_v18  ;;  %v5893_v32 = vpop.f32.mrb[118].mxu1 }
 0x951   :  { %6357 = vtanh.f32 %v3538_v36  ;;  %v3524_v31 = vadd.f32 %v5893_v32, %v3363_v48  ;;  %v3468_v54 = vpop.f32.mrb[119].mxu1 }
 0x952   :  { %6359 = vtanh.f32 %v3537_v61  ;;  %v3523_v7 = vadd.f32 %v3468_v54, %v3362_v53  ;;  %v3371_v53 = vld [vmem:[#allocation3 + $0x278] sm:$0xff] }
 0x953   :  { %6361 = vtanh.f32 %v3535_v16  ;;  %v3540_v30 = vmul.f32 0.5, %v3524_v31  ;;  %v6352_v56 = vpop.eup %6351 }
 0x954   :  { %v3539_v51 = vmul.f32 0.5, %v3523_v7  ;;  %v5896_v46 = vpop.f32.mrb[120].mxu1  ;;  %v6354_v22 = vpop.eup %6353  ;;  %v3550_v5 = vmul.f32 0.5, %v6352_v56 }
 0x955   :  { %6363 = vtanh.f32 %v3540_v30  ;;  %v3526_v28 = vadd.f32 %v5896_v46, %v3365_v4  ;;  %v3478_v26 = vpop.f32.mrb[121].mxu1  ;;  %v3549_v42 = vmul.f32 0.5, %v6354_v22  ;;  %v3370_v46 = vld [vmem:[#allocation3 + $0x270] sm:$0xff] }
 0x956   :  { %6365 = vtanh.f32 %v3539_v51  ;;  %v3525_v62 = vadd.f32 %v3478_v26, %v3364_v55  ;;  %v3558_v19 = vadd.f32 0.5, %v3550_v5 }
 0x957   :  { %6367 = vtanh.f32 %v3526_v28  ;;  %v6356_v8 = vpop.eup %6355  ;;  %v3557_v15 = vadd.f32 0.5, %v3549_v42 }
 0x958   :  { %6369 = vtanh.f32 %v3525_v62  ;;  %v5899_v60 = vpop.f32.mrb[122].mxu1  ;;  %v3552_v61 = vmul.f32 0.5, %v6356_v8 }
 0x959   :  { %v3528_v0 = vadd.f32 %v5899_v60, %v3367_v63  ;;  %v3488_v39 = vpop.f32.mrb[123].mxu1 }
 0x95a   :  { %v3527_v17 = vadd.f32 %v3488_v39, %v3366_v57  ;;  %v3560_v57 = vadd.f32 0.5, %v3552_v61 }
 0x95b   :  { %v6358_v1 = vpop.eup %6357  ;;  %6371 = vtanh.f32 %v3528_v0 }
 0x95c   :  { %v6360_v29 = vpop.eup %6359  ;;  %v3554_v6 = vmul.f32 0.5, %v6358_v1  ;;  %6373 = vtanh.f32 %v3527_v17  ;;  %v5902_v21 = vpop.f32.mrb[124].mxu1 }
 0x95d   :  { %v6362_v25 = vpop.eup %6361  ;;  %v3553_v10 = vmul.f32 0.5, %v6360_v29  ;;  %v3530_v11 = vadd.f32 %v5902_v21, %v3369_v9  ;;  %v3498_v23 = vpop.f32.mrb[125].mxu1 }
 0x95e   :  { %v3562_v52 = vadd.f32 0.5, %v3554_v6  ;;  %v3529_v3 = vadd.f32 %v3498_v23, %v3368_v12  ;;  %v3551_v48 = vmul.f32 0.5, %v6362_v25 }
 0x95f   :  { %v6364_v24 = vpop.eup %6363  ;;  %v3561_v18 = vadd.f32 0.5, %v3553_v10  ;;  %v3570_v16 = vmul.f32 0.5, %v3530_v11 }
 0x960   :  { %v6366_v36 = vpop.eup %6365  ;;  %v3556_v32 = vmul.f32 0.5, %v6364_v24  ;;  %v3569_v31 = vmul.f32 0.5, %v3529_v3  ;;  %v5905_v54 = vpop.f32.mrb[126].mxu1  ;;  %v3586_v30 = vmul.f32 %v3562_v52, %v7865_v14  ;;  %v3559_v17 = vadd.f32 0.5, %v3551_v48 }
 0x961   :  { %v6368_v7 = vpop.eup %6367  ;;  %v3555_v51 = vmul.f32 0.5, %v6366_v36  ;;  %6375 = vtanh.f32 %v3570_v16  ;;  %v3532_v4 = vadd.f32 %v5905_v54, %v3371_v53  ;;  %v3508_v28 = vpop.f32.mrb[127].mxu1  ;;  %v3585_v22 = vmul.f32 %v3561_v18, %v7867_v27 }
 0x962   :  { %v6370_v55 = vpop.eup %6369  ;;  %v3564_v26 = vadd.f32 0.5, %v3556_v32  ;;  %v3590_v62 = vmul.f32 %v6368_v7, %v3558_v19  ;;  %6377 = vtanh.f32 %v3569_v31  ;;  %v3531_v56 = vadd.f32 %v3508_v28, %v3370_v46  ;;  %v3610_v46 = vld [vmem:[#allocation3 + $0x280] sm:$0xff] }
 0x963   :  { %v3563_v63 = vadd.f32 0.5, %v3555_v51  ;;  %v3589_v60 = vmul.f32 %v6370_v55, %v3557_v15  ;;  %v3572_v0 = vmul.f32 0.5, %v3532_v4 }
 0x964   :  { %v7917_v39 = vadd.f32 %v3590_v62, %v3586_v30  ;;  %v3571_v8 = vmul.f32 0.5, %v3531_v56  ;;  %v3588_v42 = vmul.f32 %v3564_v26, %v7873_v58  ;;  %v3611_v30 = vld [vmem:[#allocation3 + $0x288] sm:$0xff]  ;;  %v3613_v26 = vld [vmem:[#allocation3 + $0x298] sm:$0xff] }
 0x965   :  { %v6372_v14 = vpop.eup %6371  ;;  %v7919_v1 = vadd.f32 %v3589_v60, %v3585_v22  ;;  %6379 = vtanh.f32 %v3572_v0  ;;  %v3587_v27 = vmul.f32 %v3563_v63, %v7875_v59  ;;  %v3612_v0 = vld [vmem:[#allocation3 + $0x290] sm:$0xff] }
 0x966   :  { %v6374_v5 = vpop.eup %6373  ;;  %6381 = vtanh.f32 %v7917_v39  ;;  %v3592_v29 = vmul.f32 %v6372_v14, %v3560_v57  ;;  %v3615_v14 = vld [vmem:[#allocation3 + $0x2a8] sm:$0xff] }
 0x967   :  { %6383 = vtanh.f32 %v7919_v1  ;;  %v3591_v6 = vmul.f32 %v6374_v5, %v3559_v17 }
 0x968   :  { %v7925_v9 = vadd.f32 %v3592_v29, %v3588_v42  ;;  %6385 = vtanh.f32 %v3571_v8 }
 0x969   :  { %v7927_v21 = vadd.f32 %v3591_v6, %v3587_v27 }
 0x96a   :  { %6387 = vtanh.f32 %v7925_v9 }
 0x96b   :  { %v6376_v25 = vpop.eup %6375  ;;  %6389 = vtanh.f32 %v7927_v21 }
 0x96c   :  { %v6378_v10 = vpop.eup %6377  ;;  %v3578_v58 = vmul.f32 0.5, %v6376_v25 }
 0x96d   :  { %v3577_v11 = vmul.f32 0.5, %v6378_v10  ;;  %v3617_v10 = vld [vmem:[#allocation3 + $0x2b8] sm:$0xff] }
 0x96e   :  { %v3582_v12 = vadd.f32 0.5, %v3578_v58 }
 0x96f   :  { %v6380_v23 = vpop.eup %6379  ;;  %v3581_v52 = vadd.f32 0.5, %v3577_v11 }
 0x970   :  { %v6382_v59 = vpop.eup %6381  ;;  %v3580_v3 = vmul.f32 0.5, %v6380_v23 }
 0x971   :  { %v6384_v24 = vpop.eup %6383  ;;  %v3602_v19 = vmul.f32 %v6382_v59, %v3582_v12  ;;  %v3616_v12 = vld [vmem:[#allocation3 + $0x2b0] sm:$0xff] }
 0x972   :  { %v6386_v15 = vpop.eup %6385  ;;  %v3584_v18 = vadd.f32 0.5, %v3580_v3  ;;  %v3601_v16 = vmul.f32 %v6384_v24, %v3581_v52  ;;  %v3619_v24 = vld [vmem:[#allocation3 + $0x2c8] sm:$0xff] }
 0x973   :  { %v3579_v36 = vmul.f32 0.5, %v6386_v15  ;;  %3607 = vst.msk [vmem:[#allocation2 + $0x88] sm:$0xff] %vm484_vm3, %v3602_v19 }
 0x974   :  { %v6388_v61 = vpop.eup %6387  ;;  %3606 = vst.msk [vmem:[#allocation2 + $0x80] sm:$0xff] %vm484_vm3, %v3601_v16  ;;  %v6098_v48 = vpack.c.bf16 %v3602_v19, %v3601_v16 }
 0x975   :  { %v6390_v32 = vpop.eup %6389  ;;  %v3583_v31 = vadd.f32 0.5, %v3579_v36  ;;  %v3604_v53 = vmul.f32 %v6388_v61, %v3584_v18  ;;  %v3618_v18 = vld [vmem:[#allocation3 + $0x2c0] sm:$0xff] }
 0x976   :  { %6099 = vmatprep.subr.bf16.mxu0 %v6098_v48 }
 0x977   :  { %6101 = vmatpush3.bf16.msra.mxu0 %v6098_v48  ;;  %v3603_v54 = vmul.f32 %v6390_v32, %v3583_v31  ;;  %3609 = vst.msk [vmem:[#allocation2 + $0x98] sm:$0xff] %vm484_vm3, %v3604_v53  ;;  %v3621_v32 = vld [vmem:[#allocation3 + $0x2d8] sm:$0xff] }
 0x979   :  { %3608 = vst.msk [vmem:[#allocation2 + $0x90] sm:$0xff] %vm484_vm3, %v3603_v54  ;;  %v6102_v7 = vpack.c.bf16 %v3604_v53, %v3603_v54  ;;  %v3620_v54 = vld [vmem:[#allocation3 + $0x2d0] sm:$0xff] }
 0x97b   :  { %6103 = vmatprep.subr.bf16.mxu0 %v6102_v7 }
 0x97c   :  { %6105 = vmatpush3.bf16.msra.mxu0 %v6102_v7 }
 0x97f   :  { %5915 = vmatmul.mubr.msk.f32.vlgmr.msra.gmra.mrb[112].mxu0 %vm290_vm2, %v7754_v13 }
 0x980   :  { %5917 = vmatprep.mubr.msk.f32.mxu0 %vm290_vm2, %v7761_v20 }
 0x983   :  { %5918 = vmatmul.mubr.msk.f32.gmra.mrb[114].mxu0 %vm290_vm2, %v7768_v33 }
 0x984   :  { %5920 = vmatprep.mubr.msk.f32.mxu0 %vm290_vm2, %v7775_v34 }
 0x987   :  { %5921 = vmatmul.mubr.msk.f32.gmra.mrb[116].mxu0 %vm290_vm2, %v7782_v35 }
 0x988   :  { %5923 = vmatprep.mubr.msk.f32.mxu0 %vm290_vm2, %v7789_v37 }
 0x98b   :  { %5924 = vmatmul.mubr.msk.f32.gmra.mrb[118].mxu0 %vm290_vm2, %v7796_v38 }
 0x98c   :  { %5926 = vmatprep.mubr.msk.f32.mxu0 %vm290_vm2, %v7803_v40 }
 0x98f   :  { %5927 = vmatmul.mubr.msk.f32.gmra.mrb[120].mxu0 %vm290_vm2, %v7810_v41 }
 0x990   :  { %5929 = vmatprep.mubr.msk.f32.mxu0 %vm290_vm2, %v7817_v43 }
 0x993   :  { %5930 = vmatmul.mubr.msk.f32.gmra.mrb[122].mxu0 %vm290_vm2, %v7824_v44 }
 0x994   :  { %5932 = vmatprep.mubr.msk.f32.mxu0 %vm290_vm2, %v7831_v45 }
 0x997   :  { %5933 = vmatmul.mubr.msk.f32.gmra.mrb[124].mxu0 %vm290_vm2, %v7838_v47 }
 0x998   :  { %5935 = vmatprep.mubr.msk.f32.mxu0 %vm290_vm2, %v7845_v49 }
 0x99b   :  { %5936 = vmatmul.mubr.msk.f32.gmra.mrb[126].mxu0 %vm290_vm2, %v7852_v50 }
 0x99c   :  { %5978 = vmatprep.mubr.msk.f32.mxu0 %vm290_vm2, %v7859_v2  ;;  %v3614_v2 = vld [vmem:[#allocation3 + $0x2a0] sm:$0xff] }
 0xa52   :  { %v5916_v51 = vpop.f32.mrb[112].mxu0 }
 0xa53   :  { %v3772_v4 = vadd.f32 %v5916_v51, %v3611_v30  ;;  %v3692_v28 = vpop.f32.mrb[113].mxu0 }
 0xa54   :  { %v3771_v55 = vadd.f32 %v3692_v28, %v3610_v46 }
 0xa55   :  { %v3788_v56 = vmul.f32 0.5, %v3772_v4 }
 0xa56   :  { %v5919_v62 = vpop.f32.mrb[114].mxu0  ;;  %v3787_v60 = vmul.f32 0.5, %v3771_v55 }
 0xa57   :  { %v3774_v22 = vadd.f32 %v5919_v62, %v3613_v26  ;;  %v3702_v63 = vpop.f32.mrb[115].mxu0  ;;  %6391 = vtanh.f32 %v3788_v56  ;;  %v3623_v62 = vld [vmem:[#allocation3 + $0x2e8] sm:$0xff] }
 0xa58   :  { %v3773_v57 = vadd.f32 %v3702_v63, %v3612_v0  ;;  %6393 = vtanh.f32 %v3787_v60  ;;  %v3622_v0 = vld [vmem:[#allocation3 + $0x2e0] sm:$0xff] }
 0xa59   :  { %v3790_v8 = vmul.f32 0.5, %v3774_v22 }
 0xa5a   :  { %v5922_v17 = vpop.f32.mrb[116].mxu0  ;;  %v3789_v27 = vmul.f32 0.5, %v3773_v57 }
 0xa5b   :  { %v3776_v5 = vadd.f32 %v5922_v17, %v3615_v14  ;;  %v3712_v42 = vpop.f32.mrb[117].mxu0  ;;  %6395 = vtanh.f32 %v3790_v8 }
 0xa5c   :  { %v3775_v29 = vadd.f32 %v3712_v42, %v3614_v2 }
 0xa5d   :  { %v3792_v6 = vmul.f32 0.5, %v3776_v5 }
 0xa5e   :  { %v3791_v25 = vmul.f32 0.5, %v3775_v29  ;;  %v5925_v58 = vpop.f32.mrb[118].mxu0 }
 0xa5f   :  { %6397 = vtanh.f32 %v3792_v6  ;;  %v3778_v11 = vadd.f32 %v5925_v58, %v3617_v10  ;;  %v3722_v23 = vpop.f32.mrb[119].mxu0 }
 0xa60   :  { %6399 = vtanh.f32 %v3791_v25  ;;  %v3777_v52 = vadd.f32 %v3722_v23, %v3616_v12 }
 0xa61   :  { %6401 = vtanh.f32 %v3789_v27  ;;  %v3794_v59 = vmul.f32 0.5, %v3778_v11  ;;  %v6392_v61 = vpop.eup %6391  ;;  %v3625_v11 = vld [vmem:[#allocation3 + $0x2f8] sm:$0xff] }
 0xa62   :  { %v3793_v3 = vmul.f32 0.5, %v3777_v52  ;;  %v5928_v19 = vpop.f32.mrb[120].mxu0  ;;  %v6394_v48 = vpop.eup %6393  ;;  %v3804_v46 = vmul.f32 0.5, %v6392_v61 }
 0xa63   :  { %6403 = vtanh.f32 %v3794_v59  ;;  %v3780_v15 = vadd.f32 %v5928_v19, %v3619_v24  ;;  %v3732_v16 = vpop.f32.mrb[121].mxu0  ;;  %v3803_v28 = vmul.f32 0.5, %v6394_v48  ;;  %v3624_v24 = vld [vmem:[#allocation3 + $0x2f0] sm:$0xff] }
 0xa64   :  { %6405 = vtanh.f32 %v3793_v3  ;;  %v3779_v36 = vadd.f32 %v3732_v16, %v3618_v18  ;;  %v3812_v5 = vadd.f32 0.5, %v3804_v46 }
 0xa65   :  { %6407 = vtanh.f32 %v3780_v15  ;;  %v6396_v30 = vpop.eup %6395  ;;  %v3811_v2 = vadd.f32 0.5, %v3803_v28 }
 0xa66   :  { %6409 = vtanh.f32 %v3779_v36  ;;  %v5931_v31 = vpop.f32.mrb[122].mxu0  ;;  %v3806_v6 = vmul.f32 0.5, %v6396_v30 }
 0xa67   :  { %v3782_v53 = vadd.f32 %v5931_v31, %v3621_v32  ;;  %v3742_v7 = vpop.f32.mrb[123].mxu0 }
 0xa68   :  { %v3781_v51 = vadd.f32 %v3742_v7, %v3620_v54 }
 0xa69   :  { %v6398_v4 = vpop.eup %6397  ;;  %6411 = vtanh.f32 %v3782_v53  ;;  %v3814_v53 = vadd.f32 0.5, %v3806_v6 }
 0xa6a   :  { %v6400_v55 = vpop.eup %6399  ;;  %v3808_v26 = vmul.f32 0.5, %v6398_v4  ;;  %6413 = vtanh.f32 %v3781_v51  ;;  %v5934_v56 = vpop.f32.mrb[124].mxu0 }
 0xa6b   :  { %v6402_v22 = vpop.eup %6401  ;;  %v3807_v63 = vmul.f32 0.5, %v6400_v55  ;;  %v3784_v60 = vadd.f32 %v5934_v56, %v3623_v62  ;;  %v3752_v57 = vpop.f32.mrb[125].mxu0 }
 0xa6c   :  { %v3816_v8 = vadd.f32 0.5, %v3808_v26  ;;  %v3783_v14 = vadd.f32 %v3752_v57, %v3622_v0  ;;  %v3805_v25 = vmul.f32 0.5, %v6402_v22 }
 0xa6d   :  { %v6404_v17 = vpop.eup %6403  ;;  %v3815_v42 = vadd.f32 0.5, %v3807_v63  ;;  %v3824_v29 = vmul.f32 0.5, %v3784_v60 }
 0xa6e   :  { %v6406_v27 = vpop.eup %6405  ;;  %v3810_v10 = vmul.f32 0.5, %v6404_v17  ;;  %v3823_v58 = vmul.f32 0.5, %v3783_v14  ;;  %v5937_v12 = vpop.f32.mrb[126].mxu0  ;;  %v3840_v52 = vmul.f32 %v3816_v8, %v7917_v39  ;;  %v3813_v30 = vadd.f32 0.5, %v3805_v25 }
 0xa6f   :  { %v6408_v23 = vpop.eup %6407  ;;  %v3809_v59 = vmul.f32 0.5, %v6406_v27  ;;  %6415 = vtanh.f32 %v3824_v29  ;;  %v3786_v3 = vadd.f32 %v5937_v12, %v3625_v11  ;;  %v3762_v19 = vpop.f32.mrb[127].mxu0  ;;  %v3839_v61 = vmul.f32 %v3815_v42, %v7919_v1 }
 0xa70   :  { %v6410_v15 = vpop.eup %6409  ;;  %v3818_v18 = vadd.f32 0.5, %v3810_v10  ;;  %v3844_v16 = vmul.f32 %v6408_v23, %v3812_v5  ;;  %6417 = vtanh.f32 %v3823_v58  ;;  %v3785_v36 = vadd.f32 %v3762_v19, %v3624_v24  ;;  %v3866_v23 = vld [vmem:[#allocation3 + $0x310] sm:$0xff] }
 0xa71   :  { %v3817_v48 = vadd.f32 0.5, %v3809_v59  ;;  %v3843_v32 = vmul.f32 %v6410_v15, %v3811_v2  ;;  %v3826_v31 = vmul.f32 0.5, %v3786_v3  ;;  %v3869_v59 = vld [vmem:[#allocation3 + $0x328] sm:$0xff] }
 0xa72   :  { %v7969_v54 = vadd.f32 %v3844_v16, %v3840_v52  ;;  %v3825_v7 = vmul.f32 0.5, %v3785_v36  ;;  %v3842_v46 = vmul.f32 %v3818_v18, %v7925_v9  ;;  %v3871_v36 = vld [vmem:[#allocation3 + $0x338] sm:$0xff] }
 0xa73   :  { %v6412_v39 = vpop.eup %6411  ;;  %v7971_v51 = vadd.f32 %v3843_v32, %v3839_v61  ;;  %6419 = vtanh.f32 %v3826_v31  ;;  %v3841_v1 = vmul.f32 %v3817_v48, %v7927_v21  ;;  %v3870_v32 = vld [vmem:[#allocation3 + $0x330] sm:$0xff] }
 0xa74   :  { %v6414_v4 = vpop.eup %6413  ;;  %6421 = vtanh.f32 %v7969_v54  ;;  %v3846_v28 = vmul.f32 %v6412_v39, %v3814_v53 }
 0xa75   :  { %6423 = vtanh.f32 %v7971_v51  ;;  %v3845_v55 = vmul.f32 %v6414_v4, %v3813_v30  ;;  %v3873_v30 = vld [vmem:[#allocation3 + $0x348] sm:$0xff] }
 0xa76   :  { %v7977_v26 = vadd.f32 %v3846_v28, %v3842_v46  ;;  %6425 = vtanh.f32 %v3825_v7  ;;  %v3872_v28 = vld [vmem:[#allocation3 + $0x340] sm:$0xff] }
 0xa77   :  { %v7979_v62 = vadd.f32 %v3845_v55, %v3841_v1 }
 0xa78   :  { %6427 = vtanh.f32 %v7977_v26 }
 0xa79   :  { %v6416_v56 = vpop.eup %6415  ;;  %6429 = vtanh.f32 %v7979_v62 }
 0xa7a   :  { %v6418_v22 = vpop.eup %6417  ;;  %v3832_v9 = vmul.f32 0.5, %v6416_v56 }
 0xa7b   :  { %v3831_v63 = vmul.f32 0.5, %v6418_v22 }
 0xa7c   :  { %v3836_v60 = vadd.f32 0.5, %v3832_v9  ;;  %v3875_v9 = vld [vmem:[#allocation3 + $0x358] sm:$0xff] }
 0xa7d   :  { %v6420_v0 = vpop.eup %6419  ;;  %v3835_v57 = vadd.f32 0.5, %v3831_v63 }
 0xa7e   :  { %v6422_v21 = vpop.eup %6421  ;;  %v3834_v8 = vmul.f32 0.5, %v6420_v0  ;;  %v3874_v0 = vld [vmem:[#allocation3 + $0x350] sm:$0xff] }
 0xa7f   :  { %v6424_v14 = vpop.eup %6423  ;;  %v3856_v17 = vmul.f32 %v6422_v21, %v3836_v60 }
 0xa80   :  { %v6426_v5 = vpop.eup %6425  ;;  %v3838_v2 = vadd.f32 0.5, %v3834_v8  ;;  %v3855_v42 = vmul.f32 %v6424_v14, %v3835_v57 }
 0xa81   :  { %v3833_v29 = vmul.f32 0.5, %v6426_v5  ;;  %3861 = vst.msk [vmem:[#allocation2 + $0xa8] sm:$0xff] %vm484_vm3, %v3856_v17 }
 0xa82   :  { %v6428_v27 = vpop.eup %6427  ;;  %3860 = vst.msk [vmem:[#allocation2 + $0xa0] sm:$0xff] %vm484_vm3, %v3855_v42  ;;  %v6106_v6 = vpack.c.bf16 %v3856_v17, %v3855_v42 }
 0xa83   :  { %v6430_v25 = vpop.eup %6429  ;;  %v3837_v10 = vadd.f32 0.5, %v3833_v29  ;;  %v3858_v58 = vmul.f32 %v6428_v27, %v3838_v2  ;;  %v3877_v29 = vld [vmem:[#allocation3 + $0x368] sm:$0xff] }
 0xa84   :  { %6107 = vmatprep.subr.bf16.mxu1 %v6106_v6 }
 0xa85   :  { %6109 = vmatpush3.bf16.msra.mxu1 %v6106_v6  ;;  %v3857_v11 = vmul.f32 %v6430_v25, %v3837_v10  ;;  %3863 = vst.msk [vmem:[#allocation2 + $0xb8] sm:$0xff] %vm484_vm3, %v3858_v58 }
 0xa87   :  { %3862 = vst.msk [vmem:[#allocation2 + $0xb0] sm:$0xff] %vm484_vm3, %v3857_v11  ;;  %v6110_v12 = vpack.c.bf16 %v3858_v58, %v3857_v11  ;;  %v3876_v58 = vld [vmem:[#allocation3 + $0x360] sm:$0xff] }
 0xa89   :  { %6111 = vmatprep.subr.bf16.mxu1 %v6110_v12 }
 0xa8a   :  { %6113 = vmatpush3.bf16.msra.mxu1 %v6110_v12 }
 0xa8d   :  { %5947 = vmatmul.mubr.msk.f32.vlgmr.msra.gmra.mrb[128].mxu1 %vm290_vm2, %v7754_v13  ;;  %v3865_v13 = vld [vmem:[#allocation3 + $0x308] sm:$0xff] }
 0xa8e   :  { %5949 = vmatprep.mubr.msk.f32.mxu1 %vm290_vm2, %v7761_v20 }
 0xa91   :  { %5950 = vmatmul.mubr.msk.f32.gmra.mrb[130].mxu1 %vm290_vm2, %v7768_v33 }
 0xa92   :  { %5952 = vmatprep.mubr.msk.f32.mxu1 %vm290_vm2, %v7775_v34  ;;  %v3864_v34 = vld [vmem:[#allocation3 + $0x300] sm:$0xff] }
 0xa95   :  { %5953 = vmatmul.mubr.msk.f32.gmra.mrb[132].mxu1 %vm290_vm2, %v7782_v35 }
 0xa96   :  { %5955 = vmatprep.mubr.msk.f32.mxu1 %vm290_vm2, %v7789_v37 }
 0xa99   :  { %5956 = vmatmul.mubr.msk.f32.gmra.mrb[134].mxu1 %vm290_vm2, %v7796_v38  ;;  %v3867_v38 = vld [vmem:[#allocation3 + $0x318] sm:$0xff] }
 0xa9a   :  { %5958 = vmatprep.mubr.msk.f32.mxu1 %vm290_vm2, %v7803_v40 }
 0xa9d   :  { %5959 = vmatmul.mubr.msk.f32.gmra.mrb[136].mxu1 %vm290_vm2, %v7810_v41 }
 0xa9e   :  { %5961 = vmatprep.mubr.msk.f32.mxu1 %vm290_vm2, %v7817_v43 }
 0xaa1   :  { %5962 = vmatmul.mubr.msk.f32.gmra.mrb[138].mxu1 %vm290_vm2, %v7824_v44 }
 0xaa2   :  { %5964 = vmatprep.mubr.msk.f32.mxu1 %vm290_vm2, %v7831_v45 }
 0xaa5   :  { %5965 = vmatmul.mubr.msk.f32.gmra.mrb[140].mxu1 %vm290_vm2, %v7838_v47 }
 0xaa6   :  { %5967 = vmatprep.mubr.msk.f32.mxu1 %vm290_vm2, %v7845_v49 }
 0xaa9   :  { %5968 = vmatmul.mubr.msk.f32.gmra.mrb[142].mxu1 %vm290_vm2, %v7852_v50  ;;  %v3868_v50 = vld [vmem:[#allocation3 + $0x320] sm:$0xff] }
 0xb60   :  { %v5948_v20 = vpop.f32.mrb[128].mxu1 }
 0xb61   :  { %v4026_v33 = vadd.f32 %v5948_v20, %v3865_v13  ;;  %v3946_v35 = vpop.f32.mrb[129].mxu1 }
 0xb62   :  { %v4025_v37 = vadd.f32 %v3946_v35, %v3864_v34 }
 0xb63   :  { %v4042_v41 = vmul.f32 0.5, %v4026_v33 }
 0xb64   :  { %v5951_v40 = vpop.f32.mrb[130].mxu1  ;;  %v4041_v45 = vmul.f32 0.5, %v4025_v37 }
 0xb65   :  { %v4028_v43 = vadd.f32 %v5951_v40, %v3867_v38  ;;  %v3956_v44 = vpop.f32.mrb[131].mxu1  ;;  %6431 = vtanh.f32 %v4042_v41 }
 0xb66   :  { %v4027_v47 = vadd.f32 %v3956_v44, %v3866_v23  ;;  %6433 = vtanh.f32 %v4041_v45  ;;  %v3879_v45 = vld [vmem:[#allocation3 + $0x378] sm:$0xff] }
 0xb67   :  { %v4044_v52 = vmul.f32 0.5, %v4028_v43 }
 0xb68   :  { %v5954_v49 = vpop.f32.mrb[132].mxu1  ;;  %v4043_v15 = vmul.f32 0.5, %v4027_v47 }
 0xb69   :  { %v4030_v3 = vadd.f32 %v5954_v49, %v3869_v59  ;;  %v3966_v24 = vpop.f32.mrb[133].mxu1  ;;  %6435 = vtanh.f32 %v4044_v52 }
 0xb6a   :  { %v4029_v19 = vadd.f32 %v3966_v24, %v3868_v50 }
 0xb6b   :  { %v4046_v18 = vmul.f32 0.5, %v4030_v3  ;;  %v3878_v3 = vld [vmem:[#allocation3 + $0x370] sm:$0xff] }
 0xb6c   :  { %v4045_v16 = vmul.f32 0.5, %v4029_v19  ;;  %v5957_v61 = vpop.f32.mrb[134].mxu1 }
 0xb6d   :  { %6437 = vtanh.f32 %v4046_v18  ;;  %v4032_v48 = vadd.f32 %v5957_v61, %v3871_v36  ;;  %v3976_v31 = vpop.f32.mrb[135].mxu1 }
 0xb6e   :  { %6439 = vtanh.f32 %v4045_v16  ;;  %v4031_v53 = vadd.f32 %v3976_v31, %v3870_v32 }
 0xb6f   :  { %6441 = vtanh.f32 %v4043_v15  ;;  %v4048_v7 = vmul.f32 0.5, %v4032_v48  ;;  %v6432_v56 = vpop.eup %6431 }
 0xb70   :  { %v4047_v39 = vmul.f32 0.5, %v4031_v53  ;;  %v5960_v4 = vpop.f32.mrb[136].mxu1  ;;  %v6434_v22 = vpop.eup %6433  ;;  %v4058_v17 = vmul.f32 0.5, %v6432_v56 }
 0xb71   :  { %6443 = vtanh.f32 %v4048_v7  ;;  %v4034_v46 = vadd.f32 %v5960_v4, %v3873_v30  ;;  %v3986_v1 = vpop.f32.mrb[137].mxu1  ;;  %v4057_v5 = vmul.f32 0.5, %v6434_v22 }
 0xb72   :  { %6445 = vtanh.f32 %v4047_v39  ;;  %v4033_v55 = vadd.f32 %v3986_v1, %v3872_v28  ;;  %v4066_v33 = vadd.f32 0.5, %v4058_v17 }
 0xb73   :  { %6447 = vtanh.f32 %v4034_v46  ;;  %v6436_v21 = vpop.eup %6435  ;;  %v4065_v34 = vadd.f32 0.5, %v4057_v5 }
 0xb74   :  { %6449 = vtanh.f32 %v4033_v55  ;;  %v5963_v63 = vpop.f32.mrb[138].mxu1  ;;  %v4060_v40 = vmul.f32 0.5, %v6436_v21 }
 0xb75   :  { %v4036_v60 = vadd.f32 %v5963_v63, %v3875_v9  ;;  %v3996_v57 = vpop.f32.mrb[139].mxu1 }
 0xb76   :  { %v4035_v8 = vadd.f32 %v3996_v57, %v3874_v0  ;;  %v4068_v32 = vadd.f32 0.5, %v4060_v40  ;;  %v6575_v40 = vld [vmem:[%s8231_s5 + $0x50] sm:$0xff] }
 0xb77   :  { %v6438_v14 = vpop.eup %6437  ;;  %6451 = vtanh.f32 %v4036_v60 }
 0xb78   :  { %v6440_v2 = vpop.eup %6439  ;;  %v4062_v42 = vmul.f32 0.5, %v6438_v14  ;;  %6453 = vtanh.f32 %v4035_v8  ;;  %v5966_v27 = vpop.f32.mrb[140].mxu1 }
 0xb79   :  { %v6442_v6 = vpop.eup %6441  ;;  %v4061_v25 = vmul.f32 0.5, %v6440_v2  ;;  %v4038_v10 = vadd.f32 %v5966_v27, %v3877_v29  ;;  %v4006_v11 = vpop.f32.mrb[141].mxu1 }
 0xb7a   :  { %v4070_v12 = vadd.f32 0.5, %v4062_v42  ;;  %v4037_v13 = vadd.f32 %v4006_v11, %v3876_v58  ;;  %v4059_v41 = vmul.f32 0.5, %v6442_v6  ;;  %v6566_v11 = vld [vmem:[%s8231_s5 + $0x8] sm:$0xff] }
 0xb7b   :  { %v6444_v20 = vpop.eup %6443  ;;  %v4069_v35 = vadd.f32 0.5, %v4061_v25  ;;  %v4078_v37 = vmul.f32 0.5, %v4038_v10 }
 0xb7c   :  { %v6446_v38 = vpop.eup %6445  ;;  %v4064_v43 = vmul.f32 0.5, %v6444_v20  ;;  %v4077_v44 = vmul.f32 0.5, %v4037_v13  ;;  %v5969_v23 = vpop.f32.mrb[142].mxu1  ;;  %v4094_v52 = vmul.f32 %v4070_v12, %v7969_v54  ;;  %v4067_v7 = vadd.f32 0.5, %v4059_v41  ;;  %v6567_v12 = vld [vmem:[%s8231_s5 + $0x10] sm:$0xff]  ;;  %v6568_v13 = vld [vmem:[%s8231_s5 + $0x18] sm:$0xff] }
 0xb7d   :  { %v6448_v47 = vpop.eup %6447  ;;  %v4063_v59 = vmul.f32 0.5, %v6446_v38  ;;  %6455 = vtanh.f32 %v4078_v37  ;;  %v4040_v49 = vadd.f32 %v5969_v23, %v3879_v45  ;;  %v4016_v50 = vpop.f32.mrb[143].mxu1  ;;  %v4093_v16 = vmul.f32 %v4069_v35, %v7971_v51  ;;  %v6569_v20 = vld [vmem:[%s8231_s5 + $0x20] sm:$0xff]  ;;  %v6572_v35 = vld [vmem:[%s8231_s5 + $0x38] sm:$0xff]  ;;  %v6574_v38 = vld [vmem:[%s8231_s5 + $0x48] sm:$0xff] }
 0xb7e   :  { %v6450_v24 = vpop.eup %6449  ;;  %v4072_v19 = vadd.f32 0.5, %v4064_v43  ;;  %v4098_v15 = vmul.f32 %v6448_v47, %v4066_v33  ;;  %6457 = vtanh.f32 %v4077_v44  ;;  %v4039_v18 = vadd.f32 %v4016_v50, %v3878_v3  ;;  %v6570_v33 = vld [vmem:[%s8231_s5 + $0x28] sm:$0xff]  ;;  %v6573_v37 = vld [vmem:[%s8231_s5 + $0x40] sm:$0xff]  ;;  %v6576_v41 = vld [vmem:[%s8231_s5 + $0x58] sm:$0xff] }
 0xb7f   :  { %v4071_v36 = vadd.f32 0.5, %v4063_v59  ;;  %v4097_v61 = vmul.f32 %v6450_v24, %v4065_v34  ;;  %v4080_v48 = vmul.f32 0.5, %v4040_v49  ;;  %v6571_v34 = vld [vmem:[%s8231_s5 + $0x30] sm:$0xff]  ;;  %v6577_v43 = vld [vmem:[%s8231_s5 + $0x60] sm:$0xff]  ;;  %v6578_v44 = vld [vmem:[%s8231_s5 + $0x68] sm:$0xff] }
 0xb80   :  { %v8019_v31 = vadd.f32 %v4098_v15, %v4094_v52  ;;  %v4079_v53 = vmul.f32 0.5, %v4039_v18  ;;  %v4096_v4 = vmul.f32 %v4072_v19, %v7977_v26  ;;  %v6579_v45 = vld [vmem:[%s8231_s5 + $0x70] sm:$0xff]  ;;  %v6580_v23 = vld [vmem:[%s8231_s5 + $0x78] sm:$0xff]  ;;  %v4119_v52 = vld [vmem:[#allocation3 + $0x388] sm:$0xff] }
 0xb81   :  { %v6452_v54 = vpop.eup %6451  ;;  %v8021_v39 = vadd.f32 %v4097_v61, %v4093_v16  ;;  %6459 = vtanh.f32 %v4080_v48  ;;  %v4095_v51 = vmul.f32 %v4071_v36, %v7979_v62  ;;  %v4118_v3 = vld [vmem:[#allocation3 + $0x380] sm:$0xff]  ;;  %v4121_v18 = vld [vmem:[#allocation3 + $0x398] sm:$0xff]  ;;  %v4120_v61 = vld [vmem:[#allocation3 + $0x390] sm:$0xff] }
 0xb82   :  { %v6454_v30 = vpop.eup %6453  ;;  %6461 = vtanh.f32 %v8019_v31  ;;  %v4100_v46 = vmul.f32 %v6452_v54, %v4068_v32  ;;  %v4123_v32 = vld [vmem:[#allocation3 + $0x3a8] sm:$0xff] }
 0xb83   :  { %6463 = vtanh.f32 %v8021_v39  ;;  %v4099_v28 = vmul.f32 %v6454_v30, %v4067_v7  ;;  %v4122_v7 = vld [vmem:[#allocation3 + $0x3a0] sm:$0xff] }
 0xb84   :  { %v8027_v1 = vadd.f32 %v4100_v46, %v4096_v4  ;;  %6465 = vtanh.f32 %v4079_v53 }
 0xb85   :  { %v8029_v55 = vadd.f32 %v4099_v28, %v4095_v51 }
 0xb86   :  { %6467 = vtanh.f32 %v8027_v1 }
 0xb87   :  { %v6456_v56 = vpop.eup %6455  ;;  %6469 = vtanh.f32 %v8029_v55 }
 0xb88   :  { %v6458_v22 = vpop.eup %6457  ;;  %v4086_v26 = vmul.f32 0.5, %v6456_v56 }
 0xb89   :  { %v4085_v9 = vmul.f32 0.5, %v6458_v22  ;;  %v4125_v22 = vld [vmem:[#allocation3 + $0x3b8] sm:$0xff] }
 0xb8a   :  { %v4090_v63 = vadd.f32 0.5, %v4086_v26 }
 0xb8b   :  { %v6460_v60 = vpop.eup %6459  ;;  %v4089_v0 = vadd.f32 0.5, %v4085_v9 }
 0xb8c   :  { %v6462_v62 = vpop.eup %6461  ;;  %v4088_v57 = vmul.f32 0.5, %v6460_v60 }
 0xb8d   :  { %v6464_v21 = vpop.eup %6463  ;;  %v4110_v8 = vmul.f32 %v6462_v62, %v4090_v63  ;;  %v4124_v63 = vld [vmem:[#allocation3 + $0x3b0] sm:$0xff] }
 0xb8e   :  { %v6466_v14 = vpop.eup %6465  ;;  %v4092_v17 = vadd.f32 0.5, %v4088_v57  ;;  %v4109_v5 = vmul.f32 %v6464_v21, %v4089_v0  ;;  %v4127_v21 = vld [vmem:[#allocation3 + $0x3c8] sm:$0xff] }
 0xb8f   :  { %v4087_v2 = vmul.f32 0.5, %v6466_v14  ;;  %4115 = vst.msk [vmem:[#allocation2 + $0xc8] sm:$0xff] %vm484_vm3, %v4110_v8 }
 0xb90   :  { %v6468_v42 = vpop.eup %6467  ;;  %4114 = vst.msk [vmem:[#allocation2 + $0xc0] sm:$0xff] %vm484_vm3, %v4109_v5  ;;  %v6114_v29 = vpack.c.bf16 %v4110_v8, %v4109_v5 }
 0xb91   :  { %v6470_v27 = vpop.eup %6469  ;;  %v4091_v6 = vadd.f32 0.5, %v4087_v2  ;;  %v4112_v25 = vmul.f32 %v6468_v42, %v4092_v17  ;;  %v4126_v17 = vld [vmem:[#allocation3 + $0x3c0] sm:$0xff] }
 0xb92   :  { %6115 = vmatprep.subr.bf16.mxu0 %v6114_v29 }
 0xb93   :  { %6117 = vmatpush3.bf16.msra.mxu0 %v6114_v29  ;;  %v4111_v10 = vmul.f32 %v6470_v27, %v4091_v6  ;;  %4117 = vst.msk [vmem:[#allocation2 + $0xd8] sm:$0xff] %vm484_vm3, %v4112_v25  ;;  %v4129_v29 = vld [vmem:[#allocation3 + $0x3d8] sm:$0xff] }
 0xb95   :  { %4116 = vst.msk [vmem:[#allocation2 + $0xd0] sm:$0xff] %vm484_vm3, %v4111_v10  ;;  %v6118_v58 = vpack.c.bf16 %v4112_v25, %v4111_v10  ;;  %v4128_v10 = vld [vmem:[#allocation3 + $0x3d0] sm:$0xff] }
 0xb97   :  { %6119 = vmatprep.subr.bf16.mxu0 %v6118_v58 }
 0xb98   :  { %6121 = vmatpush3.bf16.msra.mxu0 %v6118_v58 }
 0xb9b   :  { %5979 = vmatmul.mubr.msk.f32.vlgmr.msra.gmra.mrb[128].mxu0 %vm290_vm2, %v6566_v11 }
 0xb9c   :  { %5981 = vmatprep.mubr.msk.f32.mxu0 %vm290_vm2, %v6567_v12 }
 0xb9f   :  { %5982 = vmatmul.mubr.msk.f32.gmra.mrb[130].mxu0 %vm290_vm2, %v6568_v13 }
 0xba0   :  { %5984 = vmatprep.mubr.msk.f32.mxu0 %vm290_vm2, %v6569_v20 }
 0xba3   :  { %5985 = vmatmul.mubr.msk.f32.gmra.mrb[132].mxu0 %vm290_vm2, %v6570_v33 }
 0xba4   :  { %5987 = vmatprep.mubr.msk.f32.mxu0 %vm290_vm2, %v6571_v34 }
 0xba7   :  { %5988 = vmatmul.mubr.msk.f32.gmra.mrb[134].mxu0 %vm290_vm2, %v6572_v35  ;;  %v4131_v35 = vld [vmem:[#allocation3 + $0x3e8] sm:$0xff] }
 0xba8   :  { %5990 = vmatprep.mubr.msk.f32.mxu0 %vm290_vm2, %v6573_v37 }
 0xbab   :  { %5991 = vmatmul.mubr.msk.f32.gmra.mrb[136].mxu0 %vm290_vm2, %v6574_v38 }
 0xbac   :  { %5993 = vmatprep.mubr.msk.f32.mxu0 %vm290_vm2, %v6575_v40 }
 0xbaf   :  { %5994 = vmatmul.mubr.msk.f32.gmra.mrb[138].mxu0 %vm290_vm2, %v6576_v41 }
 0xbb0   :  { %5996 = vmatprep.mubr.msk.f32.mxu0 %vm290_vm2, %v6577_v43  ;;  %v4130_v43 = vld [vmem:[#allocation3 + $0x3e0] sm:$0xff] }
 0xbb3   :  { %5997 = vmatmul.mubr.msk.f32.gmra.mrb[140].mxu0 %vm290_vm2, %v6578_v44 }
 0xbb4   :  { %5999 = vmatprep.mubr.msk.f32.mxu0 %vm290_vm2, %v6579_v45 }
 0xbb7   :  { %6000 = vmatmul.mubr.msk.f32.gmra.mrb[142].mxu0 %vm290_vm2, %v6580_v23 }
 0xc6e   :  { %v5980_v47 = vpop.f32.mrb[128].mxu0 }
 0xc6f   :  { %v4200_v59 = vpop.f32.mrb[129].mxu0  ;;  %v4280_v49 = vadd.f32 %v5980_v47, %v4119_v52 }
 0xc70   :  { %v4279_v50 = vadd.f32 %v4200_v59, %v4118_v3 }
 0xc71   :  { %v4296_v15 = vmul.f32 0.5, %v4280_v49 }
 0xc72   :  { %v5983_v24 = vpop.f32.mrb[130].mxu0  ;;  %v4295_v16 = vmul.f32 0.5, %v4279_v50 }
 0xc73   :  { %v4210_v19 = vpop.f32.mrb[131].mxu0  ;;  %v4282_v36 = vadd.f32 %v5983_v24, %v4121_v18  ;;  %6471 = vtanh.f32 %v4296_v15 }
 0xc74   :  { %v4281_v48 = vadd.f32 %v4210_v19, %v4120_v61  ;;  %6473 = vtanh.f32 %v4295_v16  ;;  %v4133_v16 = vld [vmem:[#allocation3 + $0x3f8] sm:$0xff] }
 0xc75   :  { %v4298_v46 = vmul.f32 0.5, %v4282_v36 }
 0xc76   :  { %v5986_v53 = vpop.f32.mrb[132].mxu0  ;;  %v4297_v28 = vmul.f32 0.5, %v4281_v48 }
 0xc77   :  { %v4284_v54 = vadd.f32 %v5986_v53, %v4123_v32  ;;  %v4220_v30 = vpop.f32.mrb[133].mxu0 }
 0xc78   :  { %v4283_v4 = vadd.f32 %v4220_v30, %v4122_v7 }
 0xc79   :  { %v4300_v51 = vmul.f32 0.5, %v4284_v54 }
 0xc7a   :  { %v4299_v56 = vmul.f32 0.5, %v4283_v4  ;;  %v5989_v26 = vpop.f32.mrb[134].mxu0 }
 0xc7b   :  { %6475 = vtanh.f32 %v4300_v51  ;;  %v4286_v9 = vadd.f32 %v5989_v26, %v4125_v22  ;;  %v4230_v60 = vpop.f32.mrb[135].mxu0 }
 0xc7c   :  { %6477 = vtanh.f32 %v4299_v56  ;;  %v4285_v0 = vadd.f32 %v4230_v60, %v4124_v63 }
 0xc7d   :  { %6479 = vtanh.f32 %v4298_v46  ;;  %v4302_v62 = vmul.f32 0.5, %v4286_v9  ;;  %v6472_v42 = vpop.eup %6471 }
 0xc7e   :  { %6481 = vtanh.f32 %v4297_v28  ;;  %v4301_v57 = vmul.f32 0.5, %v4285_v0  ;;  %v5992_v8 = vpop.f32.mrb[136].mxu0  ;;  %v6474_v6 = vpop.eup %6473  ;;  %v4312_v13 = vmul.f32 0.5, %v6472_v42 }
 0xc7f   :  { %6483 = vtanh.f32 %v4302_v62  ;;  %v4288_v14 = vadd.f32 %v5992_v8, %v4127_v21  ;;  %v4240_v5 = vpop.f32.mrb[137].mxu0  ;;  %v4311_v33 = vmul.f32 0.5, %v6474_v6 }
 0xc80   :  { %6485 = vtanh.f32 %v4301_v57  ;;  %v4287_v2 = vadd.f32 %v4240_v5, %v4126_v17  ;;  %v4320_v59 = vadd.f32 0.5, %v4312_v13 }
 0xc81   :  { %6487 = vtanh.f32 %v4288_v14  ;;  %v4319_v24 = vadd.f32 0.5, %v4311_v33  ;;  %v4381_v33 = vld [vmem:[#allocation2 + $0x48] sm:$0xff] }
 0xc82   :  { %6489 = vtanh.f32 %v4287_v2  ;;  %v5995_v27 = vpop.f32.mrb[138].mxu0 }
 0xc83   :  { %v4290_v25 = vadd.f32 %v5995_v27, %v4129_v29  ;;  %v4250_v58 = vpop.f32.mrb[139].mxu0 }
 0xc84   :  { %v4289_v11 = vadd.f32 %v4250_v58, %v4128_v10 }
 0xc85   :  { %v6476_v12 = vpop.eup %6475  ;;  %6491 = vtanh.f32 %v4290_v25 }
 0xc86   :  { %v6478_v20 = vpop.eup %6477  ;;  %v4316_v34 = vmul.f32 0.5, %v6476_v12  ;;  %6493 = vtanh.f32 %v4289_v11  ;;  %v5998_v37 = vpop.f32.mrb[140].mxu0 }
 0xc87   :  { %v6480_v38 = vpop.eup %6479  ;;  %v4315_v40 = vmul.f32 0.5, %v6478_v20  ;;  %v4292_v41 = vadd.f32 %v5998_v37, %v4131_v35  ;;  %v4260_v44 = vpop.f32.mrb[141].mxu0  ;;  %v4377_v20 = vld [vmem:[#allocation2 + $0x28] sm:$0xff]  ;;  %v4372_v35 = vld [vmem:[#allocation2] sm:$0xff] }
 0xc88   :  { %v6482_v45 = vpop.eup %6481  ;;  %v4324_v23 = vadd.f32 0.5, %v4316_v34  ;;  %v4291_v47 = vadd.f32 %v4260_v44, %v4130_v43  ;;  %v4314_v19 = vmul.f32 0.5, %v6480_v38  ;;  %v4389_v37 = vld [vmem:[#allocation2 + $0x88] sm:$0xff] }
 0xc89   :  { %v6484_v52 = vpop.eup %6483  ;;  %v4323_v49 = vadd.f32 0.5, %v4315_v40  ;;  %v4332_v3 = vmul.f32 0.5, %v4292_v41  ;;  %v4313_v48 = vmul.f32 0.5, %v6482_v45  ;;  %v4385_v43 = vld [vmem:[#allocation2 + $0x68] sm:$0xff] }
 0xc8a   :  { %v6486_v50 = vpop.eup %6485  ;;  %v4318_v15 = vmul.f32 0.5, %v6484_v52  ;;  %v4331_v18 = vmul.f32 0.5, %v4291_v47  ;;  %v6001_v36 = vpop.f32.mrb[142].mxu0  ;;  %v4348_v30 = vmul.f32 %v4324_v23, %v8019_v31  ;;  %v4322_v26 = vadd.f32 0.5, %v4314_v19  ;;  %v4132_v31 = vld [vmem:[#allocation3 + $0x3f0] sm:$0xff]  ;;  %v4393_v44 = vld [vmem:[#allocation2 + $0xa8] sm:$0xff] }
 0xc8b   :  { %v6488_v61 = vpop.eup %6487  ;;  %v4317_v32 = vmul.f32 0.5, %v6486_v50  ;;  %6495 = vtanh.f32 %v4332_v3  ;;  %v4294_v53 = vadd.f32 %v6001_v36, %v4133_v16  ;;  %v4270_v54 = vpop.f32.mrb[143].mxu0  ;;  %v4347_v51 = vmul.f32 %v4323_v49, %v8021_v39  ;;  %v4397_v45 = vld [vmem:[#allocation2 + $0xc8] sm:$0xff]  ;;  %v4376_v49 = vld [vmem:[#allocation2 + $0x20] sm:$0xff] }
 0xc8c   :  { %v6490_v7 = vpop.eup %6489  ;;  %v4326_v4 = vadd.f32 0.5, %v4318_v15  ;;  %v4352_v46 = vmul.f32 %v6488_v61, %v4320_v59  ;;  %6497 = vtanh.f32 %v4331_v18  ;;  %v4321_v60 = vadd.f32 0.5, %v4313_v48  ;;  %v4380_v3 = vld [vmem:[#allocation2 + $0x40] sm:$0xff] }
 0xc8d   :  { %v4325_v28 = vadd.f32 0.5, %v4317_v32  ;;  %v4351_v56 = vmul.f32 %v6490_v7, %v4319_v24  ;;  %v4334_v22 = vmul.f32 0.5, %v4294_v53  ;;  %v4293_v39 = vadd.f32 %v4270_v54, %v4132_v31  ;;  %v4384_v18 = vld [vmem:[#allocation2 + $0x60] sm:$0xff] }
 0xc8e   :  { %v4356_v9 = vadd.f32 %v4352_v46, %v4348_v30  ;;  %v4350_v57 = vmul.f32 %v4326_v4, %v8027_v1  ;;  %v4388_v16 = vld [vmem:[#allocation2 + $0x80] sm:$0xff] }
 0xc8f   :  { %v6492_v63 = vpop.eup %6491  ;;  %v4355_v0 = vadd.f32 %v4351_v56, %v4347_v51  ;;  %6499 = vtanh.f32 %v4334_v22  ;;  %v4349_v8 = vmul.f32 %v4325_v28, %v8029_v55  ;;  %v4333_v42 = vmul.f32 0.5, %v4293_v39  ;;  %v4373_v55 = vld [vmem:[#allocation2 + $0x8] sm:$0xff]  ;;  %v4392_v36 = vld [vmem:[#allocation2 + $0xa0] sm:$0xff] }
 0xc90   :  { %v6494_v62 = vpop.eup %6493  ;;  %6501 = vtanh.f32 %v4356_v9  ;;  %v4354_v21 = vmul.f32 %v6492_v63, %v4322_v26  ;;  %v4375_v26 = vld [vmem:[#allocation2 + $0x18] sm:$0xff] }
 0xc91   :  { %6503 = vtanh.f32 %v4355_v0  ;;  %v4353_v14 = vmul.f32 %v6494_v62, %v4321_v60  ;;  %v4379_v9 = vld [vmem:[#allocation2 + $0x38] sm:$0xff] }
 0xc92   :  { %v4358_v17 = vadd.f32 %v4354_v21, %v4350_v57  ;;  %v4383_v57 = vld [vmem:[#allocation2 + $0x58] sm:$0xff]  ;;  %v4396_v21 = vld [vmem:[#allocation2 + $0xc0] sm:$0xff] }
 0xc93   :  { %v4357_v5 = vadd.f32 %v4353_v14, %v4349_v8 }
 0xc94   :  { %6505 = vtanh.f32 %v4358_v17 }
 0xc95   :  { %v6496_v2 = vpop.eup %6495  ;;  %6507 = vtanh.f32 %v4333_v42 }
 0xc96   :  { %v6498_v29 = vpop.eup %6497  ;;  %v4340_v27 = vmul.f32 0.5, %v6496_v2  ;;  %6509 = vtanh.f32 %v4357_v5  ;;  %v4387_v5 = vld [vmem:[#allocation2 + $0x78] sm:$0xff] }
 0xc97   :  { %v4339_v6 = vmul.f32 0.5, %v6498_v29  ;;  %v4391_v2 = vld [vmem:[#allocation2 + $0x98] sm:$0xff] }
 0xc98   :  { %v4344_v25 = vadd.f32 0.5, %v4340_v27 }
 0xc99   :  { %v6500_v10 = vpop.eup %6499  ;;  %v4343_v58 = vadd.f32 0.5, %v4339_v6 }
 0xc9a   :  { %v6502_v1 = vpop.eup %6501  ;;  %v4342_v11 = vmul.f32 0.5, %v6500_v10  ;;  %v4395_v10 = vld [vmem:[#allocation2 + $0xb8] sm:$0xff] }
 0xc9b   :  { %v6504_v12 = vpop.eup %6503  ;;  %v8101_v13 = vmul.f32 %v6502_v1, %v4344_v25 }
 0xc9c   :  { %v8103_v34 = vmul.f32 %v6504_v12, %v4343_v58  ;;  %v4346_v52 = vadd.f32 0.5, %v4342_v11  ;;  %v4399_v58 = vld [vmem:[#allocation2 + $0xd8] sm:$0xff] }
 0xc9d   :  { %4369 = vst.msk [vmem:[#allocation2 + $0xe8] sm:$0xff] %vm484_vm3, %v8101_v13  ;;  %v4405_v38 = vmul.f32 %v4373_v55, %v8101_v13  ;;  %v4409_v40 = vmul.f32 %v4377_v20, %v8101_v13  ;;  %v4413_v41 = vmul.f32 %v4381_v33, %v8101_v13  ;;  %v4421_v23 = vmul.f32 %v4389_v37, %v8101_v13 }
 0xc9e   :  { %4368 = vst.msk [vmem:[#allocation2 + $0xe0] sm:$0xff] %vm484_vm3, %v8103_v34  ;;  %v4404_v47 = vmul.f32 %v4372_v35, %v8103_v34  ;;  %v6506_v59 = vpop.eup %6505  ;;  %v4417_v50 = vmul.f32 %v4385_v43, %v8101_v13  ;;  %v4425_v24 = vmul.f32 %v4393_v44, %v8101_v13  ;;  %v4429_v19 = vmul.f32 %v4397_v45, %v8101_v13 }
 0xc9f   :  { %v4437_v15 = vsel %vm484_vm3, %v4405_v38, 0.0  ;;  %v4450_v61 = vsel %vm484_vm3, %v4409_v40, 0.0  ;;  %v4463_v48 = vsel %vm484_vm3, %v4413_v41, 0.0  ;;  %v4408_v32 = vmul.f32 %v4376_v49, %v8103_v34  ;;  %v6508_v22 = vpop.eup %6507  ;;  %v4378_v49 = vld [vmem:[#allocation2 + $0x30] sm:$0xff] }
 0xca0   :  { %v4412_v53 = vmul.f32 %v4380_v3, %v8103_v34  ;;  %v4489_v54 = vsel %vm484_vm3, %v4421_v23, 0.0  ;;  %v4416_v7 = vmul.f32 %v4384_v18, %v8103_v34  ;;  %v4420_v30 = vmul.f32 %v4388_v16, %v8103_v34  ;;  %v6510_v20 = vpop.eup %6509  ;;  %v4382_v3 = vld [vmem:[#allocation2 + $0x50] sm:$0xff] }
 0xca1   :  { %v4424_v4 = vmul.f32 %v4392_v36, %v8103_v34  ;;  %v4436_v46 = vsel %vm484_vm3, %v4404_v47, 0.0  ;;  %v4449_v51 = vsel %vm484_vm3, %v4408_v32, 0.0  ;;  %v8129_v56 = vmul.f32 %v6506_v59, %v4346_v52  ;;  %v4374_v59 = vld [vmem:[#allocation2 + $0x10] sm:$0xff] }
 0xca2   :  { %v4462_v28 = vsel %vm484_vm3, %v4412_v53, 0.0  ;;  %v4476_v63 = vsel %vm484_vm3, %v4417_v50, 0.0  ;;  %v8132_v60 = vadd.f32 %v4437_v15, %v4436_v46  ;;  %v8134_v0 = vadd.f32 %v4450_v61, %v4449_v51  ;;  %v4386_v15 = vld [vmem:[#allocation2 + $0x70] sm:$0xff] }
 0xca3   :  { %v8136_v62 = vadd.f32 %v4463_v48, %v4462_v28  ;;  %v4502_v31 = vsel %vm484_vm3, %v4425_v24, 0.0  ;;  %v4488_v8 = vsel %vm484_vm3, %v4420_v30, 0.0  ;;  %4371 = vst.msk [vmem:[#allocation2 + $0xf8] sm:$0xff] %vm484_vm3, %v8129_v56  ;;  %v4407_v14 = vmul.f32 %v4375_v26, %v8129_v56  ;;  %v4394_v32 = vld [vmem:[#allocation2 + $0xb0] sm:$0xff] }
 0xca4   :  { %v4411_v39 = vmul.f32 %v4379_v9, %v8129_v56  ;;  %v4401_v17 = vld [vmem:[#allocation2 + $0xe8] sm:$0xff]  ;;  %v4428_v42 = vmul.f32 %v4396_v21, %v8103_v34  ;;  %v4475_v29 = vsel %vm484_vm3, %v4416_v7, 0.0  ;;  %v4490_v27 = vadd.f32 %v4489_v54, %v4488_v8  ;;  %v4398_v53 = vld [vmem:[#allocation2 + $0xd0] sm:$0xff] }
 0xca5   :  { %v4415_v6 = vmul.f32 %v4383_v57, %v8129_v56  ;;  %v4400_v25 = vld [vmem:[#allocation2 + $0xe0] sm:$0xff]  ;;  %v4501_v1 = vsel %vm484_vm3, %v4424_v4, 0.0  ;;  %v4419_v11 = vmul.f32 %v4387_v5, %v8129_v56  ;;  %v4423_v12 = vmul.f32 %v4391_v2, %v8129_v56 }
 0xca6   :  { %v4341_v55 = vmul.f32 0.5, %v6508_v22  ;;  %v4427_v33 = vmul.f32 %v4395_v10, %v8129_v56  ;;  %v4431_v35 = vmul.f32 %v4399_v58, %v8129_v56  ;;  %v4432_v37 = vmul.f32 %v4400_v25, %v8103_v34 }
 0xca7   :  { %v4433_v38 = vmul.f32 %v4401_v17, %v8101_v13  ;;  %v4441_v40 = vsel %vm484_vm3, %v4407_v14, 0.0  ;;  %v4454_v41 = vsel %vm484_vm3, %v4411_v39, 0.0  ;;  %v4477_v44 = vadd.f32 %v4476_v63, %v4475_v29 }
 0xca8   :  { %v4345_v43 = vadd.f32 0.5, %v4341_v55  ;;  %v4467_v45 = vsel %vm484_vm3, %v4415_v6, 0.0  ;;  %v4503_v23 = vadd.f32 %v4502_v31, %v4501_v1  ;;  %v4514_v47 = vsel %vm484_vm3, %v4428_v42, 0.0 }
 0xca9   :  { %v4515_v52 = vsel %vm484_vm3, %v4429_v19, 0.0  ;;  %v4480_v34 = vsel %vm484_vm3, %v4419_v11, 0.0  ;;  %v4493_v13 = vsel %vm484_vm3, %v4423_v12, 0.0  ;;  %v4506_v16 = vsel %vm484_vm3, %v4427_v33, 0.0  ;;  %v4390_v19 = vld [vmem:[#allocation2 + $0x90] sm:$0xff] }
 0xcaa   :  { %v4365_v50 = vmul.f32 %v6510_v20, %v4345_v43  ;;  %v4516_v24 = vadd.f32 %v4515_v52, %v4514_v47  ;;  %v4403_v18 = vld [vmem:[#allocation2 + $0xf8] sm:$0xff]  ;;  %v4519_v36 = vsel %vm484_vm3, %v4431_v35, 0.0  ;;  %v4527_v61 = vsel %vm484_vm3, %v4432_v37, 0.0 }
 0xcab   :  { %v4528_v48 = vsel %vm484_vm3, %v4433_v38, 0.0  ;;  %v4435_v22 = vmul.f32 %v4403_v18, %v8129_v56 }
 0xcac   :  { %4370 = vst.msk [vmem:[#allocation2 + $0xf0] sm:$0xff] %vm484_vm3, %v4365_v50  ;;  %v4406_v54 = vmul.f32 %v4374_v59, %v4365_v50  ;;  %v4410_v7 = vmul.f32 %v4378_v49, %v4365_v50  ;;  %v4414_v30 = vmul.f32 %v4382_v3, %v4365_v50  ;;  %v4418_v4 = vmul.f32 %v4386_v15, %v4365_v50 }
 0xcad   :  { %v4422_v46 = vmul.f32 %v4390_v19, %v4365_v50  ;;  %v4426_v51 = vmul.f32 %v4394_v32, %v4365_v50  ;;  %v4430_v28 = vmul.f32 %v4398_v53, %v4365_v50 }
 0xcae   :  { %v4439_v26 = vsel %vm484_vm3, %v4406_v54, 0.0  ;;  %v4452_v9 = vsel %vm484_vm3, %v4410_v7, 0.0  ;;  %v4465_v63 = vsel %vm484_vm3, %v4414_v30, 0.0  ;;  %v4478_v57 = vsel %vm484_vm3, %v4418_v4, 0.0 }
 0xcaf   :  { %v4440_v21 = vadd.f32 %v4439_v26, %v8132_v60  ;;  %v4453_v31 = vadd.f32 %v4452_v9, %v8134_v0  ;;  %v4466_v8 = vadd.f32 %v4465_v63, %v8136_v62  ;;  %v4491_v14 = vsel %vm484_vm3, %v4422_v46, 0.0 }
 0xcb0   :  { %v4479_v39 = vadd.f32 %v4478_v57, %v4477_v44  ;;  %v4492_v17 = vadd.f32 %v4491_v14, %v4490_v27  ;;  %v4504_v56 = vsel %vm484_vm3, %v4426_v51, 0.0  ;;  %v4517_v5 = vsel %vm484_vm3, %v4430_v28, 0.0 }
 0xcb1   :  { %v4442_v2 = vadd.f32 %v4441_v40, %v4440_v21  ;;  %v4455_v42 = vadd.f32 %v4454_v41, %v4453_v31  ;;  %v4468_v29 = vadd.f32 %v4467_v45, %v4466_v8  ;;  %v4505_v6 = vadd.f32 %v4504_v56, %v4503_v23 }
 0xcb2   :  { %v4481_v25 = vadd.f32 %v4480_v34, %v4479_v39  ;;  %v4494_v10 = vadd.f32 %v4493_v13, %v4492_v17  ;;  %v4518_v58 = vadd.f32 %v4517_v5, %v4516_v24  ;;  %v4529_v60 = vadd.f32 %v4528_v48, %v4527_v61 }
 0xcb3   :  { %v4402_v1 = vld [vmem:[#allocation2 + $0xf0] sm:$0xff]  ;;  %v4443_v0 = vrot.slane %v4442_v2, 4  ;;  %v4456_v11 = vrot.slane %v4455_v42, 4  ;;  %v4469_v62 = vrot.slane %v4468_v29, 4  ;;  %v4507_v12 = vadd.f32 %v4506_v16, %v4505_v6 }
 0xcb4   :  { %v4434_v55 = vmul.f32 %v4402_v1, %v4365_v50  ;;  %v4482_v20 = vrot.slane %v4481_v25, 4  ;;  %v4495_v27 = vrot.slane %v4494_v10, 4  ;;  %v4520_v33 = vadd.f32 %v4519_v36, %v4518_v58 }
 0xcb5   :  { %v4444_v35 = vadd.f32 %v4443_v0, %v4442_v2  ;;  %v4457_v37 = vadd.f32 %v4456_v11, %v4455_v42  ;;  %v4470_v38 = vadd.f32 %v4469_v62, %v4468_v29  ;;  %v4508_v40 = vrot.slane %v4507_v12, 4 }
 0xcb6   :  { %v4483_v41 = vadd.f32 %v4482_v20, %v4481_v25  ;;  %v4496_v43 = vadd.f32 %v4495_v27, %v4494_v10  ;;  %v4521_v44 = vrot.slane %v4520_v33, 4  ;;  %v4530_v45 = vsel %vm484_vm3, %v4434_v55, 0.0 }
 0xcb7   :  { %v4445_v23 = vrot.slane %v4444_v35, 2  ;;  %v4458_v47 = vrot.slane %v4457_v37, 2  ;;  %v4471_v52 = vrot.slane %v4470_v38, 2  ;;  %v4509_v59 = vadd.f32 %v4508_v40, %v4507_v12 }
 0xcb8   :  { %v4497_v49 = vrot.slane %v4496_v43, 2  ;;  %v4522_v3 = vadd.f32 %v4521_v44, %v4520_v33  ;;  %v4531_v34 = vadd.f32 %v4530_v45, %v4529_v60  ;;  %v4484_v18 = vrot.slane %v4483_v41, 2 }
 0xcb9   :  { %v4446_v50 = vadd.f32 %v4445_v23, %v4444_v35  ;;  %v4459_v13 = vadd.f32 %v4458_v47, %v4457_v37  ;;  %v4472_v24 = vadd.f32 %v4471_v52, %v4470_v38  ;;  %v4510_v15 = vrot.slane %v4509_v59, 2 }
 0xcba   :  { %v4498_v16 = vadd.f32 %v4497_v49, %v4496_v43  ;;  %v4523_v36 = vrot.slane %v4522_v3, 2  ;;  %v4532_v61 = vsel %vm484_vm3, %v4435_v22, 0.0  ;;  %v4485_v26 = vadd.f32 %v4484_v18, %v4483_v41 }
 0xcbb   :  { %v4447_v48 = vrot.slane %v4446_v50, 1  ;;  %v4460_v19 = vrot.slane %v4459_v13, 1  ;;  %v4473_v32 = vrot.slane %v4472_v24, 1  ;;  %v4511_v53 = vadd.f32 %v4510_v15, %v4509_v59 }
 0xcbc   :  { %v4499_v54 = vrot.slane %v4498_v16, 1  ;;  %v4524_v7 = vadd.f32 %v4523_v36, %v4522_v3  ;;  %v4533_v30 = vadd.f32 %v4532_v61, %v4531_v34  ;;  %v4486_v2 = vrot.slane %v4485_v26, 1 }
 0xcbd   :  { %v4448_v4 = vadd.f32 %v4447_v48, %v4446_v50  ;;  %v4461_v46 = vadd.f32 %v4460_v19, %v4459_v13  ;;  %v4474_v51 = vadd.f32 %v4473_v32, %v4472_v24  ;;  %v4512_v28 = vrot.slane %v4511_v53, 1 }
 0xcbe   :  { %v4500_v9 = vadd.f32 %v4499_v54, %v4498_v16  ;;  %v4525_v63 = vrot.slane %v4524_v7, 1  ;;  %v4534_v57 = vrot.slane %v4533_v30, 4  ;;  %v4487_v60 = vadd.f32 %v4486_v2, %v4485_v26  ;;  %v4629_v2 = vld [vmem:[%s8227_s1] sm:$0xff]  ;;  %s6607_s1 = smov [#allocation4]  }
 0xcbf   :  { %v4513_v21 = vadd.f32 %v4512_v28, %v4511_v53  ;;  %v4540_v31 = vsel %vm484_vm3, %v4448_v4, -inf  ;;  %v4541_v22 = vsel %vm484_vm3, %v4461_v46, -inf  ;;  %v4542_v39 = vsel %vm484_vm3, %v4474_v51, -inf  ;;  %s4764_s17 = sshll.u32 %s6607_s1, 4  ;;  %s4765_s17 = int_to_ptr.vmem [resolvable:$true] %s4764_s17 }
 0xcc0   :  { %v4526_v8 = vadd.f32 %v4525_v63, %v4524_v7  ;;  %v4535_v14 = vadd.f32 %v4534_v57, %v4533_v30  ;;  %v4544_v17 = vsel %vm484_vm3, %v4500_v9, -inf  ;;  %v4543_v11 = vsel %vm484_vm3, %v4487_v60, -inf  ;;  %s6581_s18 = scalar_lea.vmem %s4765_s17, 32  ;;  %p6586_p1 = scmp.lt.s32.totalorder %s4765_s17, %s4765_s17 }
 0xcc1   :  { %v4545_v56 = vmax.f32 %v4540_v31, %v4544_v17  ;;  %v4546_v5 = vsel %vm484_vm3, %v4513_v21, -inf  ;;  %p6582_p0 = scmp.ne.s32.totalorder %s4765_s17, %s6581_s18  ;;  %p6587_p2 = scmp.lt.s32.totalorder %s6581_s18, %s6581_s18 }
 0xcc2   :  { %v4536_v42 = vrot.slane %v4535_v14, 2  ;;  %v4547_v29 = vmax.f32 %v4541_v22, %v4546_v5  ;;  %v4548_v6 = vsel %vm484_vm3, %v4526_v8, -inf }
 0xcc3   :  { %v4549_v25 = vmax.f32 %v4542_v39, %v4548_v6  ;;  %v4633_v6 = vrot.slane %v4629_v2, 3  ;;  %p6588_p3 = por %p6587_p2, %p6586_p1 }
 0xcc4   :  { %v4537_v10 = vadd.f32 %v4536_v42, %v4535_v14  ;;  %v4552_v58 = vmax.f32 %v4545_v56, %v4547_v29  ;;  %v4631_v42 = vrot.slane %v4629_v2, 1  ;;  %v4632_v29 = vrot.slane %v4629_v2, 2 }
 0xcc5   :  { %p6589_p4 = pnand %p6588_p3, %p6582_p0 }
 0xcc6   :  { %v4538_v1 = vrot.slane %v4537_v10, 1 }
 0xcc8   :  { %v4539_v0 = vadd.f32 %v4538_v1, %v4537_v10  ;;  %v4634_v10 = vrot.slane %v4629_v2, 4 }
 0xcca   :  { %v4550_v62 = vsel %vm484_vm3, %v4539_v0, -inf }
 0xccb   :  { %v4551_v12 = vmax.f32 %v4543_v11, %v4550_v62 }
 0xccd   :  { %v4553_v55 = vmax.f32 %v4549_v25, %v4551_v12 }
 0xccf   :  { %v4554_v20 = vmax.f32 %v4552_v58, %v4553_v55  ;;  %v4635_v58 = vrot.slane %v4629_v2, 5 }
 0xcd1   :  { %v4555_v27 = vsub.f32 %v4448_v4, %v4554_v20  ;;  %v4556_v33 = vsub.f32 %v4461_v46, %v4554_v20  ;;  %v4557_v35 = vsub.f32 %v4474_v51, %v4554_v20  ;;  %v4558_v37 = vsub.f32 %v4487_v60, %v4554_v20 }
 0xcd2   :  { %v4559_v38 = vsub.f32 %v4500_v9, %v4554_v20  ;;  %v4560_v40 = vsub.f32 %v4513_v21, %v4554_v20  ;;  %v4561_v41 = vsub.f32 %v4526_v8, %v4554_v20  ;;  %v4562_v43 = vsub.f32 %v4539_v0, %v4554_v20 }
 0xcd3   :  { %v4563_v44 = vmul.f32 1.442695, %v4555_v27  ;;  %v4565_v45 = vmul.f32 1.442695, %v4556_v33  ;;  %v4567_v23 = vmul.f32 1.442695, %v4557_v35  ;;  %v4616_v21 = vlaneseq }
 0xcd4   :  { %v4569_v47 = vmul.f32 1.442695, %v4558_v37  ;;  %v4571_v52 = vmul.f32 1.442695, %v4559_v38  ;;  %v4573_v59 = vmul.f32 1.442695, %v4560_v40 }
 0xcd5   :  { %6511 = vpow2.f32 %v4563_v44  ;;  %v4575_v49 = vmul.f32 1.442695, %v4561_v41  ;;  %v4577_v3 = vmul.f32 1.442695, %v4562_v43  ;;  %v4617_v8 = vshrl.u32 %v4616_v21, 7 }
 0xcd6   :  { %6513 = vpow2.f32 %v4565_v45  ;;  %v4636_v60 = vrot.slane %v4629_v2, 6  ;;  %v4637_v33 = vrot.slane %v4629_v2, 7 }
 0xcd7   :  { %6515 = vpow2.f32 %v4567_v23  ;;  %v4618_v17 = vsub.s32 0, %v4617_v8 }
 0xcd8   :  { %6517 = vpow2.f32 %v4569_v47 }
 0xcd9   :  { %6519 = vpow2.f32 %v4571_v52 }
 0xcda   :  { %6521 = vpow2.f32 %v4573_v59 }
 0xcdb   :  { %6523 = vpow2.f32 %v4575_v49 }
 0xcdc   :  { %6525 = vpow2.f32 %v4577_v3 }
 0xcdf   :  { %v6512_v34 = vpop.eup %6511 }
 0xce0   :  { %v6514_v50 = vpop.eup %6513 }
 0xce1   :  { %v6516_v13 = vpop.eup %6515  ;;  %v4587_v24 = vrot.slane %v6514_v50, 7 }
 0xce2   :  { %v6518_v15 = vpop.eup %6517  ;;  %v4590_v18 = vrot.slane %v6516_v13, 6 }
 0xce3   :  { %v6520_v16 = vpop.eup %6519  ;;  %v4589_v36 = vsel %vm4588_vm4, %v4587_v24, %v6512_v34  ;;  %v4593_v61 = vrot.slane %v6518_v15, 5 }
 0xce4   :  { %v6522_v48 = vpop.eup %6521  ;;  %v4592_v19 = vsel %vm4591_vm5, %v4590_v18, %v4589_v36  ;;  %v4596_v32 = vrot.slane %v6520_v16, 4 }
 0xce5   :  { %v6524_v53 = vpop.eup %6523  ;;  %v4595_v54 = vsel %vm4594_vm6, %v4593_v61, %v4592_v19  ;;  %v4599_v7 = vrot.slane %v6522_v48, 3 }
 0xce6   :  { %v6526_v30 = vpop.eup %6525  ;;  %v4598_v4 = vsel %vm4597_vm7, %v4596_v32, %v4595_v54  ;;  %v4602_v46 = vrot.slane %v6524_v53, 2 }
 0xce7   :  { %v4601_v51 = vsel %vm4600_vm8, %v4599_v7, %v4598_v4  ;;  %v4605_v28 = vrot.slane %v6526_v30, 1 }
 0xce8   :  { %v4604_v26 = vsel %vm4603_vm9, %v4602_v46, %v4601_v51 }
 0xce9   :  { %v4607_v9 = vsel %vm4606_vm10, %v4605_v28, %v4604_v26 }
 0xcea   :  { %v4609_v63 = vsel %vm484_vm3, %v4607_v9, 0.0 }
 0xceb   :  { %v4610_v57 = vrot.slane %v4609_v63, 4 }
 0xced   :  { %v4611_v31 = vadd.f32 %v4610_v57, %v4609_v63 }
 0xcef   :  { %v4612_v22 = vrot.slane %v4611_v31, 2 }
 0xcf1   :  { %v4613_v14 = vadd.f32 %v4612_v22, %v4611_v31 }
 0xcf3   :  { %v4614_v39 = vrot.slane %v4613_v14, 1 }
 0xcf5   :  { %v4615_v56 = vadd.f32 %v4614_v39, %v4613_v14 }
 0xcf7   :  { %v4619_v5 = vrot.slane %v4615_v56, %v4618_v17 }
 0xcf9   :  { %6527 = vrcp.f32 %v4619_v5 }
 0xd03   :  { %v6528_v25 = vpop.eup %6527 }
 0xd04   :  { %v4621_v1 = vmul.f32 %v6528_v25, %v6512_v34  ;;  %v4622_v0 = vmul.f32 %v6528_v25, %v6514_v50  ;;  %v4623_v11 = vmul.f32 %v6528_v25, %v6516_v13  ;;  %v4624_v62 = vmul.f32 %v6528_v25, %v6518_v15 }
 0xd05   :  { %v4625_v12 = vmul.f32 %v6528_v25, %v6520_v16  ;;  %v4626_v55 = vmul.f32 %v6528_v25, %v6522_v48  ;;  %v4627_v20 = vmul.f32 %v6528_v25, %v6524_v53  ;;  %v4628_v27 = vmul.f32 %v6528_v25, %v6526_v30 }
 0xd06   :  { %v4647_v35 = vmul.f32 %v4631_v42, %v4622_v0  ;;  %v4648_v37 = vmul.f32 %v4632_v29, %v4623_v11  ;;  %v4649_v38 = vmul.f32 %v4633_v6, %v4624_v62  ;;  %v4646_v41 = vmul.f32 %v4629_v2, %v4621_v1 }
 0xd07   :  { %v4650_v40 = vmul.f32 %v4634_v10, %v4625_v12  ;;  %v4651_v43 = vmul.f32 %v4635_v58, %v4626_v55  ;;  %v4652_v23 = vmul.f32 %v4636_v60, %v4627_v20  ;;  %v4653_v47 = vmul.f32 %v4637_v33, %v4628_v27 }
 0xd08   :  { %v4662_v44 = vrot.slane %v4647_v35, 7  ;;  %v4664_v45 = vrot.slane %v4648_v37, 6  ;;  %v4666_v59 = vrot.slane %v4649_v38, 5 }
 0xd09   :  { %v4668_v3 = vrot.slane %v4650_v40, 4  ;;  %v4670_v50 = vrot.slane %v4651_v43, 3  ;;  %v4672_v24 = vrot.slane %v4652_v23, 2  ;;  %v4674_v18 = vrot.slane %v4653_v47, 1 }
 0xd0a   :  { %v4663_v52 = vsel %vm4588_vm4, %v4662_v44, %v4646_v41 }
 0xd0b   :  { %v4665_v49 = vsel %vm4591_vm5, %v4664_v45, %v4663_v52 }
 0xd0c   :  { %v4667_v34 = vsel %vm4594_vm6, %v4666_v59, %v4665_v49 }
 0xd0d   :  { %v4669_v13 = vsel %vm4597_vm7, %v4668_v3, %v4667_v34 }
 0xd0e   :  { %v4671_v15 = vsel %vm4600_vm8, %v4670_v50, %v4669_v13 }
 0xd0f   :  { %v4673_v16 = vsel %vm4603_vm9, %v4672_v24, %v4671_v15 }
 0xd10   :  { %v4675_v36 = vsel %vm4606_vm10, %v4674_v18, %v4673_v16 }
 0xd11   :  { %v4677_v61 = vsel %vm484_vm3, %v4675_v36, 0.0 }
 0xd12   :  { %v4678_v48 = vrot.slane %v4677_v61, 4 }
 0xd14   :  { %v4679_v19 = vadd.f32 %v4678_v48, %v4677_v61 }
 0xd16   :  { %v4680_v32 = vrot.slane %v4679_v19, 2 }
 0xd18   :  { %v4681_v53 = vadd.f32 %v4680_v32, %v4679_v19 }
 0xd1a   :  { %v4682_v54 = vrot.slane %v4681_v53, 1 }
 0xd1c   :  { %v4683_v7 = vadd.f32 %v4682_v54, %v4681_v53 }
 0xd1e   :  { %v4687_v30 = vrot.slane %v4683_v7, %v4618_v17 }
 0xd20   :  { %v4688_v4 = vsub.f32 %v4629_v2, %v4687_v30 }
 0xd22   :  { %v4689_v46 = vmul.f32 %v4688_v4, %v4688_v4 }
 0xd24   :  { %v4691_v51 = vrot.slane %v4689_v46, 1  ;;  %v4692_v28 = vrot.slane %v4689_v46, 2  ;;  %v4693_v26 = vrot.slane %v4689_v46, 3  ;;  %v4694_v9 = vrot.slane %v4689_v46, 4 }
 0xd25   :  { %v4695_v63 = vrot.slane %v4689_v46, 5  ;;  %v4696_v57 = vrot.slane %v4689_v46, 6  ;;  %v4697_v21 = vrot.slane %v4689_v46, 7  ;;  %v4706_v31 = vmul.f32 %v4689_v46, %v4621_v1 }
 0xd26   :  { %v4707_v22 = vmul.f32 %v4691_v51, %v4622_v0  ;;  %v4708_v8 = vmul.f32 %v4692_v28, %v4623_v11  ;;  %v4709_v14 = vmul.f32 %v4693_v26, %v4624_v62  ;;  %v4710_v39 = vmul.f32 %v4694_v9, %v4625_v12 }
 0xd27   :  { %v4711_v56 = vmul.f32 %v4695_v63, %v4626_v55  ;;  %v4712_v5 = vmul.f32 %v4696_v57, %v4627_v20  ;;  %v4713_v42 = vmul.f32 %v4697_v21, %v4628_v27 }
 0xd28   :  { %v4722_v29 = vrot.slane %v4707_v22, 7  ;;  %v4724_v6 = vrot.slane %v4708_v8, 6  ;;  %v4726_v2 = vrot.slane %v4709_v14, 5  ;;  %v4728_v10 = vrot.slane %v4710_v39, 4 }
 0xd29   :  { %v4730_v60 = vrot.slane %v4711_v56, 3  ;;  %v4732_v0 = vrot.slane %v4712_v5, 2  ;;  %v4734_v62 = vrot.slane %v4713_v42, 1 }
 0xd2a   :  { %v4723_v17 = vsel %vm4588_vm4, %v4722_v29, %v4706_v31 }
 0xd2b   :  { %v4725_v25 = vsel %vm4591_vm5, %v4724_v6, %v4723_v17 }
 0xd2c   :  { %v4727_v58 = vsel %vm4594_vm6, %v4726_v2, %v4725_v25 }
 0xd2d   :  { %v4729_v1 = vsel %vm4597_vm7, %v4728_v10, %v4727_v58 }
 0xd2e   :  { %v4731_v11 = vsel %vm4600_vm8, %v4730_v60, %v4729_v1 }
 0xd2f   :  { %v4733_v12 = vsel %vm4603_vm9, %v4732_v0, %v4731_v11 }
 0xd30   :  { %v4735_v55 = vsel %vm4606_vm10, %v4734_v62, %v4733_v12 }
 0xd31   :  { %v4737_v20 = vsel %vm484_vm3, %v4735_v55, 0.0 }
 0xd32   :  { %v4738_v27 = vrot.slane %v4737_v20, 4 }
 0xd34   :  { %v4739_v33 = vadd.f32 %v4738_v27, %v4737_v20 }
 0xd36   :  { %v4740_v35 = vrot.slane %v4739_v33, 2 }
 0xd38   :  { %v4741_v37 = vadd.f32 %v4740_v35, %v4739_v33 }
 0xd3a   :  { %v4742_v38 = vrot.slane %v4741_v37, 1 }
 0xd3c   :  { %v4743_v40 = vadd.f32 %v4742_v38, %v4741_v37 }
 0xd3e   :  { %6529 = vrsqrt.f32 %v4743_v40  ;;  %vm4746_vm11 = vcmp.eq.f32.partialorder %v4743_v40, inf  ;;  %v4749_v44 = vand.u32 2147483648, %v4743_v40  ;;  %vm4748_vm12 = vcmp.eq.f32.partialorder %v4743_v40, 0.0 }
 0xd48   :  { %v6530_v41 = vpop.eup %6529 }
 0xd49   :  { %v4745_v43 = vmul.f32 %v6530_v41, %v4743_v40 }
 0xd4b   :  { %v4747_v45 = vsel %vm4746_vm11, %v4743_v40, %v4745_v43 }
 0xd4c   :  { %v4750_v23 = vsel %vm4748_vm12, %v4749_v44, %v4747_v45 }
 0xd4d   :  { %v4752_v47 = vrot.slane %v4750_v23, 7 }
 0xd4f   :  { %v4755_v52 = vsel %vm4754_vm13, %v4683_v7, %v4752_v47 }
 0xd50   :  { %4757 = vst.msk [vmem:[#allocation4] sm:$0x3] %vm4756_vm14, %v4755_v52 }
 0xd51   :  { %6592 = shalt.err (!%p6589_p4)
}
 0xd52   :  { %s6593_s21 = scalar_lea.hbm %s8233_s7, 32 }
 0xd53   :  { %p6594_p5 = scmp.ne.s32.totalorder %s8233_s7, %s6593_s21  ;;  %p6597_p6 = scmp.lt.u32.totalorder %s6593_s21, %s8233_s7 }
 0xd55   :  { %p6599_p7 = pnand %p6597_p6, %p6594_p5 }
 0xd57   :  { %6602 = shalt.err (!%p6599_p7)
}
 0xd58   :  { %4767 = dma.vmem_to_hbm [thread:$0]  %s4765_s17, 32, %s8233_s7, [#allocation5]  }
 0xd59   :  { %6603 = dma.done.wait [#allocation5], 32  }
 0xd5a   :  { %6604 = vsyncadd [#allocation5], 4294967264 }
 0xd5b   :  { %4771 = vsyncpa [#allocation5], 1 }

</bundles_post_ra>
